<compile_context>
chip_gen: v7x
topology: tpu7x:2x2x1
jax: 0.10.0
libtpu: 0.0.40
codegen_flags: <defaults>
</compile_context>

<pallas_src>
import jax
import jax.numpy as jnp
import numpy as np
from jax import lax
from jax.experimental import pallas as pl
from jax.experimental.pallas import tpu as pltpu

VMEM_LIMIT = 64 * 1024 * 1024    # raised from 32 MiB; per-tile footprints are
TILE_BUDGET = 40 * 1024 * 1024   # capped below this so v7x (64 MiB) still fits
_PAD_GATE_VAL = 1.0e4            # saturates the update gate -> h passes through
MAX_TC = 32                      # max timesteps per Stage-2 grid iteration


# ----------------------------------------------------------------------------
# small helpers
# ----------------------------------------------------------------------------
def _round_up(x, m):
    return (x + m - 1) // m * m


def _pick_tn(N):
    for tn in (512, 256, 128):
        if tn <= N and N % tn == 0:
            return tn
    return N


def _pick_tm(M, K, TN, a_item, o_item, n_a, budget=TILE_BUDGET):
    """Largest row tile that divides M and keeps the double-buffered tile set
    (n_a A-blocks + n_a weight blocks + out block) under the VMEM budget."""
    w_bytes = 2 * n_a * K * TN * a_item
    for tm in (1024, 512, 256, 128, 64, 32, 16, 8):
        if tm <= M and M % tm == 0:
            need = w_bytes + 2 * (n_a * tm * K * a_item + tm * TN * o_item)
            if need <= budget:
                return tm
    return 8


def _choose_tc(T, tb, Hp, budget=TILE_BUDGET):
    """Timesteps per Stage-2 grid iteration: big enough to amortise grid-step
    overhead, small enough to fit VMEM, and chosen so T padding is 0 (or <=7
    when T is large and has no divisor in [8, max_tc])."""
    def stage2_bytes(tc):
        io = 2 * 2 * tc * tb * 3 * Hp * 2 + 2 * 2 * tc * tb * Hp * 2  # bf16 io
        w = 2 * 2 * Hp * 3 * Hp * 2                                    # weights
        scr = 2 * tb * Hp * 4                                          # f32 h
        return io + w + scr

    max_tc = MAX_TC
    while max_tc > 8 and stage2_bytes(max_tc) > budget:
        max_tc //= 2
    if T <= max_tc:
        return T
    for tc in range(max_tc, 7, -1):
        if T % tc == 0:
            return tc
    return 8


def _pad_gate_weight(w, H, Hp):
    """(3H, H) PyTorch GRU weight -> (Hp, 3Hp) transposed, gate blocks at
    multiples of Hp (so x @ result keeps the r|z|n order under padding)."""
    w3 = w.reshape(3, H, H)
    w3 = jnp.pad(w3, ((0, 0), (0, Hp - H), (0, Hp - H)))
    return jnp.transpose(w3, (2, 0, 1)).reshape(Hp, 3 * Hp)


def _pad_gate_bias(b, H, Hp):
    b3 = jnp.pad(b.reshape(3, H), ((0, 0), (0, Hp - H)))
    return b3.reshape(1, 3 * Hp)


def _fold_bias(b_ih, b_hh, H, Hp):
    """Fold the r/z thirds of b_hh into the input-gate bias (added in Stage 1)
    and return the remaining n-gate b_hh term separately (must stay inside
    the r * (...) term of the GRU candidate)."""
    bih = _pad_gate_bias(b_ih, H, Hp)
    bhh = _pad_gate_bias(b_hh, H, Hp)
    folded = jnp.concatenate([bih[:, :2 * Hp] + bhh[:, :2 * Hp],
                              bih[:, 2 * Hp:]], axis=1)
    return folded, bhh[:, 2 * Hp:]


# ----------------------------------------------------------------------------
# Stage 1 / generic tiled matmul + bias (used for the gx precompute)
# ----------------------------------------------------------------------------
def _matmul_bias_kernel(a_ref, w_ref, b_ref, o_ref):
    o_ref[...] = (jnp.dot(a_ref[...], w_ref[...],
                          preferred_element_type=jnp.float32)
                  + b_ref[...]).astype(o_ref.dtype)


def _matmul_bias(a, w, b):
    """a: (M, K) bf16, w: (K, N) bf16, b: (1, N) f32 -> (M, N) bf16."""
    M, K = a.shape
    N = w.shape[1]
    TN = _pick_tn(N)
    TM = _pick_tm(M, K, TN, a_item=2, o_item=2, n_a=1)
    # TODO(synk): add a K grid axis with an f32 accumulator if Hp ever grows
    # past ~2048 so the (TM,K)/(K,TN) blocks stay generation-independent.
    return pl.pallas_call(
        _matmul_bias_kernel,
        out_shape=jax.ShapeDtypeStruct((M, N), jnp.bfloat16),
        grid_spec=pltpu.PrefetchScalarGridSpec(
            num_scalar_prefetch=0,
            grid=(M // TM, N // TN),
            in_specs=[
                pl.BlockSpec((TM, K), lambda i, j: (i, 0)),
                pl.BlockSpec((K, TN), lambda i, j: (0, j)),
                pl.BlockSpec((1, TN), lambda i, j: (0, j)),
            ],
            out_specs=pl.BlockSpec((TM, TN), lambda i, j: (i, j)),
        ),
        compiler_params=pltpu.CompilerParams(
            dimension_semantics=("parallel", "parallel"),
            vmem_limit_bytes=VMEM_LIMIT),
    )(a, w, b)


# ----------------------------------------------------------------------------
# Stage 2: fused bidirectional GRU recurrence, tc timesteps per grid step
# ----------------------------------------------------------------------------
def _bigru_kernel(gxf_ref, gxb_ref, whh_f_ref, whh_b_ref, bhn_f_ref, bhn_b_ref,
                  outf_ref, outb_ref, hf, hb):
    # reset hidden state at the start of every batch block's time walk
    @pl.when(pl.program_id(1) == 0)
    def _():
        hf[...] = jnp.zeros_like(hf)
        hb[...] = jnp.zeros_like(hb)

    tc = gxf_ref.shape[0]
    bsz, hdim = hf.shape

    # Hoisted out of the unrolled loop: weight loads and the (1,Hp)->(B,Hp)
    # bias broadcasts (JAX does not CSE broadcast_in_dim).
    whh_f = whh_f_ref[...]
    whh_b = whh_b_ref[...]
    bhn_f = jnp.broadcast_to(bhn_f_ref[...], (bsz, hdim))
    bhn_b = jnp.broadcast_to(bhn_b_ref[...], (bsz, hdim))

    def gru_step(gx, h, whh, bhn):
        # bf16 x bf16 MXU matmul with f32 accumulation; gate math in f32.
        gh = jnp.dot(h.astype(jnp.bfloat16), whh,
                     preferred_element_type=jnp.float32)
        r = jax.nn.sigmoid(gx[:, :hdim] + gh[:, :hdim])
        z = jax.nn.sigmoid(gx[:, hdim:2 * hdim] + gh[:, hdim:2 * hdim])
        n = jnp.tanh(gx[:, 2 * hdim:] + r * (gh[:, 2 * hdim:] + bhn))
        return (1.0 - z) * n + z * h

    def body(j, carry):
        # forward direction, step j of the chunk
        h_new = gru_step(gxf_ref[j].astype(jnp.float32), hf[...], whh_f, bhn_f)
        hf[...] = h_new
        outf_ref[j] = h_new.astype(outf_ref.dtype)

        # backward direction, mirrored step (its chunk arrives time-reversed)
        jb = tc - 1 - j
        hb_new = gru_step(gxb_ref[jb].astype(jnp.float32), hb[...], whh_b,
                          bhn_b)
        hb[...] = hb_new
        outb_ref[jb] = hb_new.astype(outb_ref.dtype)
        return carry

    # Fully-unrolled fori_loop: keeps LLO scheduling visibility while
    # bounding live ranges of the per-step gate temporaries.
    lax.fori_loop(0, tc, body, None, unroll=True)


def _bigru_recurrence(gx, whh_f, whh_b, bhn_f, bhn_b, *, tc, tb):
    T_pad, B_pad, six_hp = gx.shape
    Hp = six_hp // 6
    nchunks = T_pad // tc
    nb = B_pad // tb
    out_shape = jax.ShapeDtypeStruct((T_pad, B_pad, Hp), jnp.bfloat16)

    return pl.pallas_call(
        _bigru_kernel,
        out_shape=(out_shape, out_shape),
        grid_spec=pltpu.PrefetchScalarGridSpec(
            num_scalar_prefetch=0,
            grid=(nb, nchunks),
            in_specs=[
                # forward-direction gx chunk (first 3Hp of last dim)
                pl.BlockSpec((tc, tb, 3 * Hp), lambda b, i: (i, b, 0)),
                # backward-direction gx chunk (second 3Hp), reversed time
                pl.BlockSpec((tc, tb, 3 * Hp),
                             lambda b, i: (nchunks - 1 - i, b, 1)),
                pl.BlockSpec((Hp, 3 * Hp), lambda b, i: (0, 0)),   # W_hh_f^T
                pl.BlockSpec((Hp, 3 * Hp), lambda b, i: (0, 0)),   # W_hh_b^T
                pl.BlockSpec((1, Hp), lambda b, i: (0, 0)),        # b_hh_n f
                pl.BlockSpec((1, Hp), lambda b, i: (0, 0)),        # b_hh_n b
            ],
            out_specs=(
                pl.BlockSpec((tc, tb, Hp), lambda b, i: (i, b, 0)),
                pl.BlockSpec((tc, tb, Hp),
                             lambda b, i: (nchunks - 1 - i, b, 0)),
            ),
            scratch_shapes=[pltpu.VMEM((tb, Hp), jnp.float32),
                            pltpu.VMEM((tb, Hp), jnp.float32)],
        ),
        compiler_params=pltpu.CompilerParams(
            dimension_semantics=("parallel", "arbitrary"),
            vmem_limit_bytes=VMEM_LIMIT),
    )(gx, gx, whh_f, whh_b, bhn_f, bhn_b)


# ----------------------------------------------------------------------------
# Stage 3: output projection with split K (no concat of out_f / out_b)
# ----------------------------------------------------------------------------
def _dual_matmul_bias_kernel(af_ref, ab_ref, wf_ref, wb_ref, b_ref, o_ref):
    acc = jnp.dot(af_ref[...], wf_ref[...], preferred_element_type=jnp.float32)
    acc = acc + jnp.dot(ab_ref[...], wb_ref[...],
                        preferred_element_type=jnp.float32)
    o_ref[...] = (acc + b_ref[...]).astype(o_ref.dtype)


def _dual_matmul_bias(af, ab, wf, wb, b):
    """af/ab: (M, K) bf16, wf/wb: (K, N) bf16, b: (1, N) f32 -> (M, N) f32."""
    M, K = af.shape
    N = wf.shape[1]
    TN = _pick_tn(N)
    TM = _pick_tm(M, K, TN, a_item=2, o_item=4, n_a=2)
    return pl.pallas_call(
        _dual_matmul_bias_kernel,
        out_shape=jax.ShapeDtypeStruct((M, N), jnp.float32),
        grid_spec=pltpu.PrefetchScalarGridSpec(
            num_scalar_prefetch=0,
            grid=(M // TM, N // TN),
            in_specs=[
                pl.BlockSpec((TM, K), lambda i, j: (i, 0)),
                pl.BlockSpec((TM, K), lambda i, j: (i, 0)),
                pl.BlockSpec((K, TN), lambda i, j: (0, j)),
                pl.BlockSpec((K, TN), lambda i, j: (0, j)),
                pl.BlockSpec((1, TN), lambda i, j: (0, j)),
            ],
            out_specs=pl.BlockSpec((TM, TN), lambda i, j: (i, j)),
        ),
        compiler_params=pltpu.CompilerParams(
            dimension_semantics=("parallel", "parallel"),
            vmem_limit_bytes=VMEM_LIMIT),
    )(af, ab, wf, wb, b)


# ----------------------------------------------------------------------------
# Full forward pass
# ----------------------------------------------------------------------------
@jax.jit
def two_lstm_forward(inputs, params):
    """inputs: (B, T, dim_hidden) -> (B, T, dim_voc)."""
    B, T, H = inputs.shape
    V = params["w_out"].shape[0]

    Hp = _round_up(H, 128)          # lane-aligned hidden dim
    Vp = _round_up(V, 128)          # lane-aligned vocab dim
    B_pad = _round_up(B, 8)         # sublane-aligned batch

    # Split batch across TensorCores only when each half keeps >=128 MXU rows
    # (helps v7x's 2 TCs; avoids hurting latency-bound small batches).
    nb = 2 if (B_pad % 16 == 0 and B_pad // 2 >= 128) else 1
    tb = B_pad // nb
    tc = _choose_tc(T, tb, Hp)      # timesteps per Stage-2 grid iteration
    T_pad = _round_up(T, tc)        # 0 padded steps for most T, <=7 otherwise

    # ---- padded, gate-block-aware parameter layout (MXU operands in bf16) --
    wih = jnp.concatenate([_pad_gate_weight(params["w_ih_f"], H, Hp),
                           _pad_gate_weight(params["w_ih_b"], H, Hp)],
                          axis=1).astype(jnp.bfloat16)
    bih_f, bhn_f = _fold_bias(params["b_ih_f"], params["b_hh_f"], H, Hp)
    bih_b, bhn_b = _fold_bias(params["b_ih_b"], params["b_hh_b"], H, Hp)
    bih = jnp.concatenate([bih_f, bih_b], axis=1)                  # f32
    whh_f = _pad_gate_weight(params["w_hh_f"], H, Hp).astype(jnp.bfloat16)
    whh_b = _pad_gate_weight(params["w_hh_b"], H, Hp).astype(jnp.bfloat16)
    wout_f = jnp.pad(jnp.transpose(params["w_out"][:, :H]),
                     ((0, Hp - H), (0, Vp - V))).astype(jnp.bfloat16)
    wout_b = jnp.pad(jnp.transpose(params["w_out"][:, H:]),
                     ((0, Hp - H), (0, Vp - V))).astype(jnp.bfloat16)
    bout = jnp.pad(params["b_out"], (0, Vp - V)).reshape(1, Vp)    # f32

    # ---- time-major, padded activations ------------------------------------
    x = jnp.transpose(inputs, (1, 0, 2))                        # (T, B, H)
    x = jnp.pad(x, ((0, 0), (0, B_pad - B), (0, Hp - H)))       # (T, Bp, Hp)
    x = x.astype(jnp.bfloat16)

    # ---- stage 1: hoisted input-gate matmul (both directions at once) ------
    gx = _matmul_bias(x.reshape(T * B_pad, Hp), wih, bih)       # (T*Bp, 6Hp)
    gx = gx.reshape(T, B_pad, 6 * Hp)
    if T_pad != T:
        # Padded timesteps: saturated update gate -> carried state unchanged,
        # so the backward direction's warm-up over padding is a no-op.
        gx = jnp.pad(gx, ((0, T_pad - T), (0, 0), (0, 0)),
                     constant_values=_PAD_GATE_VAL)

    # ---- stage 2: fused bidirectional recurrence ---------------------------
    out_f, out_b = _bigru_recurrence(gx, whh_f, whh_b, bhn_f, bhn_b,
                                     tc=tc, tb=tb)

    # ---- stage 3: output projection (split-K, no concat buffer) ------------
    y = _dual_matmul_bias(out_f.reshape(T_pad * B_pad, Hp),
                          out_b.reshape(T_pad * B_pad, Hp),
                          wout_f, wout_b, bout)                 # (Tp*Bp, Vp)
    y = y.reshape(T_pad, B_pad, Vp)[:T, :B, :V]
    return jnp.transpose(y, (1, 0, 2))                          # (B, T, V)


# ----------------------------------------------------------------------------
# Pure-JAX reference (lax.scan, f32) for verification.
# ----------------------------------------------------------------------------
def _gru_ref_dir(x_tbh, w_ih, w_hh, b_ih, b_hh, reverse):
    T, B, H = x_tbh.shape
    xs = x_tbh[::-1] if reverse else x_tbh

    def step(h, x):
        gx = x @ w_ih.T + b_ih
        gh = h @ w_hh.T + b_hh
        r = jax.nn.sigmoid(gx[:, :H] + gh[:, :H])
        z = jax.nn.sigmoid(gx[:, H:2 * H] + gh[:, H:2 * H])
        n = jnp.tanh(gx[:, 2 * H:] + r * gh[:, 2 * H:])
        h_new = (1.0 - z) * n + z * h
        return h_new, h_new

    h0 = jnp.zeros((B, H), jnp.float32)
    _, ys = jax.lax.scan(step, h0, xs)
    return ys[::-1] if reverse else ys


def _reference_forward(inputs, params):
    B, T, H = inputs.shape
    x_tbh = jnp.transpose(inputs, (1, 0, 2))
    out_f = _gru_ref_dir(x_tbh, params["w_ih_f"], params["w_hh_f"],
                         params["b_ih_f"], params["b_hh_f"], reverse=False)
    out_b = _gru_ref_dir(x_tbh, params["w_ih_b"], params["w_hh_b"],
                         params["b_ih_b"], params["b_hh_b"], reverse=True)
    out = jnp.transpose(jnp.concatenate([out_f, out_b], axis=-1), (1, 0, 2))
    y = out.reshape(B * T, 2 * H) @ params["w_out"].T + params["b_out"]
    return y.reshape(B, T, -1)


# ----------------------------------------------------------------------------
# Deterministic parameter construction (PyTorch-style uniform init).
# ----------------------------------------------------------------------------
def make_params(key, dim_hidden, dim_voc):
    H, V = dim_hidden, dim_voc
    k = 1.0 / np.sqrt(H)
    keys = jax.random.split(key, 10)
    u = lambda kk, shape, bound: jax.random.uniform(
        kk, shape, jnp.float32, minval=-bound, maxval=bound)
    return {
        "w_ih_f": u(keys[0], (3 * H, H), k),
        "w_hh_f": u(keys[1], (3 * H, H), k),
        "b_ih_f": u(keys[2], (3 * H,), k),
        "b_hh_f": u(keys[3], (3 * H,), k),
        "w_ih_b": u(keys[4], (3 * H, H), k),
        "w_hh_b": u(keys[5], (3 * H, H), k),
        "b_ih_b": u(keys[6], (3 * H,), k),
        "b_hh_b": u(keys[7], (3 * H,), k),
        "w_out": u(keys[8], (V, 2 * H), 1.0 / np.sqrt(2 * H)),
        "b_out": u(keys[9], (V,), 1.0 / np.sqrt(2 * H)),
    }


if __name__ == "__main__":
    dim_hidden = 32
    dim_voc = 48
    batch, seq = 2, 8

    key = jax.random.PRNGKey(0)
    k_in, k_par = jax.random.split(key)
    inputs = jax.random.normal(k_in, (batch, seq, dim_hidden), jnp.float32)
    params = make_params(k_par, dim_hidden, dim_voc)

    out = two_lstm_forward(inputs, params)
    out = jax.block_until_ready(out)
    assert out.shape == (batch, seq, dim_voc), out.shape

    ref = jax.block_until_ready(_reference_forward(inputs, params))
    # bf16 matmuls with f32 accumulation -> loosened tolerance vs f32 ref.
    np.testing.assert_allclose(np.asarray(out), np.asarray(ref),
                               rtol=3e-2, atol=3e-2)

    print("KERNEL_OK")
</pallas_src>

<mosaic_0001>
module attributes {stable_mosaic.version = 11 : i64} {
  func.func @_matmul_bias_kernel(%arg0: i32, %arg1: i32, %arg2: memref<64x128xbf16, #tpu.memory_space<vmem>>, %arg3: memref<128x256xbf16, #tpu.memory_space<vmem>>, %arg4: memref<1x256xf32, #tpu.memory_space<vmem>>, %arg5: memref<64x256xbf16, #tpu.memory_space<vmem>>) attributes {dimension_semantics = [#tpu.dimension_semantics<parallel>, #tpu.dimension_semantics<parallel>], iteration_bounds = array<i64: 1, 3>, scalar_prefetch = 0 : i64, scratch_operands = 0 : i64, tpu.core_type = #tpu.core_type<tc>, window_params = [{transform_indices = @transform_0, window_bounds = array<i64: 64, 128>}, {transform_indices = @transform_1, window_bounds = array<i64: 128, 256>}, {transform_indices = @transform_2, window_bounds = array<i64: 1, 256>}, {transform_indices = @transform_3, window_bounds = array<i64: 64, 256>}]} {
    %c0 = arith.constant 0 : index
    %c0_0 = arith.constant 0 : index
    %0 = vector.load %arg2[%c0, %c0_0] : memref<64x128xbf16, #tpu.memory_space<vmem>>, vector<64x128xbf16>
    %c0_1 = arith.constant 0 : index
    %c0_2 = arith.constant 0 : index
    %1 = vector.load %arg3[%c0_1, %c0_2] : memref<128x256xbf16, #tpu.memory_space<vmem>>, vector<128x256xbf16>
    %cst = arith.constant dense<0.000000e+00> : vector<64x256xf32>
    %2 = tpu.matmul %0, %1, %cst {dimension_numbers = #tpu.dot_dimension_numbers<[1], [0], [0], [1], [0, 0, 1, 1], [], []>} : vector<64x128xbf16>, vector<128x256xbf16>, vector<64x256xf32> -> vector<64x256xf32>
    %c0_3 = arith.constant 0 : index
    %c0_4 = arith.constant 0 : index
    %3 = vector.load %arg4[%c0_3, %c0_4] : memref<1x256xf32, #tpu.memory_space<vmem>>, vector<1x256xf32>
    %4 = vector.broadcast %3 : vector<1x256xf32> to vector<64x256xf32>
    %5 = arith.addf %2, %4 : vector<64x256xf32>
    %6 = arith.truncf %5 : vector<64x256xf32> to vector<64x256xbf16>
    %c0_5 = arith.constant 0 : index
    %c0_6 = arith.constant 0 : index
    %7 = vector.load %arg5[%c0_5, %c0_6] : memref<64x256xbf16, #tpu.memory_space<vmem>>, vector<64x256xbf16>
    tpu.vector_store %arg5[%c0_5, %c0_6], %6 {strides = array<i32>} : memref<64x256xbf16, #tpu.memory_space<vmem>>, vector<64x256xbf16>,
    return
  }
  func.func @transform_0(%arg0: i32, %arg1: i32) -> (i32, i32) {
    %c0_i32 = arith.constant 0 : i32
    %c0_i32_0 = arith.constant 0 : i32
    return %arg0, %c0_i32 : i32, i32
  }
  func.func @transform_1(%arg0: i32, %arg1: i32) -> (i32, i32) {
    %c0_i32 = arith.constant 0 : i32
    %c0_i32_0 = arith.constant 0 : i32
    return %c0_i32, %arg1 : i32, i32
  }
  func.func @transform_2(%arg0: i32, %arg1: i32) -> (i32, i32) {
    %c0_i32 = arith.constant 0 : i32
    %c0_i32_0 = arith.constant 0 : i32
    return %c0_i32, %arg1 : i32, i32
  }
  func.func @transform_3(%arg0: i32, %arg1: i32) -> (i32, i32) {
    %c0_i32 = arith.constant 0 : i32
    return %arg0, %arg1 : i32, i32
  }
}

module attributes {stable_mosaic.version = 11 : i64} {
  func.func @_bigru_kernel(%arg0: i32, %arg1: i32, %arg2: memref<8x8x384xbf16, #tpu.memory_space<vmem>>, %arg3: memref<8x8x384xbf16, #tpu.memory_space<vmem>>, %arg4: memref<128x384xbf16, #tpu.memory_space<vmem>>, %arg5: memref<128x384xbf16, #tpu.memory_space<vmem>>, %arg6: memref<1x128xf32, #tpu.memory_space<vmem>>, %arg7: memref<1x128xf32, #tpu.memory_space<vmem>>, %arg8: memref<8x8x128xbf16, #tpu.memory_space<vmem>>, %arg9: memref<8x8x128xbf16, #tpu.memory_space<vmem>>, %arg10: memref<8x128xf32, #tpu.memory_space<vmem>>, %arg11: memref<8x128xf32, #tpu.memory_space<vmem>>) attributes {dimension_semantics = [#tpu.dimension_semantics<parallel>, #tpu.dimension_semantics<arbitrary>], iteration_bounds = array<i64: 1, 1>, scalar_prefetch = 0 : i64, scratch_operands = 2 : i64, tpu.core_type = #tpu.core_type<tc>, window_params = [{transform_indices = @transform_0, window_bounds = array<i64: 8, 8, 384>}, {transform_indices = @transform_1, window_bounds = array<i64: 8, 8, 384>}, {pipeline_mode = #tpu.pipeline_mode<synchronous>, transform_indices = @transform_2, window_bounds = array<i64: 128, 384>}, {pipeline_mode = #tpu.pipeline_mode<synchronous>, transform_indices = @transform_3, window_bounds = array<i64: 128, 384>}, {pipeline_mode = #tpu.pipeline_mode<synchronous>, transform_indices = @transform_4, window_bounds = array<i64: 1, 128>}, {pipeline_mode = #tpu.pipeline_mode<synchronous>, transform_indices = @transform_5, window_bounds = array<i64: 1, 128>}, {transform_indices = @transform_6, window_bounds = array<i64: 8, 8, 128>}, {transform_indices = @transform_7, window_bounds = array<i64: 8, 8, 128>}]} {
    %c0_i32 = arith.constant 0 : i32
    %0 = arith.cmpi eq, %arg1, %c0_i32 : i32
    %1 = arith.extui %0 : i1 to i32
    %c0_i32_0 = arith.constant 0 : i32
    %2 = arith.cmpi ne, %1, %c0_i32_0 : i32
    scf.if %2 {
      %cst_208 = arith.constant 0.000000e+00 : f32
      %659 = vector.broadcast %cst_208 : f32 to vector<8x128xf32>
      %c0_209 = arith.constant 0 : index
      %c0_210 = arith.constant 0 : index
      %660 = vector.load %arg10[%c0_209, %c0_210] : memref<8x128xf32, #tpu.memory_space<vmem>>, vector<8x128xf32>
      tpu.vector_store %arg10[%c0_209, %c0_210], %659 {strides = array<i32>} : memref<8x128xf32, #tpu.memory_space<vmem>>, vector<8x128xf32>,
      %cst_211 = arith.constant 0.000000e+00 : f32
      %661 = vector.broadcast %cst_211 : f32 to vector<8x128xf32>
      %c0_212 = arith.constant 0 : index
      %c0_213 = arith.constant 0 : index
      %662 = vector.load %arg11[%c0_212, %c0_213] : memref<8x128xf32, #tpu.memory_space<vmem>>, vector<8x128xf32>
      tpu.vector_store %arg11[%c0_212, %c0_213], %661 {strides = array<i32>} : memref<8x128xf32, #tpu.memory_space<vmem>>, vector<8x128xf32>,
    } else {
    }
    %c0 = arith.constant 0 : index
    %c0_1 = arith.constant 0 : index
    %3 = vector.load %arg4[%c0, %c0_1] : memref<128x384xbf16, #tpu.memory_space<vmem>>, vector<128x384xbf16>
    %c0_2 = arith.constant 0 : index
    %c0_3 = arith.constant 0 : index
    %4 = vector.load %arg5[%c0_2, %c0_3] : memref<128x384xbf16, #tpu.memory_space<vmem>>, vector<128x384xbf16>
    %c0_4 = arith.constant 0 : index
    %c0_5 = arith.constant 0 : index
    %5 = vector.load %arg6[%c0_4, %c0_5] : memref<1x128xf32, #tpu.memory_space<vmem>>, vector<1x128xf32>
    %6 = vector.shape_cast %5 : vector<1x128xf32> to vector<1x128xf32>
    %7 = vector.broadcast %6 : vector<1x128xf32> to vector<8x128xf32>
    %c0_6 = arith.constant 0 : index
    %c0_7 = arith.constant 0 : index
    %8 = vector.load %arg7[%c0_6, %c0_7] : memref<1x128xf32, #tpu.memory_space<vmem>>, vector<1x128xf32>
    %9 = vector.shape_cast %8 : vector<1x128xf32> to vector<1x128xf32>
    %10 = vector.broadcast %9 : vector<1x128xf32> to vector<8x128xf32>
    %c0_i32_8 = arith.constant 0 : i32
    %11 = arith.index_cast %c0_i32_8 : i32 to index
    %c0_9 = arith.constant 0 : index
    %c0_10 = arith.constant 0 : index
    %12 = vector.load %arg2[%11, %c0_9, %c0_10] : memref<8x8x384xbf16, #tpu.memory_space<vmem>>, vector<1x8x384xbf16>
    %13 = vector.shape_cast %12 : vector<1x8x384xbf16> to vector<8x384xbf16>
    %14 = arith.extf %13 : vector<8x384xbf16> to vector<8x384xf32>
    %c0_11 = arith.constant 0 : index
    %c0_12 = arith.constant 0 : index
    %15 = vector.load %arg10[%c0_11, %c0_12] : memref<8x128xf32, #tpu.memory_space<vmem>>, vector<8x128xf32>
    %16 = arith.truncf %15 : vector<8x128xf32> to vector<8x128xbf16>
    %cst = arith.constant dense<0.000000e+00> : vector<8x384xf32>
    %17 = tpu.matmul %16, %3, %cst {dimension_numbers = #tpu.dot_dimension_numbers<[1], [0], [0], [1], [0, 0, 1, 1], [], []>} : vector<8x128xbf16>, vector<128x384xbf16>, vector<8x384xf32> -> vector<8x384xf32>
    %18 = vector.extract_strided_slice %14 {offsets = [0, 0], sizes = [8, 128], strides = [1, 1]} : vector<8x384xf32> to vector<8x128xf32>
    %19 = vector.extract_strided_slice %17 {offsets = [0, 0], sizes = [8, 128], strides = [1, 1]} : vector<8x384xf32> to vector<8x128xf32>
    %20 = arith.addf %18, %19 : vector<8x128xf32>
    %21 = arith.negf %20 : vector<8x128xf32>
    %22 = math.exp %21 : vector<8x128xf32>
    %cst_13 = arith.constant 1.000000e+00 : f32
    %23 = vector.broadcast %cst_13 : f32 to vector<8x128xf32>
    %24 = arith.addf %23, %22 : vector<8x128xf32>
    %25 = arith.divf %23, %24 : vector<8x128xf32>
    %26 = vector.extract_strided_slice %14 {offsets = [0, 128], sizes = [8, 128], strides = [1, 1]} : vector<8x384xf32> to vector<8x128xf32>
    %27 = vector.extract_strided_slice %17 {offsets = [0, 128], sizes = [8, 128], strides = [1, 1]} : vector<8x384xf32> to vector<8x128xf32>
    %28 = arith.addf %26, %27 : vector<8x128xf32>
    %29 = arith.negf %28 : vector<8x128xf32>
    %30 = math.exp %29 : vector<8x128xf32>
    %cst_14 = arith.constant 1.000000e+00 : f32
    %31 = vector.broadcast %cst_14 : f32 to vector<8x128xf32>
    %32 = arith.addf %31, %30 : vector<8x128xf32>
    %33 = arith.divf %31, %32 : vector<8x128xf32>
    %34 = vector.extract_strided_slice %14 {offsets = [0, 256], sizes = [8, 128], strides = [1, 1]} : vector<8x384xf32> to vector<8x128xf32>
    %35 = vector.extract_strided_slice %17 {offsets = [0, 256], sizes = [8, 128], strides = [1, 1]} : vector<8x384xf32> to vector<8x128xf32>
    %36 = arith.addf %35, %7 : vector<8x128xf32>
    %37 = arith.mulf %25, %36 : vector<8x128xf32>
    %38 = arith.addf %34, %37 : vector<8x128xf32>
    %39 = math.tanh %38 : vector<8x128xf32>
    %cst_15 = arith.constant 1.000000e+00 : f32
    %40 = vector.broadcast %cst_15 : f32 to vector<8x128xf32>
    %41 = arith.subf %40, %33 : vector<8x128xf32>
    %42 = arith.mulf %41, %39 : vector<8x128xf32>
    %43 = arith.mulf %33, %15 : vector<8x128xf32>
    %44 = arith.addf %42, %43 : vector<8x128xf32>
    %c0_16 = arith.constant 0 : index
    %c0_17 = arith.constant 0 : index
    %45 = vector.load %arg10[%c0_16, %c0_17] : memref<8x128xf32, #tpu.memory_space<vmem>>, vector<8x128xf32>
    tpu.vector_store %arg10[%c0_16, %c0_17], %44 {strides = array<i32>} : memref<8x128xf32, #tpu.memory_space<vmem>>, vector<8x128xf32>,
    %46 = arith.truncf %44 : vector<8x128xf32> to vector<8x128xbf16>
    %47 = arith.index_cast %c0_i32_8 : i32 to index
    %c0_18 = arith.constant 0 : index
    %c0_19 = arith.constant 0 : index
    %48 = vector.load %arg8[%47, %c0_18, %c0_19] : memref<8x8x128xbf16, #tpu.memory_space<vmem>>, vector<1x8x128xbf16>
    %49 = vector.shape_cast %48 : vector<1x8x128xbf16> to vector<8x128xbf16>
    %50 = vector.shape_cast %46 : vector<8x128xbf16> to vector<1x8x128xbf16>
    tpu.vector_store %arg8[%47, %c0_18, %c0_19], %50 {strides = array<i32>} : memref<8x8x128xbf16, #tpu.memory_space<vmem>>, vector<1x8x128xbf16>,
    %c7_i32 = arith.constant 7 : i32
    %51 = arith.subi %c7_i32, %c0_i32_8 : i32
    %52 = arith.index_cast %51 : i32 to index
    %c0_20 = arith.constant 0 : index
    %c0_21 = arith.constant 0 : index
    %53 = vector.load %arg3[%52, %c0_20, %c0_21] : memref<8x8x384xbf16, #tpu.memory_space<vmem>>, vector<1x8x384xbf16>
    %54 = vector.shape_cast %53 : vector<1x8x384xbf16> to vector<8x384xbf16>
    %55 = arith.extf %54 : vector<8x384xbf16> to vector<8x384xf32>
    %c0_22 = arith.constant 0 : index
    %c0_23 = arith.constant 0 : index
    %56 = vector.load %arg11[%c0_22, %c0_23] : memref<8x128xf32, #tpu.memory_space<vmem>>, vector<8x128xf32>
    %57 = arith.truncf %56 : vector<8x128xf32> to vector<8x128xbf16>
    %cst_24 = arith.constant dense<0.000000e+00> : vector<8x384xf32>
    %58 = tpu.matmul %57, %4, %cst_24 {dimension_numbers = #tpu.dot_dimension_numbers<[1], [0], [0], [1], [0, 0, 1, 1], [], []>} : vector<8x128xbf16>, vector<128x384xbf16>, vector<8x384xf32> -> vector<8x384xf32>
    %59 = vector.extract_strided_slice %55 {offsets = [0, 0], sizes = [8, 128], strides = [1, 1]} : vector<8x384xf32> to vector<8x128xf32>
    %60 = vector.extract_strided_slice %58 {offsets = [0, 0], sizes = [8, 128], strides = [1, 1]} : vector<8x384xf32> to vector<8x128xf32>
    %61 = arith.addf %59, %60 : vector<8x128xf32>
    %62 = arith.negf %61 : vector<8x128xf32>
    %63 = math.exp %62 : vector<8x128xf32>
    %cst_25 = arith.constant 1.000000e+00 : f32
    %64 = vector.broadcast %cst_25 : f32 to vector<8x128xf32>
    %65 = arith.addf %64, %63 : vector<8x128xf32>
    %66 = arith.divf %64, %65 : vector<8x128xf32>
    %67 = vector.extract_strided_slice %55 {offsets = [0, 128], sizes = [8, 128], strides = [1, 1]} : vector<8x384xf32> to vector<8x128xf32>
    %68 = vector.extract_strided_slice %58 {offsets = [0, 128], sizes = [8, 128], strides = [1, 1]} : vector<8x384xf32> to vector<8x128xf32>
    %69 = arith.addf %67, %68 : vector<8x128xf32>
    %70 = arith.negf %69 : vector<8x128xf32>
    %71 = math.exp %70 : vector<8x128xf32>
    %cst_26 = arith.constant 1.000000e+00 : f32
    %72 = vector.broadcast %cst_26 : f32 to vector<8x128xf32>
    %73 = arith.addf %72, %71 : vector<8x128xf32>
    %74 = arith.divf %72, %73 : vector<8x128xf32>
    %75 = vector.extract_strided_slice %55 {offsets = [0, 256], sizes = [8, 128], strides = [1, 1]} : vector<8x384xf32> to vector<8x128xf32>
    %76 = vector.extract_strided_slice %58 {offsets = [0, 256], sizes = [8, 128], strides = [1, 1]} : vector<8x384xf32> to vector<8x128xf32>
    %77 = arith.addf %76, %10 : vector<8x128xf32>
    %78 = arith.mulf %66, %77 : vector<8x128xf32>
    %79 = arith.addf %75, %78 : vector<8x128xf32>
    %80 = math.tanh %79 : vector<8x128xf32>
    %cst_27 = arith.constant 1.000000e+00 : f32
    %81 = vector.broadcast %cst_27 : f32 to vector<8x128xf32>
    %82 = arith.subf %81, %74 : vector<8x128xf32>
    %83 = arith.mulf %82, %80 : vector<8x128xf32>
    %84 = arith.mulf %74, %56 : vector<8x128xf32>
    %85 = arith.addf %83, %84 : vector<8x128xf32>
    %c0_28 = arith.constant 0 : index
    %c0_29 = arith.constant 0 : index
    %86 = vector.load %arg11[%c0_28, %c0_29] : memref<8x128xf32, #tpu.memory_space<vmem>>, vector<8x128xf32>
    tpu.vector_store %arg11[%c0_28, %c0_29], %85 {strides = array<i32>} : memref<8x128xf32, #tpu.memory_space<vmem>>, vector<8x128xf32>,
    %87 = arith.truncf %85 : vector<8x128xf32> to vector<8x128xbf16>
    %88 = arith.index_cast %51 : i32 to index
    %c0_30 = arith.constant 0 : index
    %c0_31 = arith.constant 0 : index
    %89 = vector.load %arg9[%88, %c0_30, %c0_31] : memref<8x8x128xbf16, #tpu.memory_space<vmem>>, vector<1x8x128xbf16>
    %90 = vector.shape_cast %89 : vector<1x8x128xbf16> to vector<8x128xbf16>
    %91 = vector.shape_cast %87 : vector<8x128xbf16> to vector<1x8x128xbf16>
    tpu.vector_store %arg9[%88, %c0_30, %c0_31], %91 {strides = array<i32>} : memref<8x8x128xbf16, #tpu.memory_space<vmem>>, vector<1x8x128xbf16>,
    %c1_i32 = arith.constant 1 : i32
    %92 = arith.index_cast %c1_i32 : i32 to index
    %c0_32 = arith.constant 0 : index
    %c0_33 = arith.constant 0 : index
    %93 = vector.load %arg2[%92, %c0_32, %c0_33] : memref<8x8x384xbf16, #tpu.memory_space<vmem>>, vector<1x8x384xbf16>
    %94 = vector.shape_cast %93 : vector<1x8x384xbf16> to vector<8x384xbf16>
    %95 = arith.extf %94 : vector<8x384xbf16> to vector<8x384xf32>
    %c0_34 = arith.constant 0 : index
    %c0_35 = arith.constant 0 : index
    %96 = vector.load %arg10[%c0_34, %c0_35] : memref<8x128xf32, #tpu.memory_space<vmem>>, vector<8x128xf32>
    %97 = arith.truncf %96 : vector<8x128xf32> to vector<8x128xbf16>
    %cst_36 = arith.constant dense<0.000000e+00> : vector<8x384xf32>
    %98 = tpu.matmul %97, %3, %cst_36 {dimension_numbers = #tpu.dot_dimension_numbers<[1], [0], [0], [1], [0, 0, 1, 1], [], []>} : vector<8x128xbf16>, vector<128x384xbf16>, vector<8x384xf32> -> vector<8x384xf32>
    %99 = vector.extract_strided_slice %95 {offsets = [0, 0], sizes = [8, 128], strides = [1, 1]} : vector<8x384xf32> to vector<8x128xf32>
    %100 = vector.extract_strided_slice %98 {offsets = [0, 0], sizes = [8, 128], strides = [1, 1]} : vector<8x384xf32> to vector<8x128xf32>
    %101 = arith.addf %99, %100 : vector<8x128xf32>
    %102 = arith.negf %101 : vector<8x128xf32>
    %103 = math.exp %102 : vector<8x128xf32>
    %cst_37 = arith.constant 1.000000e+00 : f32
    %104 = vector.broadcast %cst_37 : f32 to vector<8x128xf32>
    %105 = arith.addf %104, %103 : vector<8x128xf32>
    %106 = arith.divf %104, %105 : vector<8x128xf32>
    %107 = vector.extract_strided_slice %95 {offsets = [0, 128], sizes = [8, 128], strides = [1, 1]} : vector<8x384xf32> to vector<8x128xf32>
    %108 = vector.extract_strided_slice %98 {offsets = [0, 128], sizes = [8, 128], strides = [1, 1]} : vector<8x384xf32> to vector<8x128xf32>
    %109 = arith.addf %107, %108 : vector<8x128xf32>
    %110 = arith.negf %109 : vector<8x128xf32>
    %111 = math.exp %110 : vector<8x128xf32>
    %cst_38 = arith.constant 1.000000e+00 : f32
    %112 = vector.broadcast %cst_38 : f32 to vector<8x128xf32>
    %113 = arith.addf %112, %111 : vector<8x128xf32>
    %114 = arith.divf %112, %113 : vector<8x128xf32>
    %115 = vector.extract_strided_slice %95 {offsets = [0, 256], sizes = [8, 128], strides = [1, 1]} : vector<8x384xf32> to vector<8x128xf32>
    %116 = vector.extract_strided_slice %98 {offsets = [0, 256], sizes = [8, 128], strides = [1, 1]} : vector<8x384xf32> to vector<8x128xf32>
    %117 = arith.addf %116, %7 : vector<8x128xf32>
    %118 = arith.mulf %106, %117 : vector<8x128xf32>
    %119 = arith.addf %115, %118 : vector<8x128xf32>
    %120 = math.tanh %119 : vector<8x128xf32>
    %cst_39 = arith.constant 1.000000e+00 : f32
    %121 = vector.broadcast %cst_39 : f32 to vector<8x128xf32>
    %122 = arith.subf %121, %114 : vector<8x128xf32>
    %123 = arith.mulf %122, %120 : vector<8x128xf32>
    %124 = arith.mulf %114, %96 : vector<8x128xf32>
    %125 = arith.addf %123, %124 : vector<8x128xf32>
    %c0_40 = arith.constant 0 : index
    %c0_41 = arith.constant 0 : index
    %126 = vector.load %arg10[%c0_40, %c0_41] : memref<8x128xf32, #tpu.memory_space<vmem>>, vector<8x128xf32>
    tpu.vector_store %arg10[%c0_40, %c0_41], %125 {strides = array<i32>} : memref<8x128xf32, #tpu.memory_space<vmem>>, vector<8x128xf32>,
    %127 = arith.truncf %125 : vector<8x128xf32> to vector<8x128xbf16>
    %128 = arith.index_cast %c1_i32 : i32 to index
    %c0_42 = arith.constant 0 : index
    %c0_43 = arith.constant 0 : index
    %129 = vector.load %arg8[%128, %c0_42, %c0_43] : memref<8x8x128xbf16, #tpu.memory_space<vmem>>, vector<1x8x128xbf16>
    %130 = vector.shape_cast %129 : vector<1x8x128xbf16> to vector<8x128xbf16>
    %131 = vector.shape_cast %127 : vector<8x128xbf16> to vector<1x8x128xbf16>
    tpu.vector_store %arg8[%128, %c0_42, %c0_43], %131 {strides = array<i32>} : memref<8x8x128xbf16, #tpu.memory_space<vmem>>, vector<1x8x128xbf16>,
    %c7_i32_44 = arith.constant 7 : i32
    %132 = arith.subi %c7_i32_44, %c1_i32 : i32
    %133 = arith.index_cast %132 : i32 to index
    %c0_45 = arith.constant 0 : index
    %c0_46 = arith.constant 0 : index
    %134 = vector.load %arg3[%133, %c0_45, %c0_46] : memref<8x8x384xbf16, #tpu.memory_space<vmem>>, vector<1x8x384xbf16>
    %135 = vector.shape_cast %134 : vector<1x8x384xbf16> to vector<8x384xbf16>
    %136 = arith.extf %135 : vector<8x384xbf16> to vector<8x384xf32>
    %c0_47 = arith.constant 0 : index
    %c0_48 = arith.constant 0 : index
    %137 = vector.load %arg11[%c0_47, %c0_48] : memref<8x128xf32, #tpu.memory_space<vmem>>, vector<8x128xf32>
    %138 = arith.truncf %137 : vector<8x128xf32> to vector<8x128xbf16>
    %cst_49 = arith.constant dense<0.000000e+00> : vector<8x384xf32>
    %139 = tpu.matmul %138, %4, %cst_49 {dimension_numbers = #tpu.dot_dimension_numbers<[1], [0], [0], [1], [0, 0, 1, 1], [], []>} : vector<8x128xbf16>, vector<128x384xbf16>, vector<8x384xf32> -> vector<8x384xf32>
    %140 = vector.extract_strided_slice %136 {offsets = [0, 0], sizes = [8, 128], strides = [1, 1]} : vector<8x384xf32> to vector<8x128xf32>
    %141 = vector.extract_strided_slice %139 {offsets = [0, 0], sizes = [8, 128], strides = [1, 1]} : vector<8x384xf32> to vector<8x128xf32>
    %142 = arith.addf %140, %141 : vector<8x128xf32>
    %143 = arith.negf %142 : vector<8x128xf32>
    %144 = math.exp %143 : vector<8x128xf32>
    %cst_50 = arith.constant 1.000000e+00 : f32
    %145 = vector.broadcast %cst_50 : f32 to vector<8x128xf32>
    %146 = arith.addf %145, %144 : vector<8x128xf32>
    %147 = arith.divf %145, %146 : vector<8x128xf32>
    %148 = vector.extract_strided_slice %136 {offsets = [0, 128], sizes = [8, 128], strides = [1, 1]} : vector<8x384xf32> to vector<8x128xf32>
    %149 = vector.extract_strided_slice %139 {offsets = [0, 128], sizes = [8, 128], strides = [1, 1]} : vector<8x384xf32> to vector<8x128xf32>
    %150 = arith.addf %148, %149 : vector<8x128xf32>
    %151 = arith.negf %150 : vector<8x128xf32>
    %152 = math.exp %151 : vector<8x128xf32>
    %cst_51 = arith.constant 1.000000e+00 : f32
    %153 = vector.broadcast %cst_51 : f32 to vector<8x128xf32>
    %154 = arith.addf %153, %152 : vector<8x128xf32>
    %155 = arith.divf %153, %154 : vector<8x128xf32>
    %156 = vector.extract_strided_slice %136 {offsets = [0, 256], sizes = [8, 128], strides = [1, 1]} : vector<8x384xf32> to vector<8x128xf32>
    %157 = vector.extract_strided_slice %139 {offsets = [0, 256], sizes = [8, 128], strides = [1, 1]} : vector<8x384xf32> to vector<8x128xf32>
    %158 = arith.addf %157, %10 : vector<8x128xf32>
    %159 = arith.mulf %147, %158 : vector<8x128xf32>
    %160 = arith.addf %156, %159 : vector<8x128xf32>
    %161 = math.tanh %160 : vector<8x128xf32>
    %cst_52 = arith.constant 1.000000e+00 : f32
    %162 = vector.broadcast %cst_52 : f32 to vector<8x128xf32>
    %163 = arith.subf %162, %155 : vector<8x128xf32>
    %164 = arith.mulf %163, %161 : vector<8x128xf32>
    %165 = arith.mulf %155, %137 : vector<8x128xf32>
    %166 = arith.addf %164, %165 : vector<8x128xf32>
    %c0_53 = arith.constant 0 : index
    %c0_54 = arith.constant 0 : index
    %167 = vector.load %arg11[%c0_53, %c0_54] : memref<8x128xf32, #tpu.memory_space<vmem>>, vector<8x128xf32>
    tpu.vector_store %arg11[%c0_53, %c0_54], %166 {strides = array<i32>} : memref<8x128xf32, #tpu.memory_space<vmem>>, vector<8x128xf32>,
    %168 = arith.truncf %166 : vector<8x128xf32> to vector<8x128xbf16>
    %169 = arith.index_cast %132 : i32 to index
    %c0_55 = arith.constant 0 : index
    %c0_56 = arith.constant 0 : index
    %170 = vector.load %arg9[%169, %c0_55, %c0_56] : memref<8x8x128xbf16, #tpu.memory_space<vmem>>, vector<1x8x128xbf16>
    %171 = vector.shape_cast %170 : vector<1x8x128xbf16> to vector<8x128xbf16>
    %172 = vector.shape_cast %168 : vector<8x128xbf16> to vector<1x8x128xbf16>
    tpu.vector_store %arg9[%169, %c0_55, %c0_56], %172 {strides = array<i32>} : memref<8x8x128xbf16, #tpu.memory_space<vmem>>, vector<1x8x128xbf16>,
    %c2_i32 = arith.constant 2 : i32
    %173 = arith.index_cast %c2_i32 : i32 to index
    %c0_57 = arith.constant 0 : index
    %c0_58 = arith.constant 0 : index
    %174 = vector.load %arg2[%173, %c0_57, %c0_58] : memref<8x8x384xbf16, #tpu.memory_space<vmem>>, vector<1x8x384xbf16>
    %175 = vector.shape_cast %174 : vector<1x8x384xbf16> to vector<8x384xbf16>
    %176 = arith.extf %175 : vector<8x384xbf16> to vector<8x384xf32>
    %c0_59 = arith.constant 0 : index
    %c0_60 = arith.constant 0 : index
    %177 = vector.load %arg10[%c0_59, %c0_60] : memref<8x128xf32, #tpu.memory_space<vmem>>, vector<8x128xf32>
    %178 = arith.truncf %177 : vector<8x128xf32> to vector<8x128xbf16>
    %cst_61 = arith.constant dense<0.000000e+00> : vector<8x384xf32>
    %179 = tpu.matmul %178, %3, %cst_61 {dimension_numbers = #tpu.dot_dimension_numbers<[1], [0], [0], [1], [0, 0, 1, 1], [], []>} : vector<8x128xbf16>, vector<128x384xbf16>, vector<8x384xf32> -> vector<8x384xf32>
    %180 = vector.extract_strided_slice %176 {offsets = [0, 0], sizes = [8, 128], strides = [1, 1]} : vector<8x384xf32> to vector<8x128xf32>
    %181 = vector.extract_strided_slice %179 {offsets = [0, 0], sizes = [8, 128], strides = [1, 1]} : vector<8x384xf32> to vector<8x128xf32>
    %182 = arith.addf %180, %181 : vector<8x128xf32>
    %183 = arith.negf %182 : vector<8x128xf32>
    %184 = math.exp %183 : vector<8x128xf32>
    %cst_62 = arith.constant 1.000000e+00 : f32
    %185 = vector.broadcast %cst_62 : f32 to vector<8x128xf32>
    %186 = arith.addf %185, %184 : vector<8x128xf32>
    %187 = arith.divf %185, %186 : vector<8x128xf32>
    %188 = vector.extract_strided_slice %176 {offsets = [0, 128], sizes = [8, 128], strides = [1, 1]} : vector<8x384xf32> to vector<8x128xf32>
    %189 = vector.extract_strided_slice %179 {offsets = [0, 128], sizes = [8, 128], strides = [1, 1]} : vector<8x384xf32> to vector<8x128xf32>
    %190 = arith.addf %188, %189 : vector<8x128xf32>
    %191 = arith.negf %190 : vector<8x128xf32>
    %192 = math.exp %191 : vector<8x128xf32>
    %cst_63 = arith.constant 1.000000e+00 : f32
    %193 = vector.broadcast %cst_63 : f32 to vector<8x128xf32>
    %194 = arith.addf %193, %192 : vector<8x128xf32>
    %195 = arith.divf %193, %194 : vector<8x128xf32>
    %196 = vector.extract_strided_slice %176 {offsets = [0, 256], sizes = [8, 128], strides = [1, 1]} : vector<8x384xf32> to vector<8x128xf32>
    %197 = vector.extract_strided_slice %179 {offsets = [0, 256], sizes = [8, 128], strides = [1, 1]} : vector<8x384xf32> to vector<8x128xf32>
    %198 = arith.addf %197, %7 : vector<8x128xf32>
    %199 = arith.mulf %187, %198 : vector<8x128xf32>
    %200 = arith.addf %196, %199 : vector<8x128xf32>
    %201 = math.tanh %200 : vector<8x128xf32>
    %cst_64 = arith.constant 1.000000e+00 : f32
    %202 = vector.broadcast %cst_64 : f32 to vector<8x128xf32>
    %203 = arith.subf %202, %195 : vector<8x128xf32>
    %204 = arith.mulf %203, %201 : vector<8x128xf32>
    %205 = arith.mulf %195, %177 : vector<8x128xf32>
    %206 = arith.addf %204, %205 : vector<8x128xf32>
    %c0_65 = arith.constant 0 : index
    %c0_66 = arith.constant 0 : index
    %207 = vector.load %arg10[%c0_65, %c0_66] : memref<8x128xf32, #tpu.memory_space<vmem>>, vector<8x128xf32>
    tpu.vector_store %arg10[%c0_65, %c0_66], %206 {strides = array<i32>} : memref<8x128xf32, #tpu.memory_space<vmem>>, vector<8x128xf32>,
    %208 = arith.truncf %206 : vector<8x128xf32> to vector<8x128xbf16>
    %209 = arith.index_cast %c2_i32 : i32 to index
    %c0_67 = arith.constant 0 : index
    %c0_68 = arith.constant 0 : index
    %210 = vector.load %arg8[%209, %c0_67, %c0_68] : memref<8x8x128xbf16, #tpu.memory_space<vmem>>, vector<1x8x128xbf16>
    %211 = vector.shape_cast %210 : vector<1x8x128xbf16> to vector<8x128xbf16>
    %212 = vector.shape_cast %208 : vector<8x128xbf16> to vector<1x8x128xbf16>
    tpu.vector_store %arg8[%209, %c0_67, %c0_68], %212 {strides = array<i32>} : memref<8x8x128xbf16, #tpu.memory_space<vmem>>, vector<1x8x128xbf16>,
    %c7_i32_69 = arith.constant 7 : i32
    %213 = arith.subi %c7_i32_69, %c2_i32 : i32
    %214 = arith.index_cast %213 : i32 to index
    %c0_70 = arith.constant 0 : index
    %c0_71 = arith.constant 0 : index
    %215 = vector.load %arg3[%214, %c0_70, %c0_71] : memref<8x8x384xbf16, #tpu.memory_space<vmem>>, vector<1x8x384xbf16>
    %216 = vector.shape_cast %215 : vector<1x8x384xbf16> to vector<8x384xbf16>
    %217 = arith.extf %216 : vector<8x384xbf16> to vector<8x384xf32>
    %c0_72 = arith.constant 0 : index
    %c0_73 = arith.constant 0 : index
    %218 = vector.load %arg11[%c0_72, %c0_73] : memref<8x128xf32, #tpu.memory_space<vmem>>, vector<8x128xf32>
    %219 = arith.truncf %218 : vector<8x128xf32> to vector<8x128xbf16>
    %cst_74 = arith.constant dense<0.000000e+00> : vector<8x384xf32>
    %220 = tpu.matmul %219, %4, %cst_74 {dimension_numbers = #tpu.dot_dimension_numbers<[1], [0], [0], [1], [0, 0, 1, 1], [], []>} : vector<8x128xbf16>, vector<128x384xbf16>, vector<8x384xf32> -> vector<8x384xf32>
    %221 = vector.extract_strided_slice %217 {offsets = [0, 0], sizes = [8, 128], strides = [1, 1]} : vector<8x384xf32> to vector<8x128xf32>
    %222 = vector.extract_strided_slice %220 {offsets = [0, 0], sizes = [8, 128], strides = [1, 1]} : vector<8x384xf32> to vector<8x128xf32>
    %223 = arith.addf %221, %222 : vector<8x128xf32>
    %224 = arith.negf %223 : vector<8x128xf32>
    %225 = math.exp %224 : vector<8x128xf32>
    %cst_75 = arith.constant 1.000000e+00 : f32
    %226 = vector.broadcast %cst_75 : f32 to vector<8x128xf32>
    %227 = arith.addf %226, %225 : vector<8x128xf32>
    %228 = arith.divf %226, %227 : vector<8x128xf32>
    %229 = vector.extract_strided_slice %217 {offsets = [0, 128], sizes = [8, 128], strides = [1, 1]} : vector<8x384xf32> to vector<8x128xf32>
    %230 = vector.extract_strided_slice %220 {offsets = [0, 128], sizes = [8, 128], strides = [1, 1]} : vector<8x384xf32> to vector<8x128xf32>
    %231 = arith.addf %229, %230 : vector<8x128xf32>
    %232 = arith.negf %231 : vector<8x128xf32>
    %233 = math.exp %232 : vector<8x128xf32>
    %cst_76 = arith.constant 1.000000e+00 : f32
    %234 = vector.broadcast %cst_76 : f32 to vector<8x128xf32>
    %235 = arith.addf %234, %233 : vector<8x128xf32>
    %236 = arith.divf %234, %235 : vector<8x128xf32>
    %237 = vector.extract_strided_slice %217 {offsets = [0, 256], sizes = [8, 128], strides = [1, 1]} : vector<8x384xf32> to vector<8x128xf32>
    %238 = vector.extract_strided_slice %220 {offsets = [0, 256], sizes = [8, 128], strides = [1, 1]} : vector<8x384xf32> to vector<8x128xf32>
    %239 = arith.addf %238, %10 : vector<8x128xf32>
    %240 = arith.mulf %228, %239 : vector<8x128xf32>
    %241 = arith.addf %237, %240 : vector<8x128xf32>
    %242 = math.tanh %241 : vector<8x128xf32>
    %cst_77 = arith.constant 1.000000e+00 : f32
    %243 = vector.broadcast %cst_77 : f32 to vector<8x128xf32>
    %244 = arith.subf %243, %236 : vector<8x128xf32>
    %245 = arith.mulf %244, %242 : vector<8x128xf32>
    %246 = arith.mulf %236, %218 : vector<8x128xf32>
    %247 = arith.addf %245, %246 : vector<8x128xf32>
    %c0_78 = arith.constant 0 : index
    %c0_79 = arith.constant 0 : index
    %248 = vector.load %arg11[%c0_78, %c0_79] : memref<8x128xf32, #tpu.memory_space<vmem>>, vector<8x128xf32>
    tpu.vector_store %arg11[%c0_78, %c0_79], %247 {strides = array<i32>} : memref<8x128xf32, #tpu.memory_space<vmem>>, vector<8x128xf32>,
    %249 = arith.truncf %247 : vector<8x128xf32> to vector<8x128xbf16>
    %250 = arith.index_cast %213 : i32 to index
    %c0_80 = arith.constant 0 : index
    %c0_81 = arith.constant 0 : index
    %251 = vector.load %arg9[%250, %c0_80, %c0_81] : memref<8x8x128xbf16, #tpu.memory_space<vmem>>, vector<1x8x128xbf16>
    %252 = vector.shape_cast %251 : vector<1x8x128xbf16> to vector<8x128xbf16>
    %253 = vector.shape_cast %249 : vector<8x128xbf16> to vector<1x8x128xbf16>
    tpu.vector_store %arg9[%250, %c0_80, %c0_81], %253 {strides = array<i32>} : memref<8x8x128xbf16, #tpu.memory_space<vmem>>, vector<1x8x128xbf16>,
    %c3_i32 = arith.constant 3 : i32
    %254 = arith.index_cast %c3_i32 : i32 to index
    %c0_82 = arith.constant 0 : index
    %c0_83 = arith.constant 0 : index
    %255 = vector.load %arg2[%254, %c0_82, %c0_83] : memref<8x8x384xbf16, #tpu.memory_space<vmem>>, vector<1x8x384xbf16>
    %256 = vector.shape_cast %255 : vector<1x8x384xbf16> to vector<8x384xbf16>
    %257 = arith.extf %256 : vector<8x384xbf16> to vector<8x384xf32>
    %c0_84 = arith.constant 0 : index
    %c0_85 = arith.constant 0 : index
    %258 = vector.load %arg10[%c0_84, %c0_85] : memref<8x128xf32, #tpu.memory_space<vmem>>, vector<8x128xf32>
    %259 = arith.truncf %258 : vector<8x128xf32> to vector<8x128xbf16>
    %cst_86 = arith.constant dense<0.000000e+00> : vector<8x384xf32>
    %260 = tpu.matmul %259, %3, %cst_86 {dimension_numbers = #tpu.dot_dimension_numbers<[1], [0], [0], [1], [0, 0, 1, 1], [], []>} : vector<8x128xbf16>, vector<128x384xbf16>, vector<8x384xf32> -> vector<8x384xf32>
    %261 = vector.extract_strided_slice %257 {offsets = [0, 0], sizes = [8, 128], strides = [1, 1]} : vector<8x384xf32> to vector<8x128xf32>
    %262 = vector.extract_strided_slice %260 {offsets = [0, 0], sizes = [8, 128], strides = [1, 1]} : vector<8x384xf32> to vector<8x128xf32>
    %263 = arith.addf %261, %262 : vector<8x128xf32>
    %264 = arith.negf %263 : vector<8x128xf32>
    %265 = math.exp %264 : vector<8x128xf32>
    %cst_87 = arith.constant 1.000000e+00 : f32
    %266 = vector.broadcast %cst_87 : f32 to vector<8x128xf32>
    %267 = arith.addf %266, %265 : vector<8x128xf32>
    %268 = arith.divf %266, %267 : vector<8x128xf32>
    %269 = vector.extract_strided_slice %257 {offsets = [0, 128], sizes = [8, 128], strides = [1, 1]} : vector<8x384xf32> to vector<8x128xf32>
    %270 = vector.extract_strided_slice %260 {offsets = [0, 128], sizes = [8, 128], strides = [1, 1]} : vector<8x384xf32> to vector<8x128xf32>
    %271 = arith.addf %269, %270 : vector<8x128xf32>
    %272 = arith.negf %271 : vector<8x128xf32>
    %273 = math.exp %272 : vector<8x128xf32>
    %cst_88 = arith.constant 1.000000e+00 : f32
    %274 = vector.broadcast %cst_88 : f32 to vector<8x128xf32>
    %275 = arith.addf %274, %273 : vector<8x128xf32>
    %276 = arith.divf %274, %275 : vector<8x128xf32>
    %277 = vector.extract_strided_slice %257 {offsets = [0, 256], sizes = [8, 128], strides = [1, 1]} : vector<8x384xf32> to vector<8x128xf32>
    %278 = vector.extract_strided_slice %260 {offsets = [0, 256], sizes = [8, 128], strides = [1, 1]} : vector<8x384xf32> to vector<8x128xf32>
    %279 = arith.addf %278, %7 : vector<8x128xf32>
    %280 = arith.mulf %268, %279 : vector<8x128xf32>
    %281 = arith.addf %277, %280 : vector<8x128xf32>
    %282 = math.tanh %281 : vector<8x128xf32>
    %cst_89 = arith.constant 1.000000e+00 : f32
    %283 = vector.broadcast %cst_89 : f32 to vector<8x128xf32>
    %284 = arith.subf %283, %276 : vector<8x128xf32>
    %285 = arith.mulf %284, %282 : vector<8x128xf32>
    %286 = arith.mulf %276, %258 : vector<8x128xf32>
    %287 = arith.addf %285, %286 : vector<8x128xf32>
    %c0_90 = arith.constant 0 : index
    %c0_91 = arith.constant 0 : index
    %288 = vector.load %arg10[%c0_90, %c0_91] : memref<8x128xf32, #tpu.memory_space<vmem>>, vector<8x128xf32>
    tpu.vector_store %arg10[%c0_90, %c0_91], %287 {strides = array<i32>} : memref<8x128xf32, #tpu.memory_space<vmem>>, vector<8x128xf32>,
    %289 = arith.truncf %287 : vector<8x128xf32> to vector<8x128xbf16>
    %290 = arith.index_cast %c3_i32 : i32 to index
    %c0_92 = arith.constant 0 : index
    %c0_93 = arith.constant 0 : index
    %291 = vector.load %arg8[%290, %c0_92, %c0_93] : memref<8x8x128xbf16, #tpu.memory_space<vmem>>, vector<1x8x128xbf16>
    %292 = vector.shape_cast %291 : vector<1x8x128xbf16> to vector<8x128xbf16>
    %293 = vector.shape_cast %289 : vector<8x128xbf16> to vector<1x8x128xbf16>
    tpu.vector_store %arg8[%290, %c0_92, %c0_93], %293 {strides = array<i32>} : memref<8x8x128xbf16, #tpu.memory_space<vmem>>, vector<1x8x128xbf16>,
    %c7_i32_94 = arith.constant 7 : i32
    %294 = arith.subi %c7_i32_94, %c3_i32 : i32
    %295 = arith.index_cast %294 : i32 to index
    %c0_95 = arith.constant 0 : index
    %c0_96 = arith.constant 0 : index
    %296 = vector.load %arg3[%295, %c0_95, %c0_96] : memref<8x8x384xbf16, #tpu.memory_space<vmem>>, vector<1x8x384xbf16>
    %297 = vector.shape_cast %296 : vector<1x8x384xbf16> to vector<8x384xbf16>
    %298 = arith.extf %297 : vector<8x384xbf16> to vector<8x384xf32>
    %c0_97 = arith.constant 0 : index
    %c0_98 = arith.constant 0 : index
    %299 = vector.load %arg11[%c0_97, %c0_98] : memref<8x128xf32, #tpu.memory_space<vmem>>, vector<8x128xf32>
    %300 = arith.truncf %299 : vector<8x128xf32> to vector<8x128xbf16>
    %cst_99 = arith.constant dense<0.000000e+00> : vector<8x384xf32>
    %301 = tpu.matmul %300, %4, %cst_99 {dimension_numbers = #tpu.dot_dimension_numbers<[1], [0], [0], [1], [0, 0, 1, 1], [], []>} : vector<8x128xbf16>, vector<128x384xbf16>, vector<8x384xf32> -> vector<8x384xf32>
    %302 = vector.extract_strided_slice %298 {offsets = [0, 0], sizes = [8, 128], strides = [1, 1]} : vector<8x384xf32> to vector<8x128xf32>
    %303 = vector.extract_strided_slice %301 {offsets = [0, 0], sizes = [8, 128], strides = [1, 1]} : vector<8x384xf32> to vector<8x128xf32>
    %304 = arith.addf %302, %303 : vector<8x128xf32>
    %305 = arith.negf %304 : vector<8x128xf32>
    %306 = math.exp %305 : vector<8x128xf32>
    %cst_100 = arith.constant 1.000000e+00 : f32
    %307 = vector.broadcast %cst_100 : f32 to vector<8x128xf32>
    %308 = arith.addf %307, %306 : vector<8x128xf32>
    %309 = arith.divf %307, %308 : vector<8x128xf32>
    %310 = vector.extract_strided_slice %298 {offsets = [0, 128], sizes = [8, 128], strides = [1, 1]} : vector<8x384xf32> to vector<8x128xf32>
    %311 = vector.extract_strided_slice %301 {offsets = [0, 128], sizes = [8, 128], strides = [1, 1]} : vector<8x384xf32> to vector<8x128xf32>
    %312 = arith.addf %310, %311 : vector<8x128xf32>
    %313 = arith.negf %312 : vector<8x128xf32>
    %314 = math.exp %313 : vector<8x128xf32>
    %cst_101 = arith.constant 1.000000e+00 : f32
    %315 = vector.broadcast %cst_101 : f32 to vector<8x128xf32>
    %316 = arith.addf %315, %314 : vector<8x128xf32>
    %317 = arith.divf %315, %316 : vector<8x128xf32>
    %318 = vector.extract_strided_slice %298 {offsets = [0, 256], sizes = [8, 128], strides = [1, 1]} : vector<8x384xf32> to vector<8x128xf32>
    %319 = vector.extract_strided_slice %301 {offsets = [0, 256], sizes = [8, 128], strides = [1, 1]} : vector<8x384xf32> to vector<8x128xf32>
    %320 = arith.addf %319, %10 : vector<8x128xf32>
    %321 = arith.mulf %309, %320 : vector<8x128xf32>
    %322 = arith.addf %318, %321 : vector<8x128xf32>
    %323 = math.tanh %322 : vector<8x128xf32>
    %cst_102 = arith.constant 1.000000e+00 : f32
    %324 = vector.broadcast %cst_102 : f32 to vector<8x128xf32>
    %325 = arith.subf %324, %317 : vector<8x128xf32>
    %326 = arith.mulf %325, %323 : vector<8x128xf32>
    %327 = arith.mulf %317, %299 : vector<8x128xf32>
    %328 = arith.addf %326, %327 : vector<8x128xf32>
    %c0_103 = arith.constant 0 : index
    %c0_104 = arith.constant 0 : index
    %329 = vector.load %arg11[%c0_103, %c0_104] : memref<8x128xf32, #tpu.memory_space<vmem>>, vector<8x128xf32>
    tpu.vector_store %arg11[%c0_103, %c0_104], %328 {strides = array<i32>} : memref<8x128xf32, #tpu.memory_space<vmem>>, vector<8x128xf32>,
    %330 = arith.truncf %328 : vector<8x128xf32> to vector<8x128xbf16>
    %331 = arith.index_cast %294 : i32 to index
    %c0_105 = arith.constant 0 : index
    %c0_106 = arith.constant 0 : index
    %332 = vector.load %arg9[%331, %c0_105, %c0_106] : memref<8x8x128xbf16, #tpu.memory_space<vmem>>, vector<1x8x128xbf16>
    %333 = vector.shape_cast %332 : vector<1x8x128xbf16> to vector<8x128xbf16>
    %334 = vector.shape_cast %330 : vector<8x128xbf16> to vector<1x8x128xbf16>
    tpu.vector_store %arg9[%331, %c0_105, %c0_106], %334 {strides = array<i32>} : memref<8x8x128xbf16, #tpu.memory_space<vmem>>, vector<1x8x128xbf16>,
    %c4_i32 = arith.constant 4 : i32
    %335 = arith.index_cast %c4_i32 : i32 to index
    %c0_107 = arith.constant 0 : index
    %c0_108 = arith.constant 0 : index
    %336 = vector.load %arg2[%335, %c0_107, %c0_108] : memref<8x8x384xbf16, #tpu.memory_space<vmem>>, vector<1x8x384xbf16>
    %337 = vector.shape_cast %336 : vector<1x8x384xbf16> to vector<8x384xbf16>
    %338 = arith.extf %337 : vector<8x384xbf16> to vector<8x384xf32>
    %c0_109 = arith.constant 0 : index
    %c0_110 = arith.constant 0 : index
    %339 = vector.load %arg10[%c0_109, %c0_110] : memref<8x128xf32, #tpu.memory_space<vmem>>, vector<8x128xf32>
    %340 = arith.truncf %339 : vector<8x128xf32> to vector<8x128xbf16>
    %cst_111 = arith.constant dense<0.000000e+00> : vector<8x384xf32>
    %341 = tpu.matmul %340, %3, %cst_111 {dimension_numbers = #tpu.dot_dimension_numbers<[1], [0], [0], [1], [0, 0, 1, 1], [], []>} : vector<8x128xbf16>, vector<128x384xbf16>, vector<8x384xf32> -> vector<8x384xf32>
    %342 = vector.extract_strided_slice %338 {offsets = [0, 0], sizes = [8, 128], strides = [1, 1]} : vector<8x384xf32> to vector<8x128xf32>
    %343 = vector.extract_strided_slice %341 {offsets = [0, 0], sizes = [8, 128], strides = [1, 1]} : vector<8x384xf32> to vector<8x128xf32>
    %344 = arith.addf %342, %343 : vector<8x128xf32>
    %345 = arith.negf %344 : vector<8x128xf32>
    %346 = math.exp %345 : vector<8x128xf32>
    %cst_112 = arith.constant 1.000000e+00 : f32
    %347 = vector.broadcast %cst_112 : f32 to vector<8x128xf32>
    %348 = arith.addf %347, %346 : vector<8x128xf32>
    %349 = arith.divf %347, %348 : vector<8x128xf32>
    %350 = vector.extract_strided_slice %338 {offsets = [0, 128], sizes = [8, 128], strides = [1, 1]} : vector<8x384xf32> to vector<8x128xf32>
    %351 = vector.extract_strided_slice %341 {offsets = [0, 128], sizes = [8, 128], strides = [1, 1]} : vector<8x384xf32> to vector<8x128xf32>
    %352 = arith.addf %350, %351 : vector<8x128xf32>
    %353 = arith.negf %352 : vector<8x128xf32>
    %354 = math.exp %353 : vector<8x128xf32>
    %cst_113 = arith.constant 1.000000e+00 : f32
    %355 = vector.broadcast %cst_113 : f32 to vector<8x128xf32>
    %356 = arith.addf %355, %354 : vector<8x128xf32>
    %357 = arith.divf %355, %356 : vector<8x128xf32>
    %358 = vector.extract_strided_slice %338 {offsets = [0, 256], sizes = [8, 128], strides = [1, 1]} : vector<8x384xf32> to vector<8x128xf32>
    %359 = vector.extract_strided_slice %341 {offsets = [0, 256], sizes = [8, 128], strides = [1, 1]} : vector<8x384xf32> to vector<8x128xf32>
    %360 = arith.addf %359, %7 : vector<8x128xf32>
    %361 = arith.mulf %349, %360 : vector<8x128xf32>
    %362 = arith.addf %358, %361 : vector<8x128xf32>
    %363 = math.tanh %362 : vector<8x128xf32>
    %cst_114 = arith.constant 1.000000e+00 : f32
    %364 = vector.broadcast %cst_114 : f32 to vector<8x128xf32>
    %365 = arith.subf %364, %357 : vector<8x128xf32>
    %366 = arith.mulf %365, %363 : vector<8x128xf32>
    %367 = arith.mulf %357, %339 : vector<8x128xf32>
    %368 = arith.addf %366, %367 : vector<8x128xf32>
    %c0_115 = arith.constant 0 : index
    %c0_116 = arith.constant 0 : index
    %369 = vector.load %arg10[%c0_115, %c0_116] : memref<8x128xf32, #tpu.memory_space<vmem>>, vector<8x128xf32>
    tpu.vector_store %arg10[%c0_115, %c0_116], %368 {strides = array<i32>} : memref<8x128xf32, #tpu.memory_space<vmem>>, vector<8x128xf32>,
    %370 = arith.truncf %368 : vector<8x128xf32> to vector<8x128xbf16>
    %371 = arith.index_cast %c4_i32 : i32 to index
    %c0_117 = arith.constant 0 : index
    %c0_118 = arith.constant 0 : index
    %372 = vector.load %arg8[%371, %c0_117, %c0_118] : memref<8x8x128xbf16, #tpu.memory_space<vmem>>, vector<1x8x128xbf16>
    %373 = vector.shape_cast %372 : vector<1x8x128xbf16> to vector<8x128xbf16>
    %374 = vector.shape_cast %370 : vector<8x128xbf16> to vector<1x8x128xbf16>
    tpu.vector_store %arg8[%371, %c0_117, %c0_118], %374 {strides = array<i32>} : memref<8x8x128xbf16, #tpu.memory_space<vmem>>, vector<1x8x128xbf16>,
    %c7_i32_119 = arith.constant 7 : i32
    %375 = arith.subi %c7_i32_119, %c4_i32 : i32
    %376 = arith.index_cast %375 : i32 to index
    %c0_120 = arith.constant 0 : index
    %c0_121 = arith.constant 0 : index
    %377 = vector.load %arg3[%376, %c0_120, %c0_121] : memref<8x8x384xbf16, #tpu.memory_space<vmem>>, vector<1x8x384xbf16>
    %378 = vector.shape_cast %377 : vector<1x8x384xbf16> to vector<8x384xbf16>
    %379 = arith.extf %378 : vector<8x384xbf16> to vector<8x384xf32>
    %c0_122 = arith.constant 0 : index
    %c0_123 = arith.constant 0 : index
    %380 = vector.load %arg11[%c0_122, %c0_123] : memref<8x128xf32, #tpu.memory_space<vmem>>, vector<8x128xf32>
    %381 = arith.truncf %380 : vector<8x128xf32> to vector<8x128xbf16>
    %cst_124 = arith.constant dense<0.000000e+00> : vector<8x384xf32>
    %382 = tpu.matmul %381, %4, %cst_124 {dimension_numbers = #tpu.dot_dimension_numbers<[1], [0], [0], [1], [0, 0, 1, 1], [], []>} : vector<8x128xbf16>, vector<128x384xbf16>, vector<8x384xf32> -> vector<8x384xf32>
    %383 = vector.extract_strided_slice %379 {offsets = [0, 0], sizes = [8, 128], strides = [1, 1]} : vector<8x384xf32> to vector<8x128xf32>
    %384 = vector.extract_strided_slice %382 {offsets = [0, 0], sizes = [8, 128], strides = [1, 1]} : vector<8x384xf32> to vector<8x128xf32>
    %385 = arith.addf %383, %384 : vector<8x128xf32>
    %386 = arith.negf %385 : vector<8x128xf32>
    %387 = math.exp %386 : vector<8x128xf32>
    %cst_125 = arith.constant 1.000000e+00 : f32
    %388 = vector.broadcast %cst_125 : f32 to vector<8x128xf32>
    %389 = arith.addf %388, %387 : vector<8x128xf32>
    %390 = arith.divf %388, %389 : vector<8x128xf32>
    %391 = vector.extract_strided_slice %379 {offsets = [0, 128], sizes = [8, 128], strides = [1, 1]} : vector<8x384xf32> to vector<8x128xf32>
    %392 = vector.extract_strided_slice %382 {offsets = [0, 128], sizes = [8, 128], strides = [1, 1]} : vector<8x384xf32> to vector<8x128xf32>
    %393 = arith.addf %391, %392 : vector<8x128xf32>
    %394 = arith.negf %393 : vector<8x128xf32>
    %395 = math.exp %394 : vector<8x128xf32>
    %cst_126 = arith.constant 1.000000e+00 : f32
    %396 = vector.broadcast %cst_126 : f32 to vector<8x128xf32>
    %397 = arith.addf %396, %395 : vector<8x128xf32>
    %398 = arith.divf %396, %397 : vector<8x128xf32>
    %399 = vector.extract_strided_slice %379 {offsets = [0, 256], sizes = [8, 128], strides = [1, 1]} : vector<8x384xf32> to vector<8x128xf32>
    %400 = vector.extract_strided_slice %382 {offsets = [0, 256], sizes = [8, 128], strides = [1, 1]} : vector<8x384xf32> to vector<8x128xf32>
    %401 = arith.addf %400, %10 : vector<8x128xf32>
    %402 = arith.mulf %390, %401 : vector<8x128xf32>
    %403 = arith.addf %399, %402 : vector<8x128xf32>
    %404 = math.tanh %403 : vector<8x128xf32>
    %cst_127 = arith.constant 1.000000e+00 : f32
    %405 = vector.broadcast %cst_127 : f32 to vector<8x128xf32>
    %406 = arith.subf %405, %398 : vector<8x128xf32>
    %407 = arith.mulf %406, %404 : vector<8x128xf32>
    %408 = arith.mulf %398, %380 : vector<8x128xf32>
    %409 = arith.addf %407, %408 : vector<8x128xf32>
    %c0_128 = arith.constant 0 : index
    %c0_129 = arith.constant 0 : index
    %410 = vector.load %arg11[%c0_128, %c0_129] : memref<8x128xf32, #tpu.memory_space<vmem>>, vector<8x128xf32>
    tpu.vector_store %arg11[%c0_128, %c0_129], %409 {strides = array<i32>} : memref<8x128xf32, #tpu.memory_space<vmem>>, vector<8x128xf32>,
    %411 = arith.truncf %409 : vector<8x128xf32> to vector<8x128xbf16>
    %412 = arith.index_cast %375 : i32 to index
    %c0_130 = arith.constant 0 : index
    %c0_131 = arith.constant 0 : index
    %413 = vector.load %arg9[%412, %c0_130, %c0_131] : memref<8x8x128xbf16, #tpu.memory_space<vmem>>, vector<1x8x128xbf16>
    %414 = vector.shape_cast %413 : vector<1x8x128xbf16> to vector<8x128xbf16>
    %415 = vector.shape_cast %411 : vector<8x128xbf16> to vector<1x8x128xbf16>
    tpu.vector_store %arg9[%412, %c0_130, %c0_131], %415 {strides = array<i32>} : memref<8x8x128xbf16, #tpu.memory_space<vmem>>, vector<1x8x128xbf16>,
    %c5_i32 = arith.constant 5 : i32
    %416 = arith.index_cast %c5_i32 : i32 to index
    %c0_132 = arith.constant 0 : index
    %c0_133 = arith.constant 0 : index
    %417 = vector.load %arg2[%416, %c0_132, %c0_133] : memref<8x8x384xbf16, #tpu.memory_space<vmem>>, vector<1x8x384xbf16>
    %418 = vector.shape_cast %417 : vector<1x8x384xbf16> to vector<8x384xbf16>
    %419 = arith.extf %418 : vector<8x384xbf16> to vector<8x384xf32>
    %c0_134 = arith.constant 0 : index
    %c0_135 = arith.constant 0 : index
    %420 = vector.load %arg10[%c0_134, %c0_135] : memref<8x128xf32, #tpu.memory_space<vmem>>, vector<8x128xf32>
    %421 = arith.truncf %420 : vector<8x128xf32> to vector<8x128xbf16>
    %cst_136 = arith.constant dense<0.000000e+00> : vector<8x384xf32>
    %422 = tpu.matmul %421, %3, %cst_136 {dimension_numbers = #tpu.dot_dimension_numbers<[1], [0], [0], [1], [0, 0, 1, 1], [], []>} : vector<8x128xbf16>, vector<128x384xbf16>, vector<8x384xf32> -> vector<8x384xf32>
    %423 = vector.extract_strided_slice %419 {offsets = [0, 0], sizes = [8, 128], strides = [1, 1]} : vector<8x384xf32> to vector<8x128xf32>
    %424 = vector.extract_strided_slice %422 {offsets = [0, 0], sizes = [8, 128], strides = [1, 1]} : vector<8x384xf32> to vector<8x128xf32>
    %425 = arith.addf %423, %424 : vector<8x128xf32>
    %426 = arith.negf %425 : vector<8x128xf32>
    %427 = math.exp %426 : vector<8x128xf32>
    %cst_137 = arith.constant 1.000000e+00 : f32
    %428 = vector.broadcast %cst_137 : f32 to vector<8x128xf32>
    %429 = arith.addf %428, %427 : vector<8x128xf32>
    %430 = arith.divf %428, %429 : vector<8x128xf32>
    %431 = vector.extract_strided_slice %419 {offsets = [0, 128], sizes = [8, 128], strides = [1, 1]} : vector<8x384xf32> to vector<8x128xf32>
    %432 = vector.extract_strided_slice %422 {offsets = [0, 128], sizes = [8, 128], strides = [1, 1]} : vector<8x384xf32> to vector<8x128xf32>
    %433 = arith.addf %431, %432 : vector<8x128xf32>
    %434 = arith.negf %433 : vector<8x128xf32>
    %435 = math.exp %434 : vector<8x128xf32>
    %cst_138 = arith.constant 1.000000e+00 : f32
    %436 = vector.broadcast %cst_138 : f32 to vector<8x128xf32>
    %437 = arith.addf %436, %435 : vector<8x128xf32>
    %438 = arith.divf %436, %437 : vector<8x128xf32>
    %439 = vector.extract_strided_slice %419 {offsets = [0, 256], sizes = [8, 128], strides = [1, 1]} : vector<8x384xf32> to vector<8x128xf32>
    %440 = vector.extract_strided_slice %422 {offsets = [0, 256], sizes = [8, 128], strides = [1, 1]} : vector<8x384xf32> to vector<8x128xf32>
    %441 = arith.addf %440, %7 : vector<8x128xf32>
    %442 = arith.mulf %430, %441 : vector<8x128xf32>
    %443 = arith.addf %439, %442 : vector<8x128xf32>
    %444 = math.tanh %443 : vector<8x128xf32>
    %cst_139 = arith.constant 1.000000e+00 : f32
    %445 = vector.broadcast %cst_139 : f32 to vector<8x128xf32>
    %446 = arith.subf %445, %438 : vector<8x128xf32>
    %447 = arith.mulf %446, %444 : vector<8x128xf32>
    %448 = arith.mulf %438, %420 : vector<8x128xf32>
    %449 = arith.addf %447, %448 : vector<8x128xf32>
    %c0_140 = arith.constant 0 : index
    %c0_141 = arith.constant 0 : index
    %450 = vector.load %arg10[%c0_140, %c0_141] : memref<8x128xf32, #tpu.memory_space<vmem>>, vector<8x128xf32>
    tpu.vector_store %arg10[%c0_140, %c0_141], %449 {strides = array<i32>} : memref<8x128xf32, #tpu.memory_space<vmem>>, vector<8x128xf32>,
    %451 = arith.truncf %449 : vector<8x128xf32> to vector<8x128xbf16>
    %452 = arith.index_cast %c5_i32 : i32 to index
    %c0_142 = arith.constant 0 : index
    %c0_143 = arith.constant 0 : index
    %453 = vector.load %arg8[%452, %c0_142, %c0_143] : memref<8x8x128xbf16, #tpu.memory_space<vmem>>, vector<1x8x128xbf16>
    %454 = vector.shape_cast %453 : vector<1x8x128xbf16> to vector<8x128xbf16>
    %455 = vector.shape_cast %451 : vector<8x128xbf16> to vector<1x8x128xbf16>
    tpu.vector_store %arg8[%452, %c0_142, %c0_143], %455 {strides = array<i32>} : memref<8x8x128xbf16, #tpu.memory_space<vmem>>, vector<1x8x128xbf16>,
    %c7_i32_144 = arith.constant 7 : i32
    %456 = arith.subi %c7_i32_144, %c5_i32 : i32
    %457 = arith.index_cast %456 : i32 to index
    %c0_145 = arith.constant 0 : index
    %c0_146 = arith.constant 0 : index
    %458 = vector.load %arg3[%457, %c0_145, %c0_146] : memref<8x8x384xbf16, #tpu.memory_space<vmem>>, vector<1x8x384xbf16>
    %459 = vector.shape_cast %458 : vector<1x8x384xbf16> to vector<8x384xbf16>
    %460 = arith.extf %459 : vector<8x384xbf16> to vector<8x384xf32>
    %c0_147 = arith.constant 0 : index
    %c0_148 = arith.constant 0 : index
    %461 = vector.load %arg11[%c0_147, %c0_148] : memref<8x128xf32, #tpu.memory_space<vmem>>, vector<8x128xf32>
    %462 = arith.truncf %461 : vector<8x128xf32> to vector<8x128xbf16>
    %cst_149 = arith.constant dense<0.000000e+00> : vector<8x384xf32>
    %463 = tpu.matmul %462, %4, %cst_149 {dimension_numbers = #tpu.dot_dimension_numbers<[1], [0], [0], [1], [0, 0, 1, 1], [], []>} : vector<8x128xbf16>, vector<128x384xbf16>, vector<8x384xf32> -> vector<8x384xf32>
    %464 = vector.extract_strided_slice %460 {offsets = [0, 0], sizes = [8, 128], strides = [1, 1]} : vector<8x384xf32> to vector<8x128xf32>
    %465 = vector.extract_strided_slice %463 {offsets = [0, 0], sizes = [8, 128], strides = [1, 1]} : vector<8x384xf32> to vector<8x128xf32>
    %466 = arith.addf %464, %465 : vector<8x128xf32>
    %467 = arith.negf %466 : vector<8x128xf32>
    %468 = math.exp %467 : vector<8x128xf32>
    %cst_150 = arith.constant 1.000000e+00 : f32
    %469 = vector.broadcast %cst_150 : f32 to vector<8x128xf32>
    %470 = arith.addf %469, %468 : vector<8x128xf32>
    %471 = arith.divf %469, %470 : vector<8x128xf32>
    %472 = vector.extract_strided_slice %460 {offsets = [0, 128], sizes = [8, 128], strides = [1, 1]} : vector<8x384xf32> to vector<8x128xf32>
    %473 = vector.extract_strided_slice %463 {offsets = [0, 128], sizes = [8, 128], strides = [1, 1]} : vector<8x384xf32> to vector<8x128xf32>
    %474 = arith.addf %472, %473 : vector<8x128xf32>
    %475 = arith.negf %474 : vector<8x128xf32>
    %476 = math.exp %475 : vector<8x128xf32>
    %cst_151 = arith.constant 1.000000e+00 : f32
    %477 = vector.broadcast %cst_151 : f32 to vector<8x128xf32>
    %478 = arith.addf %477, %476 : vector<8x128xf32>
    %479 = arith.divf %477, %478 : vector<8x128xf32>
    %480 = vector.extract_strided_slice %460 {offsets = [0, 256], sizes = [8, 128], strides = [1, 1]} : vector<8x384xf32> to vector<8x128xf32>
    %481 = vector.extract_strided_slice %463 {offsets = [0, 256], sizes = [8, 128], strides = [1, 1]} : vector<8x384xf32> to vector<8x128xf32>
    %482 = arith.addf %481, %10 : vector<8x128xf32>
    %483 = arith.mulf %471, %482 : vector<8x128xf32>
    %484 = arith.addf %480, %483 : vector<8x128xf32>
    %485 = math.tanh %484 : vector<8x128xf32>
    %cst_152 = arith.constant 1.000000e+00 : f32
    %486 = vector.broadcast %cst_152 : f32 to vector<8x128xf32>
    %487 = arith.subf %486, %479 : vector<8x128xf32>
    %488 = arith.mulf %487, %485 : vector<8x128xf32>
    %489 = arith.mulf %479, %461 : vector<8x128xf32>
    %490 = arith.addf %488, %489 : vector<8x128xf32>
    %c0_153 = arith.constant 0 : index
    %c0_154 = arith.constant 0 : index
    %491 = vector.load %arg11[%c0_153, %c0_154] : memref<8x128xf32, #tpu.memory_space<vmem>>, vector<8x128xf32>
    tpu.vector_store %arg11[%c0_153, %c0_154], %490 {strides = array<i32>} : memref<8x128xf32, #tpu.memory_space<vmem>>, vector<8x128xf32>,
    %492 = arith.truncf %490 : vector<8x128xf32> to vector<8x128xbf16>
    %493 = arith.index_cast %456 : i32 to index
    %c0_155 = arith.constant 0 : index
    %c0_156 = arith.constant 0 : index
    %494 = vector.load %arg9[%493, %c0_155, %c0_156] : memref<8x8x128xbf16, #tpu.memory_space<vmem>>, vector<1x8x128xbf16>
    %495 = vector.shape_cast %494 : vector<1x8x128xbf16> to vector<8x128xbf16>
    %496 = vector.shape_cast %492 : vector<8x128xbf16> to vector<1x8x128xbf16>
    tpu.vector_store %arg9[%493, %c0_155, %c0_156], %496 {strides = array<i32>} : memref<8x8x128xbf16, #tpu.memory_space<vmem>>, vector<1x8x128xbf16>,
    %c6_i32 = arith.constant 6 : i32
    %497 = arith.index_cast %c6_i32 : i32 to index
    %c0_157 = arith.constant 0 : index
    %c0_158 = arith.constant 0 : index
    %498 = vector.load %arg2[%497, %c0_157, %c0_158] : memref<8x8x384xbf16, #tpu.memory_space<vmem>>, vector<1x8x384xbf16>
    %499 = vector.shape_cast %498 : vector<1x8x384xbf16> to vector<8x384xbf16>
    %500 = arith.extf %499 : vector<8x384xbf16> to vector<8x384xf32>
    %c0_159 = arith.constant 0 : index
    %c0_160 = arith.constant 0 : index
    %501 = vector.load %arg10[%c0_159, %c0_160] : memref<8x128xf32, #tpu.memory_space<vmem>>, vector<8x128xf32>
    %502 = arith.truncf %501 : vector<8x128xf32> to vector<8x128xbf16>
    %cst_161 = arith.constant dense<0.000000e+00> : vector<8x384xf32>
    %503 = tpu.matmul %502, %3, %cst_161 {dimension_numbers = #tpu.dot_dimension_numbers<[1], [0], [0], [1], [0, 0, 1, 1], [], []>} : vector<8x128xbf16>, vector<128x384xbf16>, vector<8x384xf32> -> vector<8x384xf32>
    %504 = vector.extract_strided_slice %500 {offsets = [0, 0], sizes = [8, 128], strides = [1, 1]} : vector<8x384xf32> to vector<8x128xf32>
    %505 = vector.extract_strided_slice %503 {offsets = [0, 0], sizes = [8, 128], strides = [1, 1]} : vector<8x384xf32> to vector<8x128xf32>
    %506 = arith.addf %504, %505 : vector<8x128xf32>
    %507 = arith.negf %506 : vector<8x128xf32>
    %508 = math.exp %507 : vector<8x128xf32>
    %cst_162 = arith.constant 1.000000e+00 : f32
    %509 = vector.broadcast %cst_162 : f32 to vector<8x128xf32>
    %510 = arith.addf %509, %508 : vector<8x128xf32>
    %511 = arith.divf %509, %510 : vector<8x128xf32>
    %512 = vector.extract_strided_slice %500 {offsets = [0, 128], sizes = [8, 128], strides = [1, 1]} : vector<8x384xf32> to vector<8x128xf32>
    %513 = vector.extract_strided_slice %503 {offsets = [0, 128], sizes = [8, 128], strides = [1, 1]} : vector<8x384xf32> to vector<8x128xf32>
    %514 = arith.addf %512, %513 : vector<8x128xf32>
    %515 = arith.negf %514 : vector<8x128xf32>
    %516 = math.exp %515 : vector<8x128xf32>
    %cst_163 = arith.constant 1.000000e+00 : f32
    %517 = vector.broadcast %cst_163 : f32 to vector<8x128xf32>
    %518 = arith.addf %517, %516 : vector<8x128xf32>
    %519 = arith.divf %517, %518 : vector<8x128xf32>
    %520 = vector.extract_strided_slice %500 {offsets = [0, 256], sizes = [8, 128], strides = [1, 1]} : vector<8x384xf32> to vector<8x128xf32>
    %521 = vector.extract_strided_slice %503 {offsets = [0, 256], sizes = [8, 128], strides = [1, 1]} : vector<8x384xf32> to vector<8x128xf32>
    %522 = arith.addf %521, %7 : vector<8x128xf32>
    %523 = arith.mulf %511, %522 : vector<8x128xf32>
    %524 = arith.addf %520, %523 : vector<8x128xf32>
    %525 = math.tanh %524 : vector<8x128xf32>
    %cst_164 = arith.constant 1.000000e+00 : f32
    %526 = vector.broadcast %cst_164 : f32 to vector<8x128xf32>
    %527 = arith.subf %526, %519 : vector<8x128xf32>
    %528 = arith.mulf %527, %525 : vector<8x128xf32>
    %529 = arith.mulf %519, %501 : vector<8x128xf32>
    %530 = arith.addf %528, %529 : vector<8x128xf32>
    %c0_165 = arith.constant 0 : index
    %c0_166 = arith.constant 0 : index
    %531 = vector.load %arg10[%c0_165, %c0_166] : memref<8x128xf32, #tpu.memory_space<vmem>>, vector<8x128xf32>
    tpu.vector_store %arg10[%c0_165, %c0_166], %530 {strides = array<i32>} : memref<8x128xf32, #tpu.memory_space<vmem>>, vector<8x128xf32>,
    %532 = arith.truncf %530 : vector<8x128xf32> to vector<8x128xbf16>
    %533 = arith.index_cast %c6_i32 : i32 to index
    %c0_167 = arith.constant 0 : index
    %c0_168 = arith.constant 0 : index
    %534 = vector.load %arg8[%533, %c0_167, %c0_168] : memref<8x8x128xbf16, #tpu.memory_space<vmem>>, vector<1x8x128xbf16>
    %535 = vector.shape_cast %534 : vector<1x8x128xbf16> to vector<8x128xbf16>
    %536 = vector.shape_cast %532 : vector<8x128xbf16> to vector<1x8x128xbf16>
    tpu.vector_store %arg8[%533, %c0_167, %c0_168], %536 {strides = array<i32>} : memref<8x8x128xbf16, #tpu.memory_space<vmem>>, vector<1x8x128xbf16>,
    %c7_i32_169 = arith.constant 7 : i32
    %537 = arith.subi %c7_i32_169, %c6_i32 : i32
    %538 = arith.index_cast %537 : i32 to index
    %c0_170 = arith.constant 0 : index
    %c0_171 = arith.constant 0 : index
    %539 = vector.load %arg3[%538, %c0_170, %c0_171] : memref<8x8x384xbf16, #tpu.memory_space<vmem>>, vector<1x8x384xbf16>
    %540 = vector.shape_cast %539 : vector<1x8x384xbf16> to vector<8x384xbf16>
    %541 = arith.extf %540 : vector<8x384xbf16> to vector<8x384xf32>
    %c0_172 = arith.constant 0 : index
    %c0_173 = arith.constant 0 : index
    %542 = vector.load %arg11[%c0_172, %c0_173] : memref<8x128xf32, #tpu.memory_space<vmem>>, vector<8x128xf32>
    %543 = arith.truncf %542 : vector<8x128xf32> to vector<8x128xbf16>
    %cst_174 = arith.constant dense<0.000000e+00> : vector<8x384xf32>
    %544 = tpu.matmul %543, %4, %cst_174 {dimension_numbers = #tpu.dot_dimension_numbers<[1], [0], [0], [1], [0, 0, 1, 1], [], []>} : vector<8x128xbf16>, vector<128x384xbf16>, vector<8x384xf32> -> vector<8x384xf32>
    %545 = vector.extract_strided_slice %541 {offsets = [0, 0], sizes = [8, 128], strides = [1, 1]} : vector<8x384xf32> to vector<8x128xf32>
    %546 = vector.extract_strided_slice %544 {offsets = [0, 0], sizes = [8, 128], strides = [1, 1]} : vector<8x384xf32> to vector<8x128xf32>
    %547 = arith.addf %545, %546 : vector<8x128xf32>
    %548 = arith.negf %547 : vector<8x128xf32>
    %549 = math.exp %548 : vector<8x128xf32>
    %cst_175 = arith.constant 1.000000e+00 : f32
    %550 = vector.broadcast %cst_175 : f32 to vector<8x128xf32>
    %551 = arith.addf %550, %549 : vector<8x128xf32>
    %552 = arith.divf %550, %551 : vector<8x128xf32>
    %553 = vector.extract_strided_slice %541 {offsets = [0, 128], sizes = [8, 128], strides = [1, 1]} : vector<8x384xf32> to vector<8x128xf32>
    %554 = vector.extract_strided_slice %544 {offsets = [0, 128], sizes = [8, 128], strides = [1, 1]} : vector<8x384xf32> to vector<8x128xf32>
    %555 = arith.addf %553, %554 : vector<8x128xf32>
    %556 = arith.negf %555 : vector<8x128xf32>
    %557 = math.exp %556 : vector<8x128xf32>
    %cst_176 = arith.constant 1.000000e+00 : f32
    %558 = vector.broadcast %cst_176 : f32 to vector<8x128xf32>
    %559 = arith.addf %558, %557 : vector<8x128xf32>
    %560 = arith.divf %558, %559 : vector<8x128xf32>
    %561 = vector.extract_strided_slice %541 {offsets = [0, 256], sizes = [8, 128], strides = [1, 1]} : vector<8x384xf32> to vector<8x128xf32>
    %562 = vector.extract_strided_slice %544 {offsets = [0, 256], sizes = [8, 128], strides = [1, 1]} : vector<8x384xf32> to vector<8x128xf32>
    %563 = arith.addf %562, %10 : vector<8x128xf32>
    %564 = arith.mulf %552, %563 : vector<8x128xf32>
    %565 = arith.addf %561, %564 : vector<8x128xf32>
    %566 = math.tanh %565 : vector<8x128xf32>
    %cst_177 = arith.constant 1.000000e+00 : f32
    %567 = vector.broadcast %cst_177 : f32 to vector<8x128xf32>
    %568 = arith.subf %567, %560 : vector<8x128xf32>
    %569 = arith.mulf %568, %566 : vector<8x128xf32>
    %570 = arith.mulf %560, %542 : vector<8x128xf32>
    %571 = arith.addf %569, %570 : vector<8x128xf32>
    %c0_178 = arith.constant 0 : index
    %c0_179 = arith.constant 0 : index
    %572 = vector.load %arg11[%c0_178, %c0_179] : memref<8x128xf32, #tpu.memory_space<vmem>>, vector<8x128xf32>
    tpu.vector_store %arg11[%c0_178, %c0_179], %571 {strides = array<i32>} : memref<8x128xf32, #tpu.memory_space<vmem>>, vector<8x128xf32>,
    %573 = arith.truncf %571 : vector<8x128xf32> to vector<8x128xbf16>
    %574 = arith.index_cast %537 : i32 to index
    %c0_180 = arith.constant 0 : index
    %c0_181 = arith.constant 0 : index
    %575 = vector.load %arg9[%574, %c0_180, %c0_181] : memref<8x8x128xbf16, #tpu.memory_space<vmem>>, vector<1x8x128xbf16>
    %576 = vector.shape_cast %575 : vector<1x8x128xbf16> to vector<8x128xbf16>
    %577 = vector.shape_cast %573 : vector<8x128xbf16> to vector<1x8x128xbf16>
    tpu.vector_store %arg9[%574, %c0_180, %c0_181], %577 {strides = array<i32>} : memref<8x8x128xbf16, #tpu.memory_space<vmem>>, vector<1x8x128xbf16>,
    %c7_i32_182 = arith.constant 7 : i32
    %578 = arith.index_cast %c7_i32_182 : i32 to index
    %c0_183 = arith.constant 0 : index
    %c0_184 = arith.constant 0 : index
    %579 = vector.load %arg2[%578, %c0_183, %c0_184] : memref<8x8x384xbf16, #tpu.memory_space<vmem>>, vector<1x8x384xbf16>
    %580 = vector.shape_cast %579 : vector<1x8x384xbf16> to vector<8x384xbf16>
    %581 = arith.extf %580 : vector<8x384xbf16> to vector<8x384xf32>
    %c0_185 = arith.constant 0 : index
    %c0_186 = arith.constant 0 : index
    %582 = vector.load %arg10[%c0_185, %c0_186] : memref<8x128xf32, #tpu.memory_space<vmem>>, vector<8x128xf32>
    %583 = arith.truncf %582 : vector<8x128xf32> to vector<8x128xbf16>
    %cst_187 = arith.constant dense<0.000000e+00> : vector<8x384xf32>
    %584 = tpu.matmul %583, %3, %cst_187 {dimension_numbers = #tpu.dot_dimension_numbers<[1], [0], [0], [1], [0, 0, 1, 1], [], []>} : vector<8x128xbf16>, vector<128x384xbf16>, vector<8x384xf32> -> vector<8x384xf32>
    %585 = vector.extract_strided_slice %581 {offsets = [0, 0], sizes = [8, 128], strides = [1, 1]} : vector<8x384xf32> to vector<8x128xf32>
    %586 = vector.extract_strided_slice %584 {offsets = [0, 0], sizes = [8, 128], strides = [1, 1]} : vector<8x384xf32> to vector<8x128xf32>
    %587 = arith.addf %585, %586 : vector<8x128xf32>
    %588 = arith.negf %587 : vector<8x128xf32>
    %589 = math.exp %588 : vector<8x128xf32>
    %cst_188 = arith.constant 1.000000e+00 : f32
    %590 = vector.broadcast %cst_188 : f32 to vector<8x128xf32>
    %591 = arith.addf %590, %589 : vector<8x128xf32>
    %592 = arith.divf %590, %591 : vector<8x128xf32>
    %593 = vector.extract_strided_slice %581 {offsets = [0, 128], sizes = [8, 128], strides = [1, 1]} : vector<8x384xf32> to vector<8x128xf32>
    %594 = vector.extract_strided_slice %584 {offsets = [0, 128], sizes = [8, 128], strides = [1, 1]} : vector<8x384xf32> to vector<8x128xf32>
    %595 = arith.addf %593, %594 : vector<8x128xf32>
    %596 = arith.negf %595 : vector<8x128xf32>
    %597 = math.exp %596 : vector<8x128xf32>
    %cst_189 = arith.constant 1.000000e+00 : f32
    %598 = vector.broadcast %cst_189 : f32 to vector<8x128xf32>
    %599 = arith.addf %598, %597 : vector<8x128xf32>
    %600 = arith.divf %598, %599 : vector<8x128xf32>
    %601 = vector.extract_strided_slice %581 {offsets = [0, 256], sizes = [8, 128], strides = [1, 1]} : vector<8x384xf32> to vector<8x128xf32>
    %602 = vector.extract_strided_slice %584 {offsets = [0, 256], sizes = [8, 128], strides = [1, 1]} : vector<8x384xf32> to vector<8x128xf32>
    %603 = arith.addf %602, %7 : vector<8x128xf32>
    %604 = arith.mulf %592, %603 : vector<8x128xf32>
    %605 = arith.addf %601, %604 : vector<8x128xf32>
    %606 = math.tanh %605 : vector<8x128xf32>
    %cst_190 = arith.constant 1.000000e+00 : f32
    %607 = vector.broadcast %cst_190 : f32 to vector<8x128xf32>
    %608 = arith.subf %607, %600 : vector<8x128xf32>
    %609 = arith.mulf %608, %606 : vector<8x128xf32>
    %610 = arith.mulf %600, %582 : vector<8x128xf32>
    %611 = arith.addf %609, %610 : vector<8x128xf32>
    %c0_191 = arith.constant 0 : index
    %c0_192 = arith.constant 0 : index
    %612 = vector.load %arg10[%c0_191, %c0_192] : memref<8x128xf32, #tpu.memory_space<vmem>>, vector<8x128xf32>
    tpu.vector_store %arg10[%c0_191, %c0_192], %611 {strides = array<i32>} : memref<8x128xf32, #tpu.memory_space<vmem>>, vector<8x128xf32>,
    %613 = arith.truncf %611 : vector<8x128xf32> to vector<8x128xbf16>
    %614 = arith.index_cast %c7_i32_182 : i32 to index
    %c0_193 = arith.constant 0 : index
    %c0_194 = arith.constant 0 : index
    %615 = vector.load %arg8[%614, %c0_193, %c0_194] : memref<8x8x128xbf16, #tpu.memory_space<vmem>>, vector<1x8x128xbf16>
    %616 = vector.shape_cast %615 : vector<1x8x128xbf16> to vector<8x128xbf16>
    %617 = vector.shape_cast %613 : vector<8x128xbf16> to vector<1x8x128xbf16>
    tpu.vector_store %arg8[%614, %c0_193, %c0_194], %617 {strides = array<i32>} : memref<8x8x128xbf16, #tpu.memory_space<vmem>>, vector<1x8x128xbf16>,
    %c7_i32_195 = arith.constant 7 : i32
    %618 = arith.subi %c7_i32_195, %c7_i32_182 : i32
    %619 = arith.index_cast %618 : i32 to index
    %c0_196 = arith.constant 0 : index
    %c0_197 = arith.constant 0 : index
    %620 = vector.load %arg3[%619, %c0_196, %c0_197] : memref<8x8x384xbf16, #tpu.memory_space<vmem>>, vector<1x8x384xbf16>
    %621 = vector.shape_cast %620 : vector<1x8x384xbf16> to vector<8x384xbf16>
    %622 = arith.extf %621 : vector<8x384xbf16> to vector<8x384xf32>
    %c0_198 = arith.constant 0 : index
    %c0_199 = arith.constant 0 : index
    %623 = vector.load %arg11[%c0_198, %c0_199] : memref<8x128xf32, #tpu.memory_space<vmem>>, vector<8x128xf32>
    %624 = arith.truncf %623 : vector<8x128xf32> to vector<8x128xbf16>
    %cst_200 = arith.constant dense<0.000000e+00> : vector<8x384xf32>
    %625 = tpu.matmul %624, %4, %cst_200 {dimension_numbers = #tpu.dot_dimension_numbers<[1], [0], [0], [1], [0, 0, 1, 1], [], []>} : vector<8x128xbf16>, vector<128x384xbf16>, vector<8x384xf32> -> vector<8x384xf32>
    %626 = vector.extract_strided_slice %622 {offsets = [0, 0], sizes = [8, 128], strides = [1, 1]} : vector<8x384xf32> to vector<8x128xf32>
    %627 = vector.extract_strided_slice %625 {offsets = [0, 0], sizes = [8, 128], strides = [1, 1]} : vector<8x384xf32> to vector<8x128xf32>
    %628 = arith.addf %626, %627 : vector<8x128xf32>
    %629 = arith.negf %628 : vector<8x128xf32>
    %630 = math.exp %629 : vector<8x128xf32>
    %cst_201 = arith.constant 1.000000e+00 : f32
    %631 = vector.broadcast %cst_201 : f32 to vector<8x128xf32>
    %632 = arith.addf %631, %630 : vector<8x128xf32>
    %633 = arith.divf %631, %632 : vector<8x128xf32>
    %634 = vector.extract_strided_slice %622 {offsets = [0, 128], sizes = [8, 128], strides = [1, 1]} : vector<8x384xf32> to vector<8x128xf32>
    %635 = vector.extract_strided_slice %625 {offsets = [0, 128], sizes = [8, 128], strides = [1, 1]} : vector<8x384xf32> to vector<8x128xf32>
    %636 = arith.addf %634, %635 : vector<8x128xf32>
    %637 = arith.negf %636 : vector<8x128xf32>
    %638 = math.exp %637 : vector<8x128xf32>
    %cst_202 = arith.constant 1.000000e+00 : f32
    %639 = vector.broadcast %cst_202 : f32 to vector<8x128xf32>
    %640 = arith.addf %639, %638 : vector<8x128xf32>
    %641 = arith.divf %639, %640 : vector<8x128xf32>
    %642 = vector.extract_strided_slice %622 {offsets = [0, 256], sizes = [8, 128], strides = [1, 1]} : vector<8x384xf32> to vector<8x128xf32>
    %643 = vector.extract_strided_slice %625 {offsets = [0, 256], sizes = [8, 128], strides = [1, 1]} : vector<8x384xf32> to vector<8x128xf32>
    %644 = arith.addf %643, %10 : vector<8x128xf32>
    %645 = arith.mulf %633, %644 : vector<8x128xf32>
    %646 = arith.addf %642, %645 : vector<8x128xf32>
    %647 = math.tanh %646 : vector<8x128xf32>
    %cst_203 = arith.constant 1.000000e+00 : f32
    %648 = vector.broadcast %cst_203 : f32 to vector<8x128xf32>
    %649 = arith.subf %648, %641 : vector<8x128xf32>
    %650 = arith.mulf %649, %647 : vector<8x128xf32>
    %651 = arith.mulf %641, %623 : vector<8x128xf32>
    %652 = arith.addf %650, %651 : vector<8x128xf32>
    %c0_204 = arith.constant 0 : index
    %c0_205 = arith.constant 0 : index
    %653 = vector.load %arg11[%c0_204, %c0_205] : memref<8x128xf32, #tpu.memory_space<vmem>>, vector<8x128xf32>
    tpu.vector_store %arg11[%c0_204, %c0_205], %652 {strides = array<i32>} : memref<8x128xf32, #tpu.memory_space<vmem>>, vector<8x128xf32>,
    %654 = arith.truncf %652 : vector<8x128xf32> to vector<8x128xbf16>
    %655 = arith.index_cast %618 : i32 to index
    %c0_206 = arith.constant 0 : index
    %c0_207 = arith.constant 0 : index
    %656 = vector.load %arg9[%655, %c0_206, %c0_207] : memref<8x8x128xbf16, #tpu.memory_space<vmem>>, vector<1x8x128xbf16>
    %657 = vector.shape_cast %656 : vector<1x8x128xbf16> to vector<8x128xbf16>
    %658 = vector.shape_cast %654 : vector<8x128xbf16> to vector<1x8x128xbf16>
    tpu.vector_store %arg9[%655, %c0_206, %c0_207], %658 {strides = array<i32>} : memref<8x8x128xbf16, #tpu.memory_space<vmem>>, vector<1x8x128xbf16>,
    %c8_i32 = arith.constant 8 : i32
    return
  }
  func.func @transform_0(%arg0: i32, %arg1: i32) -> (i32, i32, i32) {
    %c0_i32 = arith.constant 0 : i32
    %c0_i32_0 = arith.constant 0 : i32
    return %arg1, %arg0, %c0_i32 : i32, i32, i32
  }
  func.func @transform_1(%arg0: i32, %arg1: i32) -> (i32, i32, i32) {
    %c0_i32 = arith.constant 0 : i32
    %0 = arith.subi %c0_i32, %arg1 : i32
    %c1_i32 = arith.constant 1 : i32
    %c0_i32_0 = arith.constant 0 : i32
    return %0, %arg0, %c1_i32 : i32, i32, i32
  }
  func.func @transform_2(%arg0: i32, %arg1: i32) -> (i32, i32) {
    %c0_i32 = arith.constant 0 : i32
    %c0_i32_0 = arith.constant 0 : i32
    %c0_i32_1 = arith.constant 0 : i32
    return %c0_i32, %c0_i32_0 : i32, i32
  }
  func.func @transform_3(%arg0: i32, %arg1: i32) -> (i32, i32) {
    %c0_i32 = arith.constant 0 : i32
    %c0_i32_0 = arith.constant 0 : i32
    %c0_i32_1 = arith.constant 0 : i32
    return %c0_i32, %c0_i32_0 : i32, i32
  }
  func.func @transform_4(%arg0: i32, %arg1: i32) -> (i32, i32) {
    %c0_i32 = arith.constant 0 : i32
    %c0_i32_0 = arith.constant 0 : i32
    %c0_i32_1 = arith.constant 0 : i32
    return %c0_i32, %c0_i32_0 : i32, i32
  }
  func.func @transform_5(%arg0: i32, %arg1: i32) -> (i32, i32) {
    %c0_i32 = arith.constant 0 : i32
    %c0_i32_0 = arith.constant 0 : i32
    %c0_i32_1 = arith.constant 0 : i32
    return %c0_i32, %c0_i32_0 : i32, i32
  }
  func.func @transform_6(%arg0: i32, %arg1: i32) -> (i32, i32, i32) {
    %c0_i32 = arith.constant 0 : i32
    %c0_i32_0 = arith.constant 0 : i32
    return %arg1, %arg0, %c0_i32 : i32, i32, i32
  }
  func.func @transform_7(%arg0: i32, %arg1: i32) -> (i32, i32, i32) {
    %c0_i32 = arith.constant 0 : i32
    %0 = arith.subi %c0_i32, %arg1 : i32
    %c0_i32_0 = arith.constant 0 : i32
    %c0_i32_1 = arith.constant 0 : i32
    return %0, %arg0, %c0_i32_0 : i32, i32, i32
  }
}

module attributes {stable_mosaic.version = 11 : i64} {
  func.func @_dual_matmul_bias_kernel(%arg0: i32, %arg1: i32, %arg2: memref<64x128xbf16, #tpu.memory_space<vmem>>, %arg3: memref<64x128xbf16, #tpu.memory_space<vmem>>, %arg4: memref<128x128xbf16, #tpu.memory_space<vmem>>, %arg5: memref<128x128xbf16, #tpu.memory_space<vmem>>, %arg6: memref<1x128xf32, #tpu.memory_space<vmem>>, %arg7: memref<64x128xf32, #tpu.memory_space<vmem>>) attributes {dimension_semantics = [#tpu.dimension_semantics<parallel>, #tpu.dimension_semantics<parallel>], iteration_bounds = array<i64: 1, 1>, scalar_prefetch = 0 : i64, scratch_operands = 0 : i64, tpu.core_type = #tpu.core_type<tc>, window_params = [{transform_indices = @transform_0, window_bounds = array<i64: 64, 128>}, {transform_indices = @transform_1, window_bounds = array<i64: 64, 128>}, {transform_indices = @transform_2, window_bounds = array<i64: 128, 128>}, {transform_indices = @transform_3, window_bounds = array<i64: 128, 128>}, {transform_indices = @transform_4, window_bounds = array<i64: 1, 128>}, {transform_indices = @transform_5, window_bounds = array<i64: 64, 128>}]} {
    %c0 = arith.constant 0 : index
    %c0_0 = arith.constant 0 : index
    %0 = vector.load %arg2[%c0, %c0_0] : memref<64x128xbf16, #tpu.memory_space<vmem>>, vector<64x128xbf16>
    %c0_1 = arith.constant 0 : index
    %c0_2 = arith.constant 0 : index
    %1 = vector.load %arg4[%c0_1, %c0_2] : memref<128x128xbf16, #tpu.memory_space<vmem>>, vector<128x128xbf16>
    %cst = arith.constant dense<0.000000e+00> : vector<64x128xf32>
    %2 = tpu.matmul %0, %1, %cst {dimension_numbers = #tpu.dot_dimension_numbers<[1], [0], [0], [1], [0, 0, 1, 1], [], []>} : vector<64x128xbf16>, vector<128x128xbf16>, vector<64x128xf32> -> vector<64x128xf32>
    %c0_3 = arith.constant 0 : index
    %c0_4 = arith.constant 0 : index
    %3 = vector.load %arg3[%c0_3, %c0_4] : memref<64x128xbf16, #tpu.memory_space<vmem>>, vector<64x128xbf16>
    %c0_5 = arith.constant 0 : index
    %c0_6 = arith.constant 0 : index
    %4 = vector.load %arg5[%c0_5, %c0_6] : memref<128x128xbf16, #tpu.memory_space<vmem>>, vector<128x128xbf16>
    %cst_7 = arith.constant dense<0.000000e+00> : vector<64x128xf32>
    %5 = tpu.matmul %3, %4, %cst_7 {dimension_numbers = #tpu.dot_dimension_numbers<[1], [0], [0], [1], [0, 0, 1, 1], [], []>} : vector<64x128xbf16>, vector<128x128xbf16>, vector<64x128xf32> -> vector<64x128xf32>
    %6 = arith.addf %2, %5 : vector<64x128xf32>
    %c0_8 = arith.constant 0 : index
    %c0_9 = arith.constant 0 : index
    %7 = vector.load %arg6[%c0_8, %c0_9] : memref<1x128xf32, #tpu.memory_space<vmem>>, vector<1x128xf32>
    %8 = vector.broadcast %7 : vector<1x128xf32> to vector<64x128xf32>
    %9 = arith.addf %6, %8 : vector<64x128xf32>
    %c0_10 = arith.constant 0 : index
    %c0_11 = arith.constant 0 : index
    %10 = vector.load %arg7[%c0_10, %c0_11] : memref<64x128xf32, #tpu.memory_space<vmem>>, vector<64x128xf32>
    tpu.vector_store %arg7[%c0_10, %c0_11], %9 {strides = array<i32>} : memref<64x128xf32, #tpu.memory_space<vmem>>, vector<64x128xf32>,
    return
  }
  func.func @transform_0(%arg0: i32, %arg1: i32) -> (i32, i32) {
    %c0_i32 = arith.constant 0 : i32
    %c0_i32_0 = arith.constant 0 : i32
    return %arg0, %c0_i32 : i32, i32
  }
  func.func @transform_1(%arg0: i32, %arg1: i32) -> (i32, i32) {
    %c0_i32 = arith.constant 0 : i32
    %c0_i32_0 = arith.constant 0 : i32
    return %arg0, %c0_i32 : i32, i32
  }
  func.func @transform_2(%arg0: i32, %arg1: i32) -> (i32, i32) {
    %c0_i32 = arith.constant 0 : i32
    %c0_i32_0 = arith.constant 0 : i32
    return %c0_i32, %arg1 : i32, i32
  }
  func.func @transform_3(%arg0: i32, %arg1: i32) -> (i32, i32) {
    %c0_i32 = arith.constant 0 : i32
    %c0_i32_0 = arith.constant 0 : i32
    return %c0_i32, %arg1 : i32, i32
  }
  func.func @transform_4(%arg0: i32, %arg1: i32) -> (i32, i32) {
    %c0_i32 = arith.constant 0 : i32
    %c0_i32_0 = arith.constant 0 : i32
    return %c0_i32, %arg1 : i32, i32
  }
  func.func @transform_5(%arg0: i32, %arg1: i32) -> (i32, i32) {
    %c0_i32 = arith.constant 0 : i32
    return %arg0, %arg1 : i32, i32
  }
}

</mosaic_0001>

<bundles_post_ra>
// kernel: two_lstm_forward.3
= control target key start
LH: loop header
LB: loop body
LE: loop exit
PB: predicated region body
PF: predicated region fallthrough
CT: control target
= control target key end

     0   :  { %s1357_s0 = inlined_call_operand.hbm [shape: bf16[64,128], index: 0, kind: input, shape index: {}]   ;;  %s1358_s1 = inlined_call_operand.hbm [shape: bf16[128,768], index: 1, kind: input, shape index: {}]   ;;  %s1359_s2 = inlined_call_operand.hbm [shape: f32[1,768], index: 2, kind: input, shape index: {}]   ;;  %s1360_s3 = inlined_call_operand.hbm [shape: bf16[64,768], index: 3, kind: output, shape index: {}]  }
   0x1   :  { %1369 = sst [smem:[#allocation13_spill]] %s1358_s1 }
   0x2   :  { %8 = vsyncpa [#allocation3], 0 }
   0x3   :  { %9 = vsyncpa [#allocation6], 0 }
   0x4   :  { %11 = vsyncpa [#allocation6 + $0x1], 0 }
   0x5   :  { %12 = vsyncpa [#allocation4], 0 }
   0x6   :  { %14 = vsyncpa [#allocation4 + $0x1], 0  ;;  %s1071_s12 = smov 0   ;;  %s1073_s13 = smov 0  }
   0x7   :  { %s1075_s14 = smov 0   ;;  %s1077_s15 = smov 0  }
   0x8   :  { %s1079_s16 = smov 0   ;;  %s1081_s17 = smov 0  }
   0x9 LB: > { %s29_s18 = sadd.s32 1, %s1032_s16  ;;  %s65_s19 = sadd.s32 1, %s1024_s14  ;;  %s1036_s17 = sphi %s1081_s17, %s20_s17   ;;  %s1032_s16 = sphi %s1079_s16, %s1392_s16   ;;  %s1028_s15 = sphi %s1077_s15, %s1391_s15   ;;  %s1024_s14 = sphi %s1075_s14, %s1390_s14   ;;  %s1020_s13 = sphi %s1073_s13, %s1389_s13   ;;  %s1016_s12 = sphi %s1071_s12, %s1388_s12  }
   0xa   : > { %p30_p0 = scmp.ge.s32.totalorder %s29_s18, 3  ;;  %p72_p1 = scmp.ne.s32.totalorder %s1024_s14, %s1020_s13 }
   0xb   : > { %p73_p2 = scmp.eq.s32.totalorder %s1036_s17, 0  ;;  %p773_p4 = scmp.lt.s32.totalorder %s1036_s17, 3 }
   0xc   : > { %s1394_s18 = smov (%p30_p0, %s29_s18), 0  ;;  %s172_s21 = sand.u32 1, %s1036_s17  }
   0xd   : > { %1370 = sst [smem:[#allocation12_spill]] %s1394_s18  ;;  %p74_p3 = por %p73_p2, %p72_p1 }
   0xe   : > { %s62_s20 = ssub.s32 %s1032_s16, %s1394_s18  ;;  %s174_s22 = sand.u32 1, %s1024_s14  }
   0xf   : > { %p63_p5 = scmp.eq.s32.totalorder %s62_s20, 0  ;;  %s720_s23 = sshll.u32 %s1032_s16, 7 }
  0x10   : > { %s676_s25 = sshll.u32 %s174_s22, 7  ;;  %s1371_s1 = sld [smem:[#allocation13_spill]] }
  0x11   : > { %s1118_s24 = scalar_select %p63_p5, %s1024_s14, %s65_s19  }
  0x12   : > { %p1127_p6 = pnand %p773_p4, %p74_p3  ;;  %s176_s30 = scalar_lea.vmem [#allocation5], %s676_s25 }
  0x13   : > { %s183_s4 = sshll.u32 %s176_s30, 4  ;;  %s1133_s5 = scalar_lea.sflag [#allocation6], %s172_s21  ;;  %s1131_s4 = int_to_ptr.vmem [resolvable:$true] %s183_s4 }
  0x14   : > { %s1372_s29 = scalar_select %p1127_p6, 1, 0 }
  0x15   : > { %p1363_p8 = pneg %p1127_p6 }
  0x16   : > { %s1125_s28 = scalar_lea.hbm %s1371_s1, %s720_s23  ;;  %s867_s9 = scalar_lea.hbm %s1371_s1, 6144 }
  0x17   : > { %s862_s6 = scalar_lea.hbm %s1125_s28, 2048  ;;  %p868_p11 = scmp.lt.u32.totalorder %s1125_s28, %s1371_s1 }
  0x18   : > { %p863_p7 = scmp.ne.s32.totalorder %s1125_s28, %s862_s6  ;;  %p869_p12 = scmp.lt.u32.totalorder %s867_s9, %s862_s6 }
  0x19   : > { %p871_p0 = scmp.lt.u32.totalorder %s862_s6, %s1125_s28 }
  0x1a   : > { %p865_p9 = pnand %p1363_p8, %p863_p7  ;;  %p870_p13 = por %p869_p12, %p868_p11 }
  0x1c   : > { %p866_p10 = pneg %p865_p9  ;;  %p872_p2 = por %p871_p0, %p870_p13 }
  0x1e   : > { %p873_p3 = pnand %p872_p2, %p866_p10 }
  0x20   : > { %876 = shalt.err (!%p873_p3)
}
  0x21   : > { %s877_s19 = scalar_lea.vmem %s1131_s4, 2048  ;;  %s1038_s20 = smov [#allocation5]  }
  0x22   : > { %p878_p4 = scmp.ne.s32.totalorder %s1131_s4, %s877_s19  ;;  %s882_s21 = sshll.u32 %s1038_s20, 4  ;;  %s883_s21 = int_to_ptr.vmem [resolvable:$false] %s882_s21 }
  0x23   : > { %s884_s23 = scalar_lea.vmem %s883_s21, 4096  ;;  %p885_p9 = scmp.lt.s32.totalorder %s1131_s4, %s883_s21 }
  0x24   : > { %p880_p5 = pnand %p878_p4, %p1363_p8  ;;  %p886_p11 = scmp.lt.s32.totalorder %s884_s23, %s877_s19 }
  0x26   : > { %p881_p7 = pneg %p880_p5  ;;  %p887_p12 = por %p886_p11, %p885_p9 }
  0x28   : > { %p888_p13 = pnand %p887_p12, %p881_p7 }
  0x2a   : > { %891 = shalt.err (!%p888_p13)
}
  0x2b   : > { %s1039_s25 = smov 384   ;;  %s1040_s26 = smov 128  }
  0x2c   : > { %s1041_s27 = smov 8   ;;  %s1162_s30 = sadd.s32 4294967295, %s1036_s17  }
  0x2d   : > { %764 = dma.hbm_to_vmem [thread:$0]  (!%p1127_p6), %s1125_s28, 2048, %s1131_s4, %s1133_s5, %s1039_s25, %s1040_s26, %s1041_s27  }
  0x2e   : > { %s672_s6 = sadd.s32 4294967294, %s1036_s17   ;;  %p78_p10 = scmp.ne.s32.totalorder %s1020_s13, %s1016_s12 }
  0x2f   : > { %p1362_p0 = scmp.eq.s32.totalorder %s1162_s30, 0  ;;  %p130_p2 = scmp.eq.s32.totalorder %s1162_s30, 2 }
  0x30   : > { %p136_p3 = scmp.eq.s32.totalorder %s672_s6, 2  ;;  %p673_p5 = scmp.ge.s32.totalorder %s1036_s17, 1 }
  0x31   : > { %p1171_p4 = por %p1362_p0, %p78_p10  ;;  %p1179_p7 = por %p130_p2, %p72_p1 }
  0x32   : > { %p1183_p9 = por %p136_p3, %p78_p10  ;;  %p143_p11 = scmp.lt.s32.totalorder %s1036_s17, 4 }
  0x33   : > { %s1373_s7 = scalar_select %p1171_p4, 1, 0 }
  0x34   : > { %s1374_s28 = scalar_select %p1179_p7, 1, 0 }
  0x35   : > { %s1375_s4 = scalar_select %p1183_p9, 1, 0 }
  0x36   : > { %p1188_p12 = pnand %p673_p5, %p143_p11  ;;  %s1042_s9 = smov [#allocation2]  }
  0x37   : > { %s158_s10 = sshll.u32 %s1042_s9, 4  ;;  %s679_s11 = sshll.u32 %s174_s22, 1  ;;  %s1192_s10 = int_to_ptr.vmem [resolvable:$true] %s158_s10 }
  0x38   : > { %s1376_s8 = scalar_select %p1188_p12, 1, 0 }
  0x39   : > { %p757_p13 = pneg %p1188_p12  ;;  %s721_s19 = sshll.u32 %s1032_s16, 5 }
  0x3a   : > { %s1208_s25 = scalar_lea.hbm %s1359_s2, %s721_s19  ;;  %s197_s26 = scalar_lea.vmem [#allocation7], %s679_s11 }
  0x3b   : > { %p1201_p1 = pnand %p757_p13, %p1362_p0  ;;  %s205_s27 = sshll.u32 %s197_s26, 4  ;;  %s1210_s27 = int_to_ptr.vmem [resolvable:$true] %s205_s27 }
  0x3c   : > { %s892_s22 = scalar_lea.hbm %s1357_s0, 512 }
  0x3d   : > { %p893_p10 = scmp.ne.s32.totalorder %s1357_s0, %s892_s22  ;;  %p894_p2 = pneg %p1201_p1 }
  0x3e   : > { %p899_p11 = scmp.lt.u32.totalorder %s892_s22, %s1357_s0 }
  0x3f   : > { %p895_p3 = pnand %p894_p2, %p893_p10 }
  0x41   : > { %p896_p5 = pneg %p895_p3 }
  0x43   : > { %p901_p13 = pnand %p899_p11, %p896_p5 }
  0x45   : > { %904 = shalt.err (!%p901_p13)
}
  0x46   : > { %s905_s11 = scalar_lea.vmem %s1192_s10, 512  ;;  %p913_p7 = scmp.lt.s32.totalorder %s1192_s10, %s1192_s10 }
  0x47   : > { %p906_p0 = scmp.ne.s32.totalorder %s1192_s10, %s905_s11  ;;  %p914_p4 = scmp.lt.s32.totalorder %s905_s11, %s905_s11 }
  0x49   : > { %p908_p8 = pnand %p906_p0, %p894_p2  ;;  %p915_p12 = por %p914_p4, %p913_p7 }
  0x4b   : > { %p909_p9 = pneg %p908_p8 }
  0x4d   : > { %p916_p6 = pnand %p915_p12, %p909_p9 }
  0x4f   : > { %919 = shalt.err (!%p916_p6)
}
  0x50   : > { %s1043_s1 = smov 64   ;;  %s1044_s18 = smov 4  }
  0x51   : > { %760 = dma.hbm_to_vmem [thread:$0]  (!%p1201_p1), %s1357_s0, 512, %s1192_s10, [#allocation3], %s1043_s1, %s1043_s1, %s1044_s18  }
  0x52   : > { %s920_s6 = scalar_lea.hbm %s1208_s25, 32  ;;  %p1378_p0 = scmp.ne.s32.totalorder %s1372_s29, 0 }
  0x53   : > { %p921_p8 = scmp.ne.s32.totalorder %s1208_s25, %s920_s6  ;;  %s925_s21 = scalar_lea.hbm %s1359_s2, 96 }
  0x54   : > { %p1379_p4 = pneg %p1378_p0  ;;  %p926_p9 = scmp.lt.u32.totalorder %s1208_s25, %s1359_s2 }
  0x55   : > { %p927_p12 = scmp.lt.u32.totalorder %s925_s21, %s920_s6  ;;  %p929_p2 = scmp.lt.u32.totalorder %s920_s6, %s1208_s25 }
  0x56   : > { %p923_p7 = pnand %p921_p8, %p1379_p4 }
  0x57   : > { %p928_p10 = por %p927_p12, %p926_p9 }
  0x58   : > { %p924_p6 = pneg %p923_p7 }
  0x59   : > { %p930_p3 = por %p929_p2, %p928_p10 }
  0x5b   : > { %p931_p5 = pnand %p930_p3, %p924_p6 }
  0x5d   : > { %934 = shalt.err (!%p931_p5)
}
  0x5e   : > { %s935_s10 = scalar_lea.vmem %s1210_s27, 32  ;;  %p1380_p11 = pmov %p1379_p4 }
  0x5f   : > { %p936_p1 = scmp.ne.s32.totalorder %s1210_s27, %s935_s10  ;;  %s1045_s20 = smov [#allocation7]  }
  0x60   : > { %s940_s1 = sshll.u32 %s1045_s20, 4  ;;  %s941_s1 = int_to_ptr.vmem [resolvable:$false] %s940_s1 }
  0x61   : > { %p938_p13 = pnand %p936_p1, %p1380_p11  ;;  %s942_s18 = scalar_lea.vmem %s941_s1, 64 }
  0x62   : > { %p943_p4 = scmp.lt.s32.totalorder %s1210_s27, %s941_s1  ;;  %p944_p7 = scmp.lt.s32.totalorder %s942_s18, %s935_s10 }
  0x63   : > { %p939_p8 = pneg %p938_p13 }
  0x64   : > { %p945_p9 = por %p944_p7, %p943_p4 }
  0x66   : > { %p946_p12 = pnand %p945_p9, %p939_p8 }
  0x68   : > { %949 = shalt.err (!%p946_p12)
}
  0x69   : > { %767 = dma.hbm_to_vmem [thread:$0]  (!%p1378_p0), %s1208_s25, 32, %s1210_s27, %s1133_s5  }
  0x6a   : > { %p1381_p6 = scmp.ne.s32.totalorder %s1376_s8, 0 }
  0x6b   : > { %p1382_p10 = scmp.eq.s32.totalorder (!%p1381_p6), %s1162_s30, 0 }
  0x6c   : > { %214 = sbr.rel (%p1381_p6) target bundleno = 398 (0x18e), region = 32 }
  0x73   : > { %1003 = dma.done.wait (%p1382_p10), [#allocation3], 512   ;;  %p1383_p2 = pmov %p1382_p10 }
  0x74   : > { %s220_s19 = sand.u32 1, %s1162_s30   ;;  %s1265_s26 = sand.u32 1, %s1020_s13  }
  0x75   : > { %1005 = vsyncadd (%p1383_p2), [#allocation3], 4294966784  ;;  %s684_s29 = sshll.u32 %s1265_s26, 7  ;;  %s221_s6 = scalar_lea.sflag [#allocation6], %s220_s19 }
  0x76   : > { %s1268_s9 = scalar_lea.vmem [#allocation5], %s684_s29  ;;  %p1384_p0 = scmp.ne.s32.totalorder %s1373_s7, 0 }
  0x78   : > { %1007 = dma.done.wait (%p1384_p0), %s221_s6, 2080  }
  0x79   : > { %1009 = vsyncadd (%p1384_p0), %s221_s6, 4294965216  ;;  %v1046_v0 = vmov 0   ;;  %v834_v1 = vld [vmem:[%s1268_s9 + $0x4] ss:$8 sps:$4 sm:$0xff]   ;;  %v836_v2 = vld [vmem:[%s1268_s9] ss:$8 sps:$4 sm:$0xff]   ;;  %v293_v21 = vlaneseq }
  0x7a   : > { %439 = vmatprep.mubr.bf16.mxu0 %v1046_v0  ;;  %459 = vmatprep.mubr.bf16.mxu1 %v1046_v0  ;;  %v837_v3 = vld [vmem:[%s1268_s9 + $0x14] ss:$8 sps:$4 sm:$0xff]   ;;  %v839_v4 = vld [vmem:[%s1268_s9 + $0x10] ss:$8 sps:$4 sm:$0xff]   ;;  %v840_v5 = vld [vmem:[%s1268_s9 + $0x24] ss:$8 sps:$4 sm:$0xff]  }
  0x7b   : > { %407 = vmatprep.subr.bf16.mxu0 %v834_v1  ;;  %731 = vmatprep.subr.bf16.mxu1 %v834_v1  ;;  %v842_v6 = vld [vmem:[%s1268_s9 + $0x20] ss:$8 sps:$4 sm:$0xff]   ;;  %v843_v7 = vld [vmem:[%s1268_s9 + $0x34] ss:$8 sps:$4 sm:$0xff]   ;;  %v845_v8 = vld [vmem:[%s1268_s9 + $0x30] ss:$8 sps:$4 sm:$0xff]  }
  0x7c   : > { %408 = vmatpush1.bf16.msra.mxu0 %v836_v2  ;;  %739 = vmatpush1.bf16.msra.mxu1 %v836_v2  ;;  %v846_v9 = vld [vmem:[%s1268_s9 + $0x44] ss:$8 sps:$4 sm:$0xff]   ;;  %v848_v10 = vld [vmem:[%s1268_s9 + $0x40] ss:$8 sps:$4 sm:$0xff]   ;;  %v849_v11 = vld [vmem:[%s1268_s9 + $0x54] ss:$8 sps:$4 sm:$0xff]  }
  0x7d   : > { %409 = vmatprep.subr.bf16.mxu0 %v837_v3  ;;  %732 = vmatprep.subr.bf16.mxu1 %v837_v3  ;;  %v851_v12 = vld [vmem:[%s1268_s9 + $0x50] ss:$8 sps:$4 sm:$0xff]   ;;  %v852_v13 = vld [vmem:[%s1268_s9 + $0x64] ss:$8 sps:$4 sm:$0xff]   ;;  %v854_v14 = vld [vmem:[%s1268_s9 + $0x60] ss:$8 sps:$4 sm:$0xff]  }
  0x7e   : > { %v855_v15 = vld [vmem:[%s1268_s9 + $0x74] ss:$8 sps:$4 sm:$0xff]   ;;  %v857_v16 = vld [vmem:[%s1268_s9 + $0x70] ss:$8 sps:$4 sm:$0xff]   ;;  %v858_v17 = vld [vmem:[#allocation2] sm:$0xff]   ;;  %s685_s5 = sshll.u32 %s1265_s26, 1 }
  0x7f   : > { %v859_v18 = vld [vmem:[#allocation2 + $0x10] sm:$0xff]   ;;  %v860_v19 = vld [vmem:[#allocation2 + $0x8] sm:$0xff]   ;;  %v861_v20 = vld [vmem:[#allocation2 + $0x18] sm:$0xff]   ;;  %v294_v22 = vshrl.u32 %v293_v21, 7  ;;  %s233_s30 = scalar_lea.vmem [#allocation7], %s685_s5  ;;  %s686_s7 = sshll.u32 %s1265_s26, 6 }
  0x80   : > { %410 = vmatpush1.bf16.msra.mxu0 %v839_v4  ;;  %740 = vmatpush1.bf16.msra.mxu1 %v839_v4  ;;  %v291_v24 = vld [vmem:[%s233_s30] sm:$0x3]  ;;  %s1292_s8 = scalar_lea.vmem [#allocation8], %s686_s7  ;;  %s730_s27 = sshll.u32 %s1028_s15, 7 }
  0x81   : > { %411 = vmatprep.subr.bf16.mxu0 %v840_v5  ;;  %733 = vmatprep.subr.bf16.mxu1 %v840_v5  ;;  %v295_v23 = vsub.s32 0, %v294_v22  ;;  %v299_v25 = vsub.s32 1, %v294_v22  ;;  %s553_s25 = sshll.u32 %s1292_s8, 4  ;;  %s1305_s23 = scalar_lea.hbm %s1360_s3, %s730_s27  ;;  %s1300_s25 = int_to_ptr.vmem [resolvable:$true] %s553_s25 }
  0x82   : > { %s537_s15 = scalar_lea.sflag [#allocation4], %s1265_s26  ;;  %s950_s11 = scalar_lea.vmem %s1300_s25, 1024 }
  0x83   : > { %v296_v26 = vrot.slane %v291_v24, %v295_v23  ;;  %v300_v27 = vrot.slane %v291_v24, %v299_v25  ;;  %p951_p3 = scmp.ne.s32.totalorder %s1300_s25, %s950_s11  ;;  %p1385_p5 = scmp.ne.s32.totalorder %s1374_s28, 0 }
  0x84   : > { %412 = vmatpush1.bf16.msra.mxu0 %v842_v6  ;;  %741 = vmatpush1.bf16.msra.mxu1 %v842_v6  ;;  %s1047_s10 = smov [#allocation8]  }
  0x85   : > { %413 = vmatprep.subr.bf16.mxu0 %v843_v7  ;;  %734 = vmatprep.subr.bf16.mxu1 %v843_v7  ;;  %p952_p1 = pnand %p951_p3, %p1385_p5  ;;  %s954_s20 = sshll.u32 %s1047_s10, 4  ;;  %s955_s20 = int_to_ptr.vmem [resolvable:$false] %s954_s20 }
  0x86   : > { %s956_s1 = scalar_lea.vmem %s955_s20, 2048  ;;  %p957_p13 = scmp.lt.s32.totalorder %s1300_s25, %s955_s20 }
  0x87   : > { %p953_p11 = pneg %p952_p1  ;;  %p958_p8 = scmp.lt.s32.totalorder %s956_s1, %s950_s11 }
  0x88   : > { %414 = vmatpush1.bf16.msra.mxu0 %v845_v8  ;;  %742 = vmatpush1.bf16.msra.mxu1 %v845_v8 }
  0x89   : > { %415 = vmatprep.subr.bf16.mxu0 %v846_v9  ;;  %735 = vmatprep.subr.bf16.mxu1 %v846_v9  ;;  %p959_p4 = por %p958_p8, %p957_p13 }
  0x8b   : > { %p960_p7 = pnand %p959_p4, %p953_p11 }
  0x8c   : > { %416 = vmatpush1.bf16.msra.mxu0 %v848_v10  ;;  %743 = vmatpush1.bf16.msra.mxu1 %v848_v10 }
  0x8d   : > { %417 = vmatprep.subr.bf16.mxu0 %v849_v11  ;;  %736 = vmatprep.subr.bf16.mxu1 %v849_v11 }
  0x90   : > { %418 = vmatpush1.bf16.msra.mxu0 %v851_v12  ;;  %744 = vmatpush1.bf16.msra.mxu1 %v851_v12 }
  0x91   : > { %419 = vmatprep.subr.bf16.mxu0 %v852_v13  ;;  %737 = vmatprep.subr.bf16.mxu1 %v852_v13 }
  0x94   : > { %420 = vmatpush1.bf16.msra.mxu0 %v854_v14  ;;  %745 = vmatpush1.bf16.msra.mxu1 %v854_v14 }
  0x95   : > { %421 = vmatprep.subr.bf16.mxu0 %v855_v15  ;;  %738 = vmatprep.subr.bf16.mxu1 %v855_v15 }
  0x98   : > { %422 = vmatpush1.bf16.msra.mxu0 %v857_v16  ;;  %746 = vmatpush1.bf16.msra.mxu1 %v857_v16 }
  0x9b   : > { %440 = vmatmul.mubr.bf16.vlgmr.msra.gmra.mrb[0].mxu0 %v858_v17  ;;  %460 = vmatmul.mubr.bf16.vlgmr.msra.gmra.mrb[0].mxu1 %v859_v18 }
  0x9c   : > { %449 = vmatprep.mubr.bf16.mxu0 %v1046_v0  ;;  %469 = vmatprep.mubr.bf16.mxu1 %v1046_v0 }
  0xa3   : > { %450 = vmatmul.mubr.bf16.gmra.mrb[4].mxu0 %v860_v19  ;;  %470 = vmatmul.mubr.bf16.gmra.mrb[4].mxu1 %v861_v20 }
 0x16e   : > { %v441_v28 = vpop.f32.mrb[0].mxu0  ;;  %v461_v29 = vpop.f32.mrb[0].mxu1 }
 0x16f   : > { %v442_v30 = vadd.f32 %v441_v28, %v296_v26  ;;  %v462_v31 = vadd.f32 %v461_v29, %v296_v26  ;;  %v443_v32 = vpop.f32.mrb[1].mxu0  ;;  %v463_v33 = vpop.f32.mrb[1].mxu1 }
 0x170   : > { %v444_v34 = vadd.f32 %v443_v32, %v300_v27  ;;  %v464_v35 = vadd.f32 %v463_v33, %v300_v27  ;;  %v445_v36 = vpop.f32.mrb[2].mxu0  ;;  %v465_v37 = vpop.f32.mrb[2].mxu1 }
 0x171   : > { %v446_v38 = vadd.f32 %v445_v36, %v296_v26  ;;  %v466_v39 = vadd.f32 %v465_v37, %v296_v26  ;;  %v447_v40 = vpop.f32.mrb[3].mxu0  ;;  %v467_v41 = vpop.f32.mrb[3].mxu1 }
 0x172   : > { %v722_v42 = vpack.c.bf16 %v444_v34, %v442_v30  ;;  %v726_v43 = vpack.c.bf16 %v464_v35, %v462_v31  ;;  %v448_v44 = vadd.f32 %v447_v40, %v300_v27  ;;  %v468_v45 = vadd.f32 %v467_v41, %v300_v27 }
 0x174   : > { %528 = vst [vmem:[%s1292_s8] sm:$0xff] %v722_v42  ;;  %532 = vst [vmem:[%s1292_s8 + $0x20] sm:$0xff] %v726_v43  ;;  %v723_v46 = vpack.c.bf16 %v448_v44, %v446_v38  ;;  %v727_v47 = vpack.c.bf16 %v468_v45, %v466_v39 }
 0x176   : > { %529 = vst [vmem:[%s1292_s8 + $0x8] sm:$0xff] %v723_v46  ;;  %533 = vst [vmem:[%s1292_s8 + $0x28] sm:$0xff] %v727_v47  ;;  %v451_v48 = vpop.f32.mrb[4].mxu0  ;;  %v471_v49 = vpop.f32.mrb[4].mxu1 }
 0x177   : > { %v452_v50 = vadd.f32 %v451_v48, %v296_v26  ;;  %v472_v51 = vadd.f32 %v471_v49, %v296_v26  ;;  %v453_v52 = vpop.f32.mrb[5].mxu0  ;;  %v473_v53 = vpop.f32.mrb[5].mxu1 }
 0x178   : > { %v454_v54 = vadd.f32 %v453_v52, %v300_v27  ;;  %v474_v55 = vadd.f32 %v473_v53, %v300_v27  ;;  %v455_v56 = vpop.f32.mrb[6].mxu0  ;;  %v475_v57 = vpop.f32.mrb[6].mxu1 }
 0x179   : > { %v456_v58 = vadd.f32 %v455_v56, %v296_v26  ;;  %v476_v59 = vadd.f32 %v475_v57, %v296_v26  ;;  %v457_v60 = vpop.f32.mrb[7].mxu0  ;;  %v477_v61 = vpop.f32.mrb[7].mxu1 }
 0x17a   : > { %v724_v62 = vpack.c.bf16 %v454_v54, %v452_v50  ;;  %v728_v63 = vpack.c.bf16 %v474_v55, %v472_v51  ;;  %v458_v0 = vadd.f32 %v457_v60, %v300_v27  ;;  %v478_v1 = vadd.f32 %v477_v61, %v300_v27 }
 0x17c   : > { %530 = vst [vmem:[%s1292_s8 + $0x10] sm:$0xff] %v724_v62  ;;  %534 = vst [vmem:[%s1292_s8 + $0x30] sm:$0xff] %v728_v63  ;;  %v725_v2 = vpack.c.bf16 %v458_v0, %v456_v58  ;;  %v729_v3 = vpack.c.bf16 %v478_v1, %v476_v59 }
 0x17e   : > { %531 = vst [vmem:[%s1292_s8 + $0x18] sm:$0xff] %v725_v2  ;;  %535 = vst [vmem:[%s1292_s8 + $0x38] sm:$0xff] %v729_v3 }
 0x17f   : > { %963 = shalt.err (!%p960_p7)
}
 0x180   : > { %s964_s18 = scalar_lea.hbm %s1305_s23, 1024  ;;  %s968_s6 = scalar_lea.hbm %s1360_s3, 3072 }
 0x181   : > { %p965_p9 = scmp.ne.s32.totalorder %s1305_s23, %s964_s18  ;;  %p969_p10 = scmp.lt.u32.totalorder %s1305_s23, %s1360_s3 }
 0x182   : > { %p970_p2 = scmp.lt.u32.totalorder %s968_s6, %s964_s18  ;;  %p972_p3 = scmp.lt.u32.totalorder %s964_s18, %s1305_s23 }
 0x183   : > { %p966_p12 = pnand %p965_p9, %p1385_p5 }
 0x184   : > { %p971_p0 = por %p970_p2, %p969_p10 }
 0x185   : > { %p967_p6 = pneg %p966_p12 }
 0x186   : > { %p973_p1 = por %p972_p3, %p971_p0 }
 0x188   : > { %p974_p11 = pnand %p973_p1, %p967_p6 }
 0x18a   : > { %977 = shalt.err (!%p974_p11)
}
 0x18b   : > { %s1048_s30 = smov 128   ;;  %s1049_s7 = smov 384  }
 0x18c   : > { %s1050_s8 = smov 8  }
 0x18d   : > { %755 = dma.vmem_to_hbm [thread:$0]  (%p1385_p5), %s1300_s25, 1024, %s1305_s23, %s537_s15, %s1048_s30, %s1049_s7, %s1050_s8  }
 0x18e PF: > { %p775_p13 = scmp.ge.s32.totalorder %s1036_s17, 2  ;;  %s568_s27 = sand.u32 1, %s1016_s12  }
 0x18f   : > { %p1386_p8 = scmp.ne.s32.totalorder %s1375_s4, 0  ;;  %s569_s22 = scalar_lea.sflag [#allocation4], %s568_s27 }
 0x191   : > { %p769_p4 = pnand %p775_p13, %p1386_p8 }
 0x193   : > { %1011 = dma.done.wait (!%p769_p4), %s569_s22, 1024  }
 0x194   : > { %1013 = vsyncadd (!%p769_p4), %s569_s22, 4294966272  ;;  %s20_s17 = sadd.s32 1, %s1036_s17   ;;  %s1387_s28 = sld [smem:[#allocation12_spill]] }
 0x195   : > { %p17_p7 = scmp.ge.s32.totalorder %s20_s17, 5   ;;  %s1388_s12 = smov %s1020_s13 }
 0x196   : > { %s1389_s13 = smov %s1024_s14  ;;  %s1390_s14 = smov %s1118_s24 }
 0x197   : > { %s1391_s15 = smov %s1032_s16  ;;  %19 = sbr.rel (!%p17_p7) target bundleno = 9 (0x9), region = 94 }
 0x19a   : > { %s1392_s16 = smov %s1387_s28 }
 0x19e   :  { %574 = vsyncpa [#allocation3], 1 }
 0x19f   :  { %576 = vsyncpa [#allocation3 + $0x1], 1 }
 0x1a0   :  { %577 = vsyncpa [#allocation6], 1 }
 0x1a1   :  { %579 = vsyncpa [#allocation6 + $0x1], 1 }
 0x1a2   :  { %580 = vsyncpa [#allocation4], 1 }
 0x1a3   :  { %582 = vsyncpa [#allocation4 + $0x1], 1 }

// kernel: two_lstm_forward.5
= control target key start
LH: loop header
LB: loop body
LE: loop exit
PB: predicated region body
PF: predicated region fallthrough
CT: control target
= control target key end

     0   :  { %10 = vsyncpa [#allocation3], 0  ;;  %s869_s0 = inlined_call_operand.hbm [shape: bf16[64,128], index: 0, kind: input, shape index: {}]   ;;  %s870_s1 = inlined_call_operand.hbm [shape: bf16[64,128], index: 1, kind: input, shape index: {}]   ;;  %s871_s2 = inlined_call_operand.hbm [shape: bf16[128,128], index: 2, kind: input, shape index: {}]   ;;  %s872_s3 = inlined_call_operand.hbm [shape: bf16[128,128], index: 3, kind: input, shape index: {}]   ;;  %s873_s4 = inlined_call_operand.hbm [shape: f32[1,128], index: 4, kind: input, shape index: {}]   ;;  %s874_s5 = inlined_call_operand.hbm [shape: f32[64,128], index: 5, kind: output, shape index: {}]  }
   0x1   :  { %11 = vsyncpa [#allocation6], 0 }
   0x2   :  { %12 = vsyncpa [#allocation9], 0 }
   0x3   :  { %13 = vsyncpa [#allocation4], 0  ;;  %s731_s18 = smov [#allocation5]   ;;  %s732_s20 = smov [#allocation8]  }
   0x4   :  { %s31_s19 = sshll.u32 %s731_s18, 4  ;;  %s55_s21 = sshll.u32 %s732_s20, 4  ;;  %s32_s19 = int_to_ptr.vmem [resolvable:$true] %s31_s19  ;;  %s771_s21 = int_to_ptr.vmem [resolvable:$true] %s55_s21 }
   0x5   :  { %s591_s24 = scalar_lea.hbm %s870_s1, 512 }
   0x6   :  { %p592_p0 = scmp.ne.s32.totalorder %s870_s1, %s591_s24  ;;  %p595_p1 = scmp.lt.u32.totalorder %s591_s24, %s870_s1 }
   0x8   :  { %p597_p2 = pnand %p595_p1, %p592_p0 }
   0xa   :  { %600 = shalt.err (!%p597_p2)
}
   0xb   :  { %s601_s29 = scalar_lea.vmem %s32_s19, 512  ;;  %p606_p4 = scmp.lt.s32.totalorder %s32_s19, %s32_s19 }
   0xc   :  { %p602_p3 = scmp.ne.s32.totalorder %s32_s19, %s601_s29  ;;  %p607_p5 = scmp.lt.s32.totalorder %s601_s29, %s601_s29 }
   0xe   :  { %p608_p6 = por %p607_p5, %p606_p4 }
  0x10   :  { %p609_p7 = pnand %p608_p6, %p602_p3 }
  0x12   :  { %612 = shalt.err (!%p609_p7)
}
  0x13   :  { %s733_s30 = smov 64   ;;  %s734_s6 = smov 4  }
  0x14   :  { %37 = dma.hbm_to_vmem [thread:$0]  %s870_s1, 512, %s32_s19, [#allocation6], %s733_s30, %s733_s30, %s734_s6  }
  0x15   :  { %s613_s11 = scalar_lea.hbm %s872_s3, 1024 }
  0x16   :  { %p614_p8 = scmp.ne.s32.totalorder %s872_s3, %s613_s11  ;;  %p617_p9 = scmp.lt.u32.totalorder %s613_s11, %s872_s3 }
  0x18   :  { %p619_p10 = pnand %p617_p9, %p614_p8 }
  0x1a   :  { %622 = shalt.err (!%p619_p10)
}
  0x1b   :  { %s623_s16 = scalar_lea.vmem %s771_s21, 1024  ;;  %p628_p12 = scmp.lt.s32.totalorder %s771_s21, %s771_s21 }
  0x1c   :  { %p624_p11 = scmp.ne.s32.totalorder %s771_s21, %s623_s16  ;;  %p629_p13 = scmp.lt.s32.totalorder %s623_s16, %s623_s16 }
  0x1e   :  { %p630_p0 = por %p629_p13, %p628_p12 }
  0x20   :  { %p631_p1 = pnand %p630_p0, %p624_p11 }
  0x22   :  { %634 = shalt.err (!%p631_p1)
}
  0x23   :  { %61 = dma.hbm_to_vmem [thread:$0]  %s872_s3, 1024, %s771_s21, [#allocation9], %s733_s30, %s733_s30, %s734_s6  }
  0x24   :  { %s735_s18 = smov [#allocation2]   ;;  %s736_s20 = smov [#allocation7]  }
  0x25   :  { %s19_s19 = sshll.u32 %s735_s18, 4  ;;  %s43_s22 = sshll.u32 %s736_s20, 4  ;;  %s20_s19 = int_to_ptr.vmem [resolvable:$true] %s19_s19  ;;  %s808_s22 = int_to_ptr.vmem [resolvable:$true] %s43_s22 }
  0x26   :  { %s635_s25 = scalar_lea.hbm %s869_s0, 512 }
  0x27   :  { %p636_p2 = scmp.ne.s32.totalorder %s869_s0, %s635_s25  ;;  %p639_p3 = scmp.lt.u32.totalorder %s635_s25, %s869_s0 }
  0x29   :  { %p641_p4 = pnand %p639_p3, %p636_p2 }
  0x2b   :  { %644 = shalt.err (!%p641_p4)
}
  0x2c   :  { %s645_s3 = scalar_lea.vmem %s20_s19, 512  ;;  %p650_p6 = scmp.lt.s32.totalorder %s20_s19, %s20_s19 }
  0x2d   :  { %p646_p5 = scmp.ne.s32.totalorder %s20_s19, %s645_s3  ;;  %p651_p7 = scmp.lt.s32.totalorder %s645_s3, %s645_s3 }
  0x2f   :  { %p652_p8 = por %p651_p7, %p650_p6 }
  0x31   :  { %p653_p9 = pnand %p652_p8, %p646_p5 }
  0x33   :  { %656 = shalt.err (!%p653_p9)
}
  0x34   :  { %25 = dma.hbm_to_vmem [thread:$0]  %s869_s0, 512, %s20_s19, [#allocation3], %s733_s30, %s733_s30, %s734_s6  }
  0x35   :  { %s657_s10 = scalar_lea.hbm %s871_s2, 1024 }
  0x36   :  { %p658_p10 = scmp.ne.s32.totalorder %s871_s2, %s657_s10  ;;  %p661_p11 = scmp.lt.u32.totalorder %s657_s10, %s871_s2 }
  0x38   :  { %p663_p12 = pnand %p661_p11, %p658_p10 }
  0x3a   :  { %666 = shalt.err (!%p663_p12)
}
  0x3b   :  { %s667_s15 = scalar_lea.vmem %s808_s22, 1024  ;;  %p672_p0 = scmp.lt.s32.totalorder %s808_s22, %s808_s22 }
  0x3c   :  { %p668_p13 = scmp.ne.s32.totalorder %s808_s22, %s667_s15  ;;  %p673_p1 = scmp.lt.s32.totalorder %s667_s15, %s667_s15 }
  0x3e   :  { %p674_p2 = por %p673_p1, %p672_p0 }
  0x40   :  { %p675_p3 = pnand %p674_p2, %p668_p13 }
  0x42   :  { %678 = shalt.err (!%p675_p3)
}
  0x43   :  { %49 = dma.hbm_to_vmem [thread:$0]  %s871_s2, 1024, %s808_s22, [#allocation6], %s733_s30, %s733_s30, %s734_s6  }
  0x44   :  { %s737_s1 = smov [#allocation10]   ;;  %s679_s20 = scalar_lea.hbm %s873_s4, 16 }
  0x45   :  { %s68_s17 = sshll.u32 %s737_s1, 4  ;;  %p680_p4 = scmp.ne.s32.totalorder %s873_s4, %s679_s20  ;;  %s69_s17 = int_to_ptr.vmem [resolvable:$true] %s68_s17 }
  0x46   :  { %p683_p5 = scmp.lt.u32.totalorder %s679_s20, %s873_s4 }
  0x48   :  { %p685_p6 = pnand %p683_p5, %p680_p4 }
  0x4a   :  { %688 = shalt.err (!%p685_p6)
}
  0x4b   :  { %s689_s27 = scalar_lea.vmem %s69_s17, 16  ;;  %s693_s2 = scalar_lea.vmem %s69_s17, 32 }
  0x4c   :  { %p690_p7 = scmp.ne.s32.totalorder %s69_s17, %s689_s27  ;;  %p694_p8 = scmp.lt.s32.totalorder %s69_s17, %s69_s17 }
  0x4d   :  { %p695_p9 = scmp.lt.s32.totalorder %s693_s2, %s689_s27 }
  0x4f   :  { %p696_p10 = por %p695_p9, %p694_p8 }
  0x51   :  { %p697_p11 = pnand %p696_p10, %p690_p7 }
  0x53   :  { %700 = shalt.err (!%p697_p11)
}
  0x54   :  { %71 = dma.hbm_to_vmem [thread:$0]  %s873_s4, 16, %s69_s17, [#allocation9]  }
  0x55   :  { %723 = dma.done.wait [#allocation3], 512  }
  0x56   :  { %724 = vsyncadd [#allocation3], 4294966784 }
  0x57   :  { %725 = dma.done.wait [#allocation6], 1536  }
  0x58   :  { %726 = vsyncadd [#allocation6], 4294965760 }
  0x59   :  { %727 = dma.done.wait [#allocation9], 1040  }
  0x5a   :  { %728 = vsyncadd [#allocation9], 4294966256  ;;  %v567_v0 = vld [vmem:[#allocation8] sm:$0xff]   ;;  %v569_v2 = vld [vmem:[#allocation8 + $0x8] sm:$0xff]   ;;  %s738_s4 = smov [#allocation11]  }
  0x5b   :  { %v568_v1 = vld [vmem:[#allocation7] sm:$0xff]   ;;  %501 = vmatprep.subr.bf16.mxu1 %v567_v0  ;;  %v570_v3 = vld [vmem:[#allocation7 + $0x8] sm:$0xff]   ;;  %v571_v4 = vld [vmem:[#allocation8 + $0x10] sm:$0xff]   ;;  %s438_s22 = sshll.u32 %s738_s4, 4  ;;  %s439_s22 = int_to_ptr.vmem [resolvable:$true] %s438_s22 }
  0x5c   :  { %525 = vmatprep.subr.bf16.mxu0 %v568_v1  ;;  %502 = vmatpush3.bf16.msra.mxu1 %v567_v0  ;;  %v572_v5 = vld [vmem:[#allocation7 + $0x10] sm:$0xff]   ;;  %v573_v6 = vld [vmem:[#allocation8 + $0x18] sm:$0xff]   ;;  %v575_v8 = vld [vmem:[#allocation8 + $0x20] sm:$0xff]   ;;  %s701_s28 = scalar_lea.vmem %s439_s22, 1024  ;;  %p706_p13 = scmp.lt.s32.totalorder %s439_s22, %s439_s22 }
  0x5d   :  { %526 = vmatpush3.bf16.msra.mxu0 %v568_v1  ;;  %503 = vmatprep.subr.bf16.mxu1 %v569_v2  ;;  %v574_v7 = vld [vmem:[#allocation7 + $0x18] sm:$0xff]   ;;  %v576_v9 = vld [vmem:[#allocation7 + $0x20] sm:$0xff]   ;;  %v577_v10 = vld [vmem:[#allocation8 + $0x28] sm:$0xff]   ;;  %p702_p12 = scmp.ne.s32.totalorder %s439_s22, %s701_s28  ;;  %p707_p0 = scmp.lt.s32.totalorder %s701_s28, %s701_s28 }
  0x5e   :  { %527 = vmatprep.subr.bf16.mxu0 %v570_v3  ;;  %v578_v11 = vld [vmem:[#allocation7 + $0x28] sm:$0xff]   ;;  %v583_v12 = vld [vmem:[#allocation5] sm:$0xff]   ;;  %v579_v14 = vld [vmem:[#allocation8 + $0x30] sm:$0xff]  }
  0x5f   :  { %v584_v13 = vld [vmem:[#allocation2] sm:$0xff]   ;;  %517 = vmatprep.mubr.bf16.mxu1 %v583_v12  ;;  %v580_v15 = vld [vmem:[#allocation7 + $0x30] sm:$0xff]   ;;  %v581_v16 = vld [vmem:[#allocation8 + $0x38] sm:$0xff]   ;;  %p708_p1 = por %p707_p0, %p706_p13 }
  0x60   :  { %504 = vmatpush3.bf16.msra.mxu1 %v569_v2  ;;  %541 = vmatprep.mubr.bf16.mxu0 %v584_v13  ;;  %v582_v17 = vld [vmem:[#allocation7 + $0x38] sm:$0xff]   ;;  %v585_v18 = vld [vmem:[#allocation5 + $0x8] sm:$0xff]   ;;  %v587_v20 = vld [vmem:[#allocation5 + $0x10] sm:$0xff]  }
  0x61   :  { %528 = vmatpush3.bf16.msra.mxu0 %v570_v3  ;;  %505 = vmatprep.subr.bf16.mxu1 %v571_v4  ;;  %v586_v19 = vld [vmem:[#allocation2 + $0x8] sm:$0xff]   ;;  %v588_v21 = vld [vmem:[#allocation2 + $0x10] sm:$0xff]   ;;  %v589_v22 = vld [vmem:[#allocation5 + $0x18] sm:$0xff]   ;;  %p709_p2 = pnand %p708_p1, %p702_p12 }
  0x62   :  { %529 = vmatprep.subr.bf16.mxu0 %v572_v5  ;;  %v590_v23 = vld [vmem:[#allocation2 + $0x18] sm:$0xff]   ;;  %v476_v26 = vld [vmem:[#allocation10] ss:$0 sm:$0xff] }
  0x64   :  { %506 = vmatpush3.bf16.msra.mxu1 %v571_v4 }
  0x65   :  { %530 = vmatpush3.bf16.msra.mxu0 %v572_v5  ;;  %507 = vmatprep.subr.bf16.mxu1 %v573_v6 }
  0x66   :  { %531 = vmatprep.subr.bf16.mxu0 %v574_v7 }
  0x68   :  { %508 = vmatpush3.bf16.msra.mxu1 %v573_v6 }
  0x69   :  { %532 = vmatpush3.bf16.msra.mxu0 %v574_v7  ;;  %509 = vmatprep.subr.bf16.mxu1 %v575_v8 }
  0x6a   :  { %533 = vmatprep.subr.bf16.mxu0 %v576_v9 }
  0x6c   :  { %510 = vmatpush3.bf16.msra.mxu1 %v575_v8 }
  0x6d   :  { %534 = vmatpush3.bf16.msra.mxu0 %v576_v9  ;;  %511 = vmatprep.subr.bf16.mxu1 %v577_v10 }
  0x6e   :  { %535 = vmatprep.subr.bf16.mxu0 %v578_v11 }
  0x70   :  { %512 = vmatpush3.bf16.msra.mxu1 %v577_v10 }
  0x71   :  { %536 = vmatpush3.bf16.msra.mxu0 %v578_v11  ;;  %513 = vmatprep.subr.bf16.mxu1 %v579_v14 }
  0x72   :  { %537 = vmatprep.subr.bf16.mxu0 %v580_v15 }
  0x74   :  { %514 = vmatpush3.bf16.msra.mxu1 %v579_v14 }
  0x75   :  { %538 = vmatpush3.bf16.msra.mxu0 %v580_v15  ;;  %515 = vmatprep.subr.bf16.mxu1 %v581_v16 }
  0x76   :  { %539 = vmatprep.subr.bf16.mxu0 %v582_v17 }
  0x78   :  { %516 = vmatpush3.bf16.msra.mxu1 %v581_v16 }
  0x79   :  { %540 = vmatpush3.bf16.msra.mxu0 %v582_v17 }
  0x7b   :  { %518 = vmatmul.mubr.bf16.vlgmr.msra.gmra.mrb[0].mxu1 %v585_v18 }
  0x7c   :  { %542 = vmatmul.mubr.bf16.vlgmr.msra.gmra.mrb[0].mxu0 %v586_v19  ;;  %521 = vmatprep.mubr.bf16.mxu1 %v587_v20 }
  0x7d   :  { %545 = vmatprep.mubr.bf16.mxu0 %v588_v21 }
  0x83   :  { %522 = vmatmul.mubr.bf16.gmra.mrb[4].mxu1 %v589_v22 }
  0x84   :  { %546 = vmatmul.mubr.bf16.gmra.mrb[4].mxu0 %v590_v23 }
 0x14e   :  { %v519_v24 = vpop.f32.mrb[0].mxu1 }
 0x14f   :  { %v543_v25 = vpop.f32.mrb[0].mxu0  ;;  %v242_v27 = vpop.f32.mrb[1].mxu1 }
 0x150   :  { %v388_v28 = vadd.f32 %v543_v25, %v519_v24  ;;  %v379_v29 = vpop.f32.mrb[1].mxu0  ;;  %v520_v30 = vpop.f32.mrb[2].mxu1 }
 0x151   :  { %v380_v31 = vadd.f32 %v379_v29, %v242_v27  ;;  %v544_v32 = vpop.f32.mrb[2].mxu0  ;;  %v245_v33 = vpop.f32.mrb[3].mxu1 }
 0x152   :  { %v419_v34 = vadd.f32 %v476_v26, %v388_v28  ;;  %v391_v35 = vadd.f32 %v544_v32, %v520_v30  ;;  %v382_v36 = vpop.f32.mrb[3].mxu0 }
 0x153   :  { %v417_v37 = vadd.f32 %v476_v26, %v380_v31  ;;  %v383_v38 = vadd.f32 %v382_v36, %v245_v33 }
 0x154   :  { %427 = vst [vmem:[#allocation11 + $0x10] sm:$0xff] %v419_v34  ;;  %v420_v39 = vadd.f32 %v476_v26, %v391_v35 }
 0x155   :  { %425 = vst [vmem:[#allocation11] sm:$0xff] %v417_v37  ;;  %v418_v40 = vadd.f32 %v476_v26, %v383_v38 }
 0x156   :  { %428 = vst [vmem:[#allocation11 + $0x18] sm:$0xff] %v420_v39  ;;  %v523_v41 = vpop.f32.mrb[4].mxu1 }
 0x157   :  { %426 = vst [vmem:[#allocation11 + $0x8] sm:$0xff] %v418_v40  ;;  %v547_v42 = vpop.f32.mrb[4].mxu0  ;;  %v258_v43 = vpop.f32.mrb[5].mxu1 }
 0x158   :  { %v404_v44 = vadd.f32 %v547_v42, %v523_v41  ;;  %v395_v45 = vpop.f32.mrb[5].mxu0  ;;  %v524_v46 = vpop.f32.mrb[6].mxu1 }
 0x159   :  { %v396_v47 = vadd.f32 %v395_v45, %v258_v43  ;;  %v548_v48 = vpop.f32.mrb[6].mxu0  ;;  %v261_v49 = vpop.f32.mrb[7].mxu1 }
 0x15a   :  { %v423_v50 = vadd.f32 %v476_v26, %v404_v44  ;;  %v407_v51 = vadd.f32 %v548_v48, %v524_v46  ;;  %v398_v52 = vpop.f32.mrb[7].mxu0 }
 0x15b   :  { %v421_v53 = vadd.f32 %v476_v26, %v396_v47  ;;  %v399_v54 = vadd.f32 %v398_v52, %v261_v49 }
 0x15c   :  { %431 = vst [vmem:[#allocation11 + $0x30] sm:$0xff] %v423_v50  ;;  %v424_v55 = vadd.f32 %v476_v26, %v407_v51 }
 0x15d   :  { %429 = vst [vmem:[#allocation11 + $0x20] sm:$0xff] %v421_v53  ;;  %v422_v56 = vadd.f32 %v476_v26, %v399_v54 }
 0x15e   :  { %432 = vst [vmem:[#allocation11 + $0x38] sm:$0xff] %v424_v55 }
 0x15f   :  { %430 = vst [vmem:[#allocation11 + $0x28] sm:$0xff] %v422_v56 }
 0x160   :  { %712 = shalt.err (!%p709_p2)
}
 0x161   :  { %s713_s21 = scalar_lea.hbm %s874_s5, 1024 }
 0x162   :  { %p714_p3 = scmp.ne.s32.totalorder %s874_s5, %s713_s21  ;;  %p717_p4 = scmp.lt.u32.totalorder %s713_s21, %s874_s5 }
 0x164   :  { %p719_p5 = pnand %p717_p4, %p714_p3 }
 0x166   :  { %722 = shalt.err (!%p719_p5)
}
 0x167   :  { %s739_s11 = smov 128   ;;  %s740_s12 = smov 8  }
 0x168   :  { %444 = dma.vmem_to_hbm [thread:$0]  %s439_s22, 1024, %s874_s5, [#allocation4], %s739_s11, %s739_s11, %s740_s12  }
 0x169   :  { %729 = dma.done.wait [#allocation4], 1024  }
 0x16a   :  { %730 = vsyncadd [#allocation4], 4294966272 }
 0x16b   :  { %448 = vsyncpa [#allocation3], 1 }
 0x16c   :  { %449 = vsyncpa [#allocation6], 1 }
 0x16d   :  { %450 = vsyncpa [#allocation9], 1 }
 0x16e   :  { %451 = vsyncpa [#allocation4], 1 }

// kernel: two_lstm_forward.4
= control target key start
LH: loop header
LB: loop body
LE: loop exit
PB: predicated region body
PF: predicated region fallthrough
CT: control target
= control target key end

     0   :  { %13 = vsyncpa [#allocation5], 0  ;;  %s4442_s0 = inlined_call_operand.hbm [shape: bf16[8,8,768], index: 0, kind: input, shape index: {}, may-alias: {0,1}]   ;;  %s4443_s1 = inlined_call_operand.hbm [shape: bf16[8,8,768], index: 1, kind: input, shape index: {}, may-alias: {0,1}]   ;;  %s4444_s2 = inlined_call_operand.hbm [shape: bf16[128,384], index: 2, kind: input, shape index: {}]   ;;  %s4445_s3 = inlined_call_operand.hbm [shape: bf16[128,384], index: 3, kind: input, shape index: {}]   ;;  %s4446_s4 = inlined_call_operand.hbm [shape: f32[1,128], index: 4, kind: input, shape index: {}]   ;;  %s4447_s5 = inlined_call_operand.hbm [shape: f32[1,128], index: 5, kind: input, shape index: {}]   ;;  %s4448_s6 = inlined_call_operand.hbm [shape: bf16[8,8,128], index: 6, kind: output, shape index: {0}]   ;;  %s4449_s7 = inlined_call_operand.hbm [shape: bf16[8,8,128], index: 7, kind: output, shape index: {1}]  }
   0x1   :  { %14 = vsyncpa [#allocation8], 0 }
   0x2   :  { %15 = vsyncpa [#allocation11], 0 }
   0x3   :  { %16 = vsyncpa [#allocation14], 0 }
   0x4   :  { %17 = vsyncpa [#allocation6], 0 }
   0x5   :  { %18 = vsyncpa [#allocation17], 0  ;;  %s3426_s26 = scalar_lea.hbm %s4443_s1, 192  ;;  %s3366_s27 = smov [#allocation7]  }
   0x6   :  { %s42_s28 = sshll.u32 %s3366_s27, 4  ;;  %s3367_s29 = smov [#allocation10]   ;;  %s43_s28 = int_to_ptr.vmem [resolvable:$true] %s42_s28 }
   0x7   :  { %s66_s30 = sshll.u32 %s3367_s29, 4  ;;  %s3199_s10 = scalar_lea.hbm %s4443_s1, 1728  ;;  %s3428_s30 = int_to_ptr.vmem [resolvable:$true] %s66_s30 }
   0x8   :  { %p3176_p0 = scmp.ne.s32.totalorder %s3426_s26, %s3199_s10  ;;  %s3177_s13 = scalar_lea.hbm %s4443_s1, 3072 }
   0x9   :  { %p3178_p1 = scmp.lt.u32.totalorder %s3426_s26, %s4443_s1  ;;  %p3179_p2 = scmp.lt.u32.totalorder %s3177_s13, %s3199_s10 }
   0xa   :  { %p3181_p4 = scmp.lt.u32.totalorder %s3199_s10, %s3426_s26 }
   0xb   :  { %p3180_p3 = por %p3179_p2, %p3178_p1 }
   0xd   :  { %p3182_p5 = por %p3181_p4, %p3180_p3 }
   0xf   :  { %p3183_p6 = pnand %p3182_p5, %p3176_p0 }
  0x11   :  { %3186 = shalt.err (!%p3183_p6)
}
  0x12   :  { %s3187_s16 = scalar_lea.vmem %s43_s28, 1536  ;;  %p3192_p8 = scmp.lt.s32.totalorder %s43_s28, %s43_s28 }
  0x13   :  { %p3188_p7 = scmp.ne.s32.totalorder %s43_s28, %s3187_s16  ;;  %p3193_p9 = scmp.lt.s32.totalorder %s3187_s16, %s3187_s16 }
  0x15   :  { %p3194_p10 = por %p3193_p9, %p3192_p8 }
  0x17   :  { %p3195_p11 = pnand %p3194_p10, %p3188_p7 }
  0x19   :  { %3198 = shalt.err (!%p3195_p11)
}
  0x1a   :  { %s3368_s17 = smov 384   ;;  %s3369_s18 = smov 192  }
  0x1b   :  { %s3370_s19 = smov 12   ;;  %s3200_s21 = scalar_lea.hbm %s4445_s3, 3072 }
  0x1c   :  { %48 = dma.hbm_to_vmem [thread:$0]  %s3426_s26, 1536, %s43_s28, [#allocation8], %s3368_s17, %s3369_s18, %s3370_s19  }
  0x1d   :  { %p3201_p12 = scmp.ne.s32.totalorder %s4445_s3, %s3200_s21  ;;  %p3204_p13 = scmp.lt.u32.totalorder %s3200_s21, %s4445_s3 }
  0x1f   :  { %p3206_p0 = pnand %p3204_p13, %p3201_p12 }
  0x21   :  { %3209 = shalt.err (!%p3206_p0)
}
  0x22   :  { %s3210_s27 = scalar_lea.vmem %s3428_s30, 3072  ;;  %p3215_p2 = scmp.lt.s32.totalorder %s3428_s30, %s3428_s30 }
  0x23   :  { %p3211_p1 = scmp.ne.s32.totalorder %s3428_s30, %s3210_s27  ;;  %p3216_p3 = scmp.lt.s32.totalorder %s3210_s27, %s3210_s27 }
  0x25   :  { %p3217_p4 = por %p3216_p3, %p3215_p2 }
  0x27   :  { %p3218_p5 = pnand %p3217_p4, %p3211_p1 }
  0x29   :  { %3221 = shalt.err (!%p3218_p5)
}
  0x2a   :  { %72 = dma.hbm_to_vmem [thread:$0]  %s4445_s3, 3072, %s3428_s30, [#allocation11], %s3369_s18, %s3369_s18, %s3370_s19  }
  0x2b   :  { %s3371_s29 = smov [#allocation4]   ;;  %s3372_s9 = smov [#allocation9]  }
  0x2c   :  { %s24_s8 = sshll.u32 %s3371_s29, 4  ;;  %s54_s10 = sshll.u32 %s3372_s9, 4  ;;  %s25_s8 = int_to_ptr.vmem [resolvable:$true] %s24_s8  ;;  %s3466_s10 = int_to_ptr.vmem [resolvable:$true] %s54_s10 }
  0x2d   :  { %s3222_s13 = scalar_lea.hbm %s4442_s0, 1536  ;;  %s3224_s20 = scalar_lea.hbm %s4442_s0, 3072 }
  0x2e   :  { %p3223_p6 = scmp.ne.s32.totalorder %s4442_s0, %s3222_s13  ;;  %p3225_p7 = scmp.lt.u32.totalorder %s3224_s20, %s3222_s13 }
  0x2f   :  { %p3226_p8 = scmp.lt.u32.totalorder %s3222_s13, %s4442_s0 }
  0x31   :  { %p3227_p9 = por %p3226_p8, %p3225_p7 }
  0x33   :  { %p3228_p10 = pnand %p3227_p9, %p3223_p6 }
  0x35   :  { %3231 = shalt.err (!%p3228_p10)
}
  0x36   :  { %s3232_s21 = scalar_lea.vmem %s25_s8, 1536  ;;  %p3237_p12 = scmp.lt.s32.totalorder %s25_s8, %s25_s8 }
  0x37   :  { %p3233_p11 = scmp.ne.s32.totalorder %s25_s8, %s3232_s21  ;;  %p3238_p13 = scmp.lt.s32.totalorder %s3232_s21, %s3232_s21 }
  0x39   :  { %p3239_p0 = por %p3238_p13, %p3237_p12 }
  0x3b   :  { %p3240_p1 = pnand %p3239_p0, %p3233_p11 }
  0x3d   :  { %3243 = shalt.err (!%p3240_p1)
}
  0x3e   :  { %30 = dma.hbm_to_vmem [thread:$0]  %s4442_s0, 1536, %s25_s8, [#allocation5], %s3368_s17, %s3369_s18, %s3370_s19  }
  0x3f   :  { %s3244_s27 = scalar_lea.hbm %s4444_s2, 3072 }
  0x40   :  { %p3245_p2 = scmp.ne.s32.totalorder %s4444_s2, %s3244_s27  ;;  %p3248_p3 = scmp.lt.u32.totalorder %s3244_s27, %s4444_s2 }
  0x42   :  { %p3250_p4 = pnand %p3248_p3, %p3245_p2 }
  0x44   :  { %3253 = shalt.err (!%p3250_p4)
}
  0x45   :  { %s3254_s11 = scalar_lea.vmem %s3466_s10, 3072  ;;  %p3259_p6 = scmp.lt.s32.totalorder %s3466_s10, %s3466_s10 }
  0x46   :  { %p3255_p5 = scmp.ne.s32.totalorder %s3466_s10, %s3254_s11  ;;  %p3260_p7 = scmp.lt.s32.totalorder %s3254_s11, %s3254_s11 }
  0x48   :  { %p3261_p8 = por %p3260_p7, %p3259_p6 }
  0x4a   :  { %p3262_p9 = pnand %p3261_p8, %p3255_p5 }
  0x4c   :  { %3265 = shalt.err (!%p3262_p9)
}
  0x4d   :  { %60 = dma.hbm_to_vmem [thread:$0]  %s4444_s2, 3072, %s3466_s10, [#allocation8], %s3369_s18, %s3369_s18, %s3370_s19  }
  0x4e   :  { %s3373_s8 = smov [#allocation12]   ;;  %s3374_s13 = smov [#allocation13]  }
  0x4f   :  { %s79_s12 = sshll.u32 %s3373_s8, 4  ;;  %s89_s14 = sshll.u32 %s3374_s13, 4  ;;  %s80_s12 = int_to_ptr.vmem [resolvable:$true] %s79_s12  ;;  %s90_s14 = int_to_ptr.vmem [resolvable:$true] %s89_s14 }
  0x50   :  { %s3266_s1 = scalar_lea.hbm %s4446_s4, 16 }
  0x51   :  { %p3267_p10 = scmp.ne.s32.totalorder %s4446_s4, %s3266_s1  ;;  %p3270_p11 = scmp.lt.u32.totalorder %s3266_s1, %s4446_s4 }
  0x53   :  { %p3272_p12 = pnand %p3270_p11, %p3267_p10 }
  0x55   :  { %3275 = shalt.err (!%p3272_p12)
}
  0x56   :  { %s3276_s2 = scalar_lea.vmem %s80_s12, 16  ;;  %s3280_s18 = scalar_lea.vmem %s80_s12, 32 }
  0x57   :  { %p3277_p13 = scmp.ne.s32.totalorder %s80_s12, %s3276_s2  ;;  %p3281_p0 = scmp.lt.s32.totalorder %s80_s12, %s80_s12 }
  0x58   :  { %p3282_p1 = scmp.lt.s32.totalorder %s3280_s18, %s3276_s2 }
  0x5a   :  { %p3283_p2 = por %p3282_p1, %p3281_p0 }
  0x5c   :  { %p3284_p3 = pnand %p3283_p2, %p3277_p13 }
  0x5e   :  { %3287 = shalt.err (!%p3284_p3)
}
  0x5f   :  { %82 = dma.hbm_to_vmem [thread:$0]  %s4446_s4, 16, %s80_s12, [#allocation11]  }
  0x60   :  { %s3288_s24 = scalar_lea.hbm %s4447_s5, 16 }
  0x61   :  { %p3289_p4 = scmp.ne.s32.totalorder %s4447_s5, %s3288_s24  ;;  %p3292_p5 = scmp.lt.u32.totalorder %s3288_s24, %s4447_s5 }
  0x63   :  { %p3294_p6 = pnand %p3292_p5, %p3289_p4 }
  0x65   :  { %3297 = shalt.err (!%p3294_p6)
}
  0x66   :  { %s3298_s29 = scalar_lea.vmem %s90_s14, 16  ;;  %s3302_s9 = scalar_lea.vmem %s90_s14, 32 }
  0x67   :  { %p3299_p7 = scmp.ne.s32.totalorder %s90_s14, %s3298_s29  ;;  %p3303_p8 = scmp.lt.s32.totalorder %s90_s14, %s90_s14 }
  0x68   :  { %p3304_p9 = scmp.lt.s32.totalorder %s3302_s9, %s3298_s29 }
  0x6a   :  { %p3305_p10 = por %p3304_p9, %p3303_p8 }
  0x6c   :  { %p3306_p11 = pnand %p3305_p10, %p3299_p7 }
  0x6e   :  { %3309 = shalt.err (!%p3306_p11)
}
  0x6f   :  { %92 = dma.hbm_to_vmem [thread:$0]  %s4447_s5, 16, %s90_s14, [#allocation14]  }
  0x70   :  { %3354 = dma.done.wait [#allocation5], 1536  }
  0x71   :  { %3355 = vsyncadd [#allocation5], 4294965760 }
  0x72   :  { %3356 = dma.done.wait [#allocation8], 4608  }
  0x73   :  { %3357 = vsyncadd [#allocation8], 4294962688 }
  0x74   :  { %3358 = dma.done.wait [#allocation11], 3088  }
  0x75   :  { %3359 = vsyncadd [#allocation11], 4294964208 }
  0x76   :  { %3360 = dma.done.wait [#allocation14], 16  }
  0x77   :  { %3361 = vsyncadd [#allocation14], 4294967280  ;;  %v4456_v0 = vmov 0.0   ;;  %v4450_v1 = vmov 0   ;;  %vm3377_vm0 = vmmov 0   ;;  %v3378_v28 = vmov 0.0|0.0  }
  0x78   :  { %2564 = vmatprep.subr.bf16.mxu1 %v4456_v0  ;;  %367 = vmatprep.mubr.bf16.mxu0 %v4450_v1  ;;  %v3534_v2 = vld [vmem:[#allocation9 + $0x4] ss:$12 sps:$4 sm:$0xff]   ;;  %v3536_v3 = vld [vmem:[#allocation9] ss:$12 sps:$4 sm:$0xff]   ;;  %v3539_v4 = vld [vmem:[#allocation9 + $0x1c] ss:$12 sps:$4 sm:$0xff]  }
  0x79   :  { %2580 = vmatprep.mubr.msk.bf16.mxu1 %vm3377_vm0, %v4456_v0  ;;  %335 = vmatprep.subr.bf16.mxu0 %v3534_v2  ;;  %v3542_v5 = vld [vmem:[#allocation9 + $0x18] ss:$12 sps:$4 sm:$0xff]   ;;  %v3545_v6 = vld [vmem:[#allocation9 + $0x34] ss:$12 sps:$4 sm:$0xff]   ;;  %v3548_v7 = vld [vmem:[#allocation9 + $0x30] ss:$12 sps:$4 sm:$0xff]  }
  0x7a   :  { %336 = vmatpush1.bf16.msra.mxu0 %v3536_v3  ;;  %v3551_v8 = vld [vmem:[#allocation9 + $0x4c] ss:$12 sps:$4 sm:$0xff]   ;;  %v3553_v9 = vld [vmem:[#allocation9 + $0x8] ss:$12 sps:$4 sm:$0xff]   ;;  %v3560_v11 = vld [vmem:[#allocation9 + $0x64] ss:$12 sps:$4 sm:$0xff]  }
  0x7b   :  { %337 = vmatprep.subr.bf16.mxu0 %v3539_v4  ;;  %v3556_v10 = vld [vmem:[#allocation9 + $0x48] ss:$12 sps:$4 sm:$0xff]   ;;  %2565 = vmatpush3.bf16.msra.mxu1 %v3553_v9  ;;  %v3563_v12 = vld [vmem:[#allocation9 + $0x20] ss:$12 sps:$4 sm:$0xff]   ;;  %v3569_v14 = vld [vmem:[#allocation9 + $0x38] ss:$12 sps:$4 sm:$0xff]  }
  0x7c   :  { %2566 = vmatprep.subr.bf16.mxu1 %v4456_v0  ;;  %v3565_v13 = vld [vmem:[#allocation9 + $0x60] ss:$12 sps:$4 sm:$0xff]   ;;  %v3572_v15 = vld [vmem:[#allocation9 + $0x7c] ss:$12 sps:$4 sm:$0xff]   ;;  %v3576_v16 = vld [vmem:[#allocation9 + $0x78] ss:$12 sps:$4 sm:$0xff]  }
  0x7d   :  { %4500 = vst [vmem:[#allocation24_spill] sm:$0xff] %v3565_v13  ;;  %4501 = vst [vmem:[#allocation25_spill] sm:$0xff] %v3572_v15  ;;  %v3579_v17 = vld [vmem:[#allocation9 + $0x50] ss:$12 sps:$4 sm:$0xff]   ;;  %v3582_v18 = vld [vmem:[#allocation9 + $0x94] ss:$12 sps:$4 sm:$0xff]  }
  0x7e   :  { %338 = vmatpush1.bf16.msra.mxu0 %v3542_v5  ;;  %4502 = vst [vmem:[#allocation26_spill] sm:$0xff] %v3576_v16  ;;  %4503 = vst [vmem:[#allocation27_spill] sm:$0xff] %v3582_v18  ;;  %v3585_v19 = vld [vmem:[#allocation9 + $0x90] ss:$12 sps:$4 sm:$0xff]   ;;  %v3589_v20 = vld [vmem:[#allocation9 + $0x68] ss:$12 sps:$4 sm:$0xff]  }
  0x7f   :  { %339 = vmatprep.subr.bf16.mxu0 %v3545_v6  ;;  %2567 = vmatpush3.bf16.msra.mxu1 %v3563_v12  ;;  %4504 = vst [vmem:[#allocation28_spill] sm:$0xff] %v3585_v19  ;;  %4505 = vst [vmem:[#allocation29_spill] sm:$0xff] %v3589_v20  ;;  %v3592_v21 = vld [vmem:[#allocation9 + $0xac] ss:$12 sps:$4 sm:$0xff]   ;;  %v3595_v22 = vld [vmem:[#allocation9 + $0xa8] ss:$12 sps:$4 sm:$0xff]  }
  0x80   :  { %2568 = vmatprep.subr.bf16.mxu1 %v4456_v0  ;;  %4506 = vst [vmem:[#allocation30_spill] sm:$0xff] %v3592_v21  ;;  %4507 = vst [vmem:[#allocation31_spill] sm:$0xff] %v3595_v22  ;;  %v3599_v23 = vld [vmem:[#allocation9 + $0x80] ss:$12 sps:$4 sm:$0xff]   ;;  %v3602_v24 = vld [vmem:[#allocation10 + $0x4] ss:$12 sps:$4 sm:$0xff]  }
  0x81   :  { %4508 = vst [vmem:[#allocation32_spill] sm:$0xff] %v3599_v23  ;;  %4509 = vst [vmem:[#allocation33_spill] sm:$0xff] %v3602_v24  ;;  %v3605_v25 = vld [vmem:[#allocation10] ss:$12 sps:$4 sm:$0xff]   ;;  %v3609_v26 = vld [vmem:[#allocation9 + $0x98] ss:$12 sps:$4 sm:$0xff]  }
  0x82   :  { %340 = vmatpush1.bf16.msra.mxu0 %v3548_v7  ;;  %4510 = vst [vmem:[#allocation34_spill] sm:$0xff] %v3609_v26  ;;  %v3612_v27 = vld [vmem:[#allocation10 + $0x1c] ss:$12 sps:$4 sm:$0xff]   ;;  %v3616_v29 = vld [vmem:[#allocation10 + $0x18] ss:$12 sps:$4 sm:$0xff]   ;;  %s3379_s5 = smov [#allocation15]  }
  0x83   :  { %341 = vmatprep.subr.bf16.mxu0 %v3551_v8  ;;  %2569 = vmatpush3.bf16.msra.mxu1 %v3569_v14  ;;  %v3620_v30 = vld [vmem:[#allocation9 + $0xb0] ss:$12 sps:$4 sm:$0xff]   ;;  %v3623_v31 = vld [vmem:[#allocation10 + $0x34] ss:$12 sps:$4 sm:$0xff]   ;;  %v3634_v34 = vld [vmem:[#allocation10 + $0x4c] ss:$12 sps:$4 sm:$0xff]  }
  0x84   :  { %2570 = vmatprep.subr.bf16.mxu1 %v4456_v0  ;;  %4511 = vst [vmem:[#allocation35_spill] sm:$0xff] %v3620_v30  ;;  %v3628_v32 = vld [vmem:[#allocation10 + $0x30] ss:$12 sps:$4 sm:$0xff]   ;;  %v3631_v33 = vld [vmem:[#allocation10 + $0x8] ss:$12 sps:$4 sm:$0xff]   ;;  %v200_v51 = vld [vmem:[#allocation4] sm:$0xff] }
  0x85   :  { %v3639_v35 = vld [vmem:[#allocation10 + $0x48] ss:$12 sps:$4 sm:$0xff]   ;;  %v3642_v36 = vld [vmem:[#allocation10 + $0x20] ss:$12 sps:$4 sm:$0xff]   ;;  %v3645_v37 = vld [vmem:[#allocation10 + $0x64] ss:$12 sps:$4 sm:$0xff]   ;;  %v202_v52 = vunpack.c.l.bf16 %v200_v51  ;;  %v203_v54 = vunpack.c.h.bf16 %v200_v51 }
  0x86   :  { %342 = vmatpush1.bf16.msra.mxu0 %v3556_v10  ;;  %v3651_v38 = vld [vmem:[#allocation10 + $0x60] ss:$12 sps:$4 sm:$0xff]   ;;  %v3654_v39 = vld [vmem:[#allocation10 + $0x38] ss:$12 sps:$4 sm:$0xff]   ;;  %v3657_v40 = vld [vmem:[#allocation10 + $0x7c] ss:$12 sps:$4 sm:$0xff]  }
  0x87   :  { %343 = vmatprep.subr.bf16.mxu0 %v3560_v11  ;;  %2571 = vmatpush3.bf16.msra.mxu1 %v3579_v17  ;;  %v3661_v41 = vld [vmem:[#allocation10 + $0x78] ss:$12 sps:$4 sm:$0xff]   ;;  %v3664_v42 = vld [vmem:[#allocation10 + $0x50] ss:$12 sps:$4 sm:$0xff]   ;;  %v3667_v43 = vld [vmem:[#allocation10 + $0x94] ss:$12 sps:$4 sm:$0xff]  }
  0x88   :  { %2572 = vmatprep.subr.bf16.mxu1 %v4456_v0  ;;  %v3671_v44 = vld [vmem:[#allocation10 + $0x90] ss:$12 sps:$4 sm:$0xff]   ;;  %v3674_v45 = vld [vmem:[#allocation10 + $0x68] ss:$12 sps:$4 sm:$0xff]   ;;  %v3677_v46 = vld [vmem:[#allocation10 + $0xac] ss:$12 sps:$4 sm:$0xff]  }
  0x89   :  { %v3681_v47 = vld [vmem:[#allocation10 + $0xa8] ss:$12 sps:$4 sm:$0xff]   ;;  %v3684_v48 = vld [vmem:[#allocation10 + $0x80] ss:$12 sps:$4 sm:$0xff]   ;;  %v3690_v49 = vld [vmem:[#allocation10 + $0x98] ss:$12 sps:$4 sm:$0xff]  }
  0x8a   :  { %344 = vmatpush1.bf16.msra.mxu0 %v3565_v13  ;;  %v3696_v50 = vld [vmem:[#allocation10 + $0xb0] ss:$12 sps:$4 sm:$0xff]   ;;  %v3739_v51 = vld [vmem:[#allocation4 + $0x8] ss:$12 sps:$4 sm:$0xff]   ;;  %s2297_s0 = sshll.u32 %s3379_s5, 4  ;;  %s2298_s0 = int_to_ptr.vmem [resolvable:$true] %s2297_s0 }
  0x8b   :  { %345 = vmatprep.subr.bf16.mxu0 %v3572_v15  ;;  %2573 = vmatpush3.bf16.msra.mxu1 %v3589_v20  ;;  %4513 = vst [vmem:[#allocation37_spill] sm:$0xff] %v3739_v51  ;;  %s3310_s17 = scalar_lea.vmem %s2298_s0, 512  ;;  %p3315_p13 = scmp.lt.s32.totalorder %s2298_s0, %s2298_s0 }
  0x8c   :  { %2574 = vmatprep.subr.bf16.mxu1 %v4456_v0  ;;  %p3311_p12 = scmp.ne.s32.totalorder %s2298_s0, %s3310_s17  ;;  %p3316_p0 = scmp.lt.s32.totalorder %s3310_s17, %s3310_s17 }
  0x8e   :  { %346 = vmatpush1.bf16.msra.mxu0 %v3576_v16  ;;  %p3317_p1 = por %p3316_p0, %p3315_p13 }
  0x8f   :  { %347 = vmatprep.subr.bf16.mxu0 %v3582_v18  ;;  %2575 = vmatpush3.bf16.msra.mxu1 %v3599_v23 }
  0x90   :  { %2576 = vmatprep.subr.bf16.mxu1 %v4456_v0  ;;  %p3318_p2 = pnand %p3317_p1, %p3311_p12 }
  0x92   :  { %348 = vmatpush1.bf16.msra.mxu0 %v3585_v19 }
  0x93   :  { %349 = vmatprep.subr.bf16.mxu0 %v3592_v21  ;;  %2577 = vmatpush3.bf16.msra.mxu1 %v3609_v26 }
  0x94   :  { %2578 = vmatprep.subr.bf16.mxu1 %v4456_v0 }
  0x96   :  { %350 = vmatpush1.bf16.msra.mxu0 %v3595_v22 }
  0x97   :  { %577 = vmatprep.subr.bf16.mxu0 %v3602_v24  ;;  %2579 = vmatpush3.bf16.msra.mxu1 %v3620_v30 }
  0x98   :  { %2584 = vmatprep.subr.bf16.mxu1 %v4456_v0 }
  0x99   :  { %368 = vmatmul.mubr.bf16.vlgmr.msra.gmra.mrb[0].mxu0 %v3378_v28 }
  0x9a   :  { %578 = vmatpush1.bf16.msra.mxu0 %v3605_v25  ;;  %609 = vmatprep.mubr.bf16.mxu0 %v4450_v1 }
  0x9b   :  { %579 = vmatprep.subr.bf16.mxu0 %v3612_v27  ;;  %2581 = vmatmul.mubr.bf16.vlgmr.msra.gmra.mrb[0].mxu1 %v3378_v28 }
  0x9c   :  { %2585 = vmatpush3.bf16.msra.mxu1 %v3631_v33  ;;  %2600 = vmatprep.mubr.msk.bf16.mxu1 %vm3377_vm0, %v4456_v0 }
  0x9d   :  { %2586 = vmatprep.subr.bf16.mxu1 %v4456_v0 }
  0x9e   :  { %580 = vmatpush1.bf16.msra.mxu0 %v3616_v29 }
  0x9f   :  { %581 = vmatprep.subr.bf16.mxu0 %v3623_v31 }
  0xa0   :  { %2587 = vmatpush3.bf16.msra.mxu1 %v3642_v36 }
  0xa1   :  { %2588 = vmatprep.subr.bf16.mxu1 %v4456_v0 }
  0xa2   :  { %582 = vmatpush1.bf16.msra.mxu0 %v3628_v32 }
  0xa3   :  { %583 = vmatprep.subr.bf16.mxu0 %v3634_v34 }
  0xa4   :  { %2589 = vmatpush3.bf16.msra.mxu1 %v3654_v39 }
  0xa5   :  { %2590 = vmatprep.subr.bf16.mxu1 %v4456_v0 }
  0xa6   :  { %584 = vmatpush1.bf16.msra.mxu0 %v3639_v35 }
  0xa7   :  { %585 = vmatprep.subr.bf16.mxu0 %v3645_v37 }
  0xa8   :  { %2591 = vmatpush3.bf16.msra.mxu1 %v3664_v42 }
  0xa9   :  { %2592 = vmatprep.subr.bf16.mxu1 %v4456_v0 }
  0xaa   :  { %586 = vmatpush1.bf16.msra.mxu0 %v3651_v38 }
  0xab   :  { %587 = vmatprep.subr.bf16.mxu0 %v3657_v40 }
  0xac   :  { %2593 = vmatpush3.bf16.msra.mxu1 %v3674_v45 }
  0xad   :  { %2594 = vmatprep.subr.bf16.mxu1 %v4456_v0 }
  0xae   :  { %588 = vmatpush1.bf16.msra.mxu0 %v3661_v41 }
  0xaf   :  { %589 = vmatprep.subr.bf16.mxu0 %v3667_v43 }
  0xb0   :  { %2595 = vmatpush3.bf16.msra.mxu1 %v3684_v48 }
  0xb1   :  { %2596 = vmatprep.subr.bf16.mxu1 %v4456_v0 }
  0xb2   :  { %590 = vmatpush1.bf16.msra.mxu0 %v3671_v44 }
  0xb3   :  { %591 = vmatprep.subr.bf16.mxu0 %v3677_v46 }
  0xb4   :  { %2597 = vmatpush3.bf16.msra.mxu1 %v3690_v49 }
  0xb5   :  { %2598 = vmatprep.subr.bf16.mxu1 %v4456_v0 }
  0xb6   :  { %592 = vmatpush1.bf16.msra.mxu0 %v3681_v47 }
  0xb7   :  { %692 = vmatprep.subr.bf16.mxu0 %v3534_v2 }
  0xb8   :  { %2599 = vmatpush3.bf16.msra.mxu1 %v3696_v50 }
  0xb9   :  { %610 = vmatmul.mubr.bf16.vlgmr.msra.gmra.mrb[4].mxu0 %v3378_v28  ;;  %2604 = vmatprep.subr.bf16.mxu1 %v4456_v0 }
  0xba   :  { %693 = vmatpush1.bf16.msra.mxu0 %v3536_v3  ;;  %724 = vmatprep.mubr.bf16.mxu0 %v4450_v1 }
  0xbb   :  { %694 = vmatprep.subr.bf16.mxu0 %v3539_v4  ;;  %2601 = vmatmul.mubr.bf16.vlgmr.msra.gmra.mrb[4].mxu1 %v3378_v28 }
  0xbc   :  { %2605 = vmatpush3.bf16.msra.mxu1 %v3553_v9  ;;  %2620 = vmatprep.mubr.msk.bf16.mxu1 %vm3377_vm0, %v4456_v0 }
  0xbd   :  { %2606 = vmatprep.subr.bf16.mxu1 %v4456_v0 }
  0xbe   :  { %695 = vmatpush1.bf16.msra.mxu0 %v3542_v5 }
  0xbf   :  { %696 = vmatprep.subr.bf16.mxu0 %v3545_v6 }
  0xc0   :  { %2607 = vmatpush3.bf16.msra.mxu1 %v3563_v12 }
  0xc1   :  { %2608 = vmatprep.subr.bf16.mxu1 %v4456_v0 }
  0xc2   :  { %697 = vmatpush1.bf16.msra.mxu0 %v3548_v7 }
  0xc3   :  { %698 = vmatprep.subr.bf16.mxu0 %v3551_v8 }
  0xc4   :  { %2609 = vmatpush3.bf16.msra.mxu1 %v3569_v14 }
  0xc5   :  { %2610 = vmatprep.subr.bf16.mxu1 %v4456_v0 }
  0xc6   :  { %699 = vmatpush1.bf16.msra.mxu0 %v3556_v10 }
  0xc7   :  { %700 = vmatprep.subr.bf16.mxu0 %v3560_v11 }
  0xc8   :  { %2611 = vmatpush3.bf16.msra.mxu1 %v3579_v17 }
  0xc9   :  { %2612 = vmatprep.subr.bf16.mxu1 %v4456_v0 }
  0xca   :  { %701 = vmatpush1.bf16.msra.mxu0 %v3565_v13 }
  0xcb   :  { %702 = vmatprep.subr.bf16.mxu0 %v3572_v15 }
  0xcc   :  { %2613 = vmatpush3.bf16.msra.mxu1 %v3589_v20 }
  0xcd   :  { %2614 = vmatprep.subr.bf16.mxu1 %v4456_v0 }
  0xce   :  { %703 = vmatpush1.bf16.msra.mxu0 %v3576_v16 }
  0xcf   :  { %704 = vmatprep.subr.bf16.mxu0 %v3582_v18 }
  0xd0   :  { %2615 = vmatpush3.bf16.msra.mxu1 %v3599_v23 }
  0xd1   :  { %2616 = vmatprep.subr.bf16.mxu1 %v4456_v0 }
  0xd2   :  { %705 = vmatpush1.bf16.msra.mxu0 %v3585_v19 }
  0xd3   :  { %706 = vmatprep.subr.bf16.mxu0 %v3592_v21 }
  0xd4   :  { %2617 = vmatpush3.bf16.msra.mxu1 %v3609_v26 }
  0xd5   :  { %2618 = vmatprep.subr.bf16.mxu1 %v4456_v0 }
  0xd6   :  { %707 = vmatpush1.bf16.msra.mxu0 %v3595_v22  ;;  %v3737_v22 = vld [vmem:[#allocation12] ss:$0 sm:$0xff] }
  0xd7   :  { %807 = vmatprep.subr.bf16.mxu0 %v3602_v24  ;;  %4512 = vst [vmem:[#allocation36_spill] sm:$0xff] %v3737_v22 }
  0xd8   :  { %2619 = vmatpush3.bf16.msra.mxu1 %v3620_v30 }
  0xd9   :  { %2624 = vmatprep.subr.bf16.mxu1 %v4456_v0 }
 0x16c   :  { %v369_v53 = vpop.f32.mrb[0].mxu0 }
 0x16d   :  { %v416_v55 = vadd.f32 %v369_v53, %v202_v52  ;;  %v371_v56 = vpop.f32.mrb[1].mxu0 }
 0x16e   :  { %v373_v57 = vpop.f32.mrb[2].mxu0  ;;  %v423_v60 = vadd.f32 %v371_v56, %v203_v54  ;;  %v410_v62 = vpop.f32.mrb[0].mxu1  ;;  %v204_v54 = vunpack.c.l.bf16 %v3739_v51 }
 0x16f   :  { %v2364_v58 = vmul.f32 -1.442695, %v416_v55  ;;  %v374_v59 = vpop.f32.mrb[3].mxu0  ;;  %v2582_v63 = vpop.f32.mrb[1].mxu1  ;;  %v430_v53 = vadd.f32 %v3737_v22, %v410_v62  ;;  %v442_v55 = vld [vmem:[#allocation7 + $0x54] sm:$0xff] }
 0x170   :  { %v2365_v61 = vmul.f32 -1.442695, %v423_v60  ;;  %v413_v28 = vpop.f32.mrb[2].mxu1  ;;  %v445_v60 = vunpack.c.h.bf16 %v442_v55 }
 0x171   :  { %2965 = vpow2.f32 %v2364_v58  ;;  %v2583_v1 = vpop.f32.mrb[3].mxu1  ;;  %v444_v58 = vunpack.c.l.bf16 %v442_v55 }
 0x172   :  { %2967 = vpow2.f32 %v2365_v61 }
 0x17b   :  { %v2966_v24 = vpop.eup %2965 }
 0x17c   :  { %v420_v30 = vadd.f32 1.0, %v2966_v24  ;;  %v2968_v0 = vpop.eup %2967 }
 0x17d   :  { %v427_v52 = vadd.f32 1.0, %v2968_v0 }
 0x17e   :  { %2969 = vrcp.f32 %v420_v30 }
 0x17f   :  { %2971 = vrcp.f32 %v427_v52 }
 0x188   :  { %v2970_v56 = vpop.eup %2969 }
 0x189   :  { %v431_v57 = vmul.f32 %v2970_v56, %v430_v53  ;;  %v2972_v0 = vpop.eup %2971 }
 0x18a   :  { %v434_v51 = vsub.f32 1.0, %v2972_v0  ;;  %v436_v56 = vmul.f32 0.0, %v2972_v0 }
 0x18b   :  { %v432_v1 = vadd.f32 %v431_v57, %v204_v54 }
 0x18c   :  { %v611_v59 = vpop.f32.mrb[4].mxu0 }
 0x18d   :  { %2973 = vtanh.f32 %v432_v1  ;;  %v658_v24 = vadd.f32 %v611_v59, %v444_v58  ;;  %v613_v30 = vpop.f32.mrb[5].mxu0  ;;  %v3758_v59 = vld [vmem:[#allocation7 + $0x50] ss:$12 sps:$4 sm:$0xff]  }
 0x18e   :  { %v615_v61 = vpop.f32.mrb[6].mxu0  ;;  %v665_v21 = vadd.f32 %v613_v30, %v445_v60  ;;  %v652_v22 = vpop.f32.mrb[4].mxu1  ;;  %v446_v30 = vunpack.c.h.bf16 %v3758_v59 }
 0x18f   :  { %v2390_v63 = vmul.f32 -1.442695, %v658_v24  ;;  %v616_v28 = vpop.f32.mrb[7].mxu0  ;;  %v2602_v26 = vpop.f32.mrb[5].mxu1 }
 0x190   :  { %v2391_v62 = vmul.f32 -1.442695, %v665_v21  ;;  %v655_v19 = vpop.f32.mrb[6].mxu1  ;;  %v4515_v21 = vmov 0  }
 0x191   :  { %2975 = vpow2.f32 %v2390_v63  ;;  %v2603_v53 = vpop.f32.mrb[7].mxu1  ;;  %v4514_v19 = vmov 0.0  }
 0x192   :  { %2977 = vpow2.f32 %v2391_v62 }
 0x197   :  { %v2974_v52 = vpop.eup %2973 }
 0x198   :  { %v435_v54 = vmul.f32 %v2974_v52, %v434_v51  ;;  %v3754_v51 = vld [vmem:[#allocation13] ss:$0 sm:$0xff] }
 0x199   :  { %v672_v24 = vadd.f32 %v3754_v51, %v652_v22 }
 0x19a   :  { %v3743_v55 = vadd.f32 %v436_v56, %v435_v54 }
 0x19b   :  { %v2976_v57 = vpop.eup %2975 }
 0x19c   :  { %v662_v58 = vadd.f32 1.0, %v2976_v57  ;;  %v439_v1 = vpack.c.bf16 %v3743_v55, %v3743_v55  ;;  %v2978_v26 = vpop.eup %2977  ;;  %v4516_v57 = vld [vmem:[#allocation28_spill] sm:$0xff] }
 0x19d   :  { %v669_v60 = vadd.f32 1.0, %v2978_v26  ;;  %v4519_v26 = vld [vmem:[#allocation31_spill] sm:$0xff] }
 0x19e   :  { %2979 = vrcp.f32 %v662_v58  ;;  %440 = vst [vmem:[#allocation15] sm:$0xf] %v439_v1  ;;  %725 = vmatmul.mubr.bf16.vlgmr.msra.gmra.mrb[8].mxu0 %v439_v1  ;;  %2621 = vmatmul.mubr.bf16.vlgmr.msra.gmra.mrb[8].mxu1 %v439_v1  ;;  %v4517_v58 = vld [vmem:[#allocation34_spill] sm:$0xff] }
 0x19f   :  { %808 = vmatpush1.bf16.msra.mxu0 %v3605_v25  ;;  %2625 = vmatpush3.bf16.msra.mxu1 %v3631_v33  ;;  %2981 = vrcp.f32 %v669_v60  ;;  %v4518_v1 = vld [vmem:[#allocation30_spill] sm:$0xff]  ;;  %v4520_v60 = vld [vmem:[#allocation35_spill] sm:$0xff] }
 0x1a0   :  { %809 = vmatprep.subr.bf16.mxu0 %v3612_v27  ;;  %2626 = vmatprep.subr.bf16.mxu1 %v4514_v19 }
 0x1a1   :  { %839 = vmatprep.mubr.bf16.mxu0 %v4515_v21  ;;  %2640 = vmatprep.mubr.msk.bf16.mxu1 %vm3377_vm0, %v4514_v19 }
 0x1a3   :  { %810 = vmatpush1.bf16.msra.mxu0 %v3616_v29  ;;  %2627 = vmatpush3.bf16.msra.mxu1 %v3642_v36 }
 0x1a4   :  { %811 = vmatprep.subr.bf16.mxu0 %v3623_v31  ;;  %2628 = vmatprep.subr.bf16.mxu1 %v4514_v19 }
 0x1a7   :  { %812 = vmatpush1.bf16.msra.mxu0 %v3628_v32  ;;  %2629 = vmatpush3.bf16.msra.mxu1 %v3654_v39 }
 0x1a8   :  { %v2980_v61 = vpop.eup %2979  ;;  %813 = vmatprep.subr.bf16.mxu0 %v3634_v34  ;;  %2630 = vmatprep.subr.bf16.mxu1 %v4514_v19 }
 0x1a9   :  { %v673_v63 = vmul.f32 %v2980_v61, %v672_v24  ;;  %v2982_v22 = vpop.eup %2981  ;;  %v4521_v24 = vld [vmem:[#allocation33_spill] sm:$0xff] }
 0x1aa   :  { %v676_v0 = vsub.f32 1.0, %v2982_v22  ;;  %v678_v53 = vmul.f32 0.0, %v2982_v22 }
 0x1ab   :  { %v674_v28 = vadd.f32 %v673_v63, %v446_v30  ;;  %814 = vmatpush1.bf16.msra.mxu0 %v3639_v35  ;;  %2631 = vmatpush3.bf16.msra.mxu1 %v3664_v42  ;;  %v685_v30 = vld [vmem:[#allocation4 + $0xc] sm:$0xff] }
 0x1ac   :  { %815 = vmatprep.subr.bf16.mxu0 %v3645_v37  ;;  %2632 = vmatprep.subr.bf16.mxu1 %v4514_v19  ;;  %v687_v61 = vunpack.c.l.bf16 %v685_v30  ;;  %v688_v22 = vunpack.c.h.bf16 %v685_v30 }
 0x1ad   :  { %2983 = vtanh.f32 %v674_v28 }
 0x1af   :  { %816 = vmatpush1.bf16.msra.mxu0 %v3651_v38  ;;  %2633 = vmatpush3.bf16.msra.mxu1 %v3674_v45 }
 0x1b0   :  { %817 = vmatprep.subr.bf16.mxu0 %v3657_v40  ;;  %2634 = vmatprep.subr.bf16.mxu1 %v4514_v19 }
 0x1b3   :  { %818 = vmatpush1.bf16.msra.mxu0 %v3661_v41  ;;  %2635 = vmatpush3.bf16.msra.mxu1 %v3684_v48 }
 0x1b4   :  { %819 = vmatprep.subr.bf16.mxu0 %v3667_v43  ;;  %2636 = vmatprep.subr.bf16.mxu1 %v4514_v19 }
 0x1b7   :  { %v2984_v62 = vpop.eup %2983  ;;  %820 = vmatpush1.bf16.msra.mxu0 %v3671_v44  ;;  %2637 = vmatpush3.bf16.msra.mxu1 %v3690_v49 }
 0x1b8   :  { %821 = vmatprep.subr.bf16.mxu0 %v3677_v46  ;;  %2638 = vmatprep.subr.bf16.mxu1 %v4514_v19  ;;  %v677_v52 = vmul.f32 %v2984_v62, %v676_v0 }
 0x1ba   :  { %v3784_v54 = vadd.f32 %v678_v53, %v677_v52 }
 0x1bb   :  { %822 = vmatpush1.bf16.msra.mxu0 %v3681_v47  ;;  %2639 = vmatpush3.bf16.msra.mxu1 %v3696_v50 }
 0x1bc   :  { %v681_v56 = vpack.c.bf16 %v3784_v54, %v3784_v54  ;;  %922 = vmatprep.subr.bf16.mxu0 %v3534_v2  ;;  %2644 = vmatprep.subr.bf16.mxu1 %v4514_v19 }
 0x1be   :  { %683 = vst [vmem:[#allocation16 + $0x1c] sm:$0xf] %v681_v56  ;;  %840 = vmatmul.mubr.bf16.vlgmr.msra.gmra.mrb[12].mxu0 %v681_v56  ;;  %2641 = vmatmul.mubr.bf16.vlgmr.msra.gmra.mrb[12].mxu1 %v681_v56 }
 0x1bf   :  { %923 = vmatpush1.bf16.msra.mxu0 %v3536_v3  ;;  %2645 = vmatpush3.bf16.msra.mxu1 %v3553_v9 }
 0x1c0   :  { %924 = vmatprep.subr.bf16.mxu0 %v3539_v4  ;;  %2646 = vmatprep.subr.bf16.mxu1 %v4514_v19 }
 0x1c1   :  { %954 = vmatprep.mubr.bf16.mxu0 %v4515_v21  ;;  %2660 = vmatprep.mubr.msk.bf16.mxu1 %vm3377_vm0, %v4514_v19 }
 0x1c3   :  { %925 = vmatpush1.bf16.msra.mxu0 %v3542_v5  ;;  %2647 = vmatpush3.bf16.msra.mxu1 %v3563_v12 }
 0x1c4   :  { %926 = vmatprep.subr.bf16.mxu0 %v3545_v6  ;;  %2648 = vmatprep.subr.bf16.mxu1 %v4514_v19 }
 0x1c7   :  { %927 = vmatpush1.bf16.msra.mxu0 %v3548_v7  ;;  %2649 = vmatpush3.bf16.msra.mxu1 %v3569_v14 }
 0x1c8   :  { %928 = vmatprep.subr.bf16.mxu0 %v3551_v8  ;;  %2650 = vmatprep.subr.bf16.mxu1 %v4514_v19 }
 0x1cb   :  { %929 = vmatpush1.bf16.msra.mxu0 %v3556_v10  ;;  %2651 = vmatpush3.bf16.msra.mxu1 %v3579_v17 }
 0x1cc   :  { %930 = vmatprep.subr.bf16.mxu0 %v3560_v11  ;;  %2652 = vmatprep.subr.bf16.mxu1 %v4514_v19 }
 0x1cf   :  { %931 = vmatpush1.bf16.msra.mxu0 %v3565_v13  ;;  %2653 = vmatpush3.bf16.msra.mxu1 %v3589_v20  ;;  %v4522_v20 = vld [vmem:[#allocation37_spill] sm:$0xff] }
 0x1d0   :  { %932 = vmatprep.subr.bf16.mxu0 %v3572_v15  ;;  %2654 = vmatprep.subr.bf16.mxu1 %v4514_v19  ;;  %v800_v15 = vld [vmem:[#allocation7 + $0x48] sm:$0xff]  ;;  %v689_v30 = vunpack.c.h.bf16 %v4522_v20 }
 0x1d3   :  { %933 = vmatpush1.bf16.msra.mxu0 %v3576_v16  ;;  %2655 = vmatpush3.bf16.msra.mxu1 %v3599_v23 }
 0x1d4   :  { %934 = vmatprep.subr.bf16.mxu0 %v3582_v18  ;;  %2656 = vmatprep.subr.bf16.mxu1 %v4514_v19 }
 0x1d7   :  { %935 = vmatpush1.bf16.msra.mxu0 %v4516_v57  ;;  %2657 = vmatpush3.bf16.msra.mxu1 %v4517_v58 }
 0x1d8   :  { %936 = vmatprep.subr.bf16.mxu0 %v4518_v1  ;;  %2658 = vmatprep.subr.bf16.mxu1 %v4514_v19 }
 0x1db   :  { %937 = vmatpush1.bf16.msra.mxu0 %v4519_v26  ;;  %2659 = vmatpush3.bf16.msra.mxu1 %v4520_v60 }
 0x1dc   :  { %1037 = vmatprep.subr.bf16.mxu0 %v4521_v24  ;;  %2664 = vmatprep.subr.bf16.mxu1 %v4514_v19 }
 0x271   :  { %v726_v63 = vpop.f32.mrb[8].mxu0  ;;  %v767_v28 = vpop.f32.mrb[8].mxu1 }
 0x272   :  { %v773_v0 = vadd.f32 %v726_v63, %v687_v61  ;;  %v728_v62 = vpop.f32.mrb[9].mxu0  ;;  %v2622_v52 = vpop.f32.mrb[9].mxu1  ;;  %v4523_v61 = vld [vmem:[#allocation36_spill] sm:$0xff] }
 0x273   :  { %v730_v53 = vpop.f32.mrb[10].mxu0  ;;  %v770_v56 = vpop.f32.mrb[10].mxu1  ;;  %v780_v26 = vadd.f32 %v728_v62, %v688_v22  ;;  %v787_v63 = vadd.f32 %v4523_v61, %v767_v28 }
 0x274   :  { %v2392_v1 = vmul.f32 -1.442695, %v773_v0  ;;  %v731_v58 = vpop.f32.mrb[11].mxu0  ;;  %v2623_v57 = vpop.f32.mrb[11].mxu1  ;;  %v802_v0 = vunpack.c.l.bf16 %v800_v15 }
 0x275   :  { %v2393_v60 = vmul.f32 -1.442695, %v780_v26 }
 0x276   :  { %2985 = vpow2.f32 %v2392_v1  ;;  %v803_v1 = vunpack.c.h.bf16 %v800_v15 }
 0x277   :  { %2987 = vpow2.f32 %v2393_v60 }
 0x280   :  { %v2986_v24 = vpop.eup %2985 }
 0x281   :  { %v777_v18 = vadd.f32 1.0, %v2986_v24  ;;  %v2988_v23 = vpop.eup %2987 }
 0x282   :  { %v784_v16 = vadd.f32 1.0, %v2988_v23 }
 0x283   :  { %2989 = vrcp.f32 %v777_v18 }
 0x284   :  { %2991 = vrcp.f32 %v784_v16 }
 0x28d   :  { %v2990_v52 = vpop.eup %2989 }
 0x28e   :  { %v788_v53 = vmul.f32 %v2990_v52, %v787_v63  ;;  %v2992_v28 = vpop.eup %2991 }
 0x28f   :  { %v791_v63 = vsub.f32 1.0, %v2992_v28  ;;  %v793_v52 = vmul.f32 %v2992_v28, %v3743_v55 }
 0x290   :  { %v789_v58 = vadd.f32 %v788_v53, %v689_v30 }
 0x291   :  { %v841_v57 = vpop.f32.mrb[12].mxu0  ;;  %v882_v22 = vpop.f32.mrb[12].mxu1 }
 0x292   :  { %2993 = vtanh.f32 %v789_v58  ;;  %v888_v26 = vadd.f32 %v841_v57, %v802_v0  ;;  %v843_v60 = vpop.f32.mrb[13].mxu0  ;;  %v2642_v24 = vpop.f32.mrb[13].mxu1  ;;  %v902_v57 = vadd.f32 %v3754_v51, %v882_v22 }
 0x293   :  { %v845_v18 = vpop.f32.mrb[14].mxu0  ;;  %v885_v62 = vpop.f32.mrb[14].mxu1  ;;  %v895_v20 = vadd.f32 %v843_v60, %v803_v1 }
 0x294   :  { %v2394_v23 = vmul.f32 -1.442695, %v888_v26  ;;  %v846_v56 = vpop.f32.mrb[15].mxu0  ;;  %v2643_v13 = vpop.f32.mrb[15].mxu1 }
 0x295   :  { %v2395_v61 = vmul.f32 -1.442695, %v895_v20 }
 0x296   :  { %2995 = vpow2.f32 %v2394_v23 }
 0x297   :  { %2997 = vpow2.f32 %v2395_v61  ;;  %v804_v61 = vunpack.c.l.bf16 %v3758_v59 }
 0x29c   :  { %v2994_v16 = vpop.eup %2993 }
 0x29d   :  { %v792_v30 = vmul.f32 %v2994_v16, %v791_v63 }
 0x29f   :  { %v3830_v15 = vadd.f32 %v793_v52, %v792_v30 }
 0x2a0   :  { %v2996_v53 = vpop.eup %2995 }
 0x2a1   :  { %v892_v0 = vadd.f32 1.0, %v2996_v53  ;;  %v796_v58 = vpack.c.bf16 %v3830_v15, %v3830_v15  ;;  %v2998_v13 = vpop.eup %2997 }
 0x2a2   :  { %v899_v55 = vadd.f32 1.0, %v2998_v13 }
 0x2a3   :  { %2999 = vrcp.f32 %v892_v0  ;;  %798 = vst [vmem:[#allocation15 + $0x4] sm:$0xf] %v796_v58  ;;  %955 = vmatmul.mubr.bf16.vlgmr.msra.gmra.mrb[16].mxu0 %v796_v58  ;;  %2661 = vmatmul.mubr.bf16.vlgmr.msra.gmra.mrb[16].mxu1 %v796_v58 }
 0x2a4   :  { %1038 = vmatpush1.bf16.msra.mxu0 %v3605_v25  ;;  %2665 = vmatpush3.bf16.msra.mxu1 %v3631_v33  ;;  %3001 = vrcp.f32 %v899_v55 }
 0x2a5   :  { %1039 = vmatprep.subr.bf16.mxu0 %v3612_v27  ;;  %2666 = vmatprep.subr.bf16.mxu1 %v4514_v19 }
 0x2a6   :  { %1069 = vmatprep.mubr.bf16.mxu0 %v4515_v21  ;;  %2680 = vmatprep.mubr.msk.bf16.mxu1 %vm3377_vm0, %v4514_v19 }
 0x2a8   :  { %1040 = vmatpush1.bf16.msra.mxu0 %v3616_v29  ;;  %2667 = vmatpush3.bf16.msra.mxu1 %v3642_v36 }
 0x2a9   :  { %1041 = vmatprep.subr.bf16.mxu0 %v3623_v31  ;;  %2668 = vmatprep.subr.bf16.mxu1 %v4514_v19 }
 0x2ac   :  { %1042 = vmatpush1.bf16.msra.mxu0 %v3628_v32  ;;  %2669 = vmatpush3.bf16.msra.mxu1 %v3654_v39 }
 0x2ad   :  { %v3000_v1 = vpop.eup %2999  ;;  %1043 = vmatprep.subr.bf16.mxu0 %v3634_v34  ;;  %2670 = vmatprep.subr.bf16.mxu1 %v4514_v19 }
 0x2ae   :  { %v903_v26 = vmul.f32 %v3000_v1, %v902_v57  ;;  %v3002_v59 = vpop.eup %3001 }
 0x2af   :  { %v906_v22 = vsub.f32 1.0, %v3002_v59  ;;  %v908_v62 = vmul.f32 %v3002_v59, %v3784_v54  ;;  %v3911_v59 = vld [vmem:[#allocation4 + $0x20] ss:$12 sps:$4 sm:$0xff]  }
 0x2b0   :  { %v904_v60 = vadd.f32 %v903_v26, %v804_v61  ;;  %1044 = vmatpush1.bf16.msra.mxu0 %v3639_v35  ;;  %2671 = vmatpush3.bf16.msra.mxu1 %v3664_v42 }
 0x2b1   :  { %1045 = vmatprep.subr.bf16.mxu0 %v3645_v37  ;;  %2672 = vmatprep.subr.bf16.mxu1 %v4514_v19 }
 0x2b2   :  { %3003 = vtanh.f32 %v904_v60 }
 0x2b4   :  { %1046 = vmatpush1.bf16.msra.mxu0 %v3651_v38  ;;  %2673 = vmatpush3.bf16.msra.mxu1 %v3674_v45 }
 0x2b5   :  { %1047 = vmatprep.subr.bf16.mxu0 %v3657_v40  ;;  %2674 = vmatprep.subr.bf16.mxu1 %v4514_v19 }
 0x2b8   :  { %1048 = vmatpush1.bf16.msra.mxu0 %v3661_v41  ;;  %2675 = vmatpush3.bf16.msra.mxu1 %v3684_v48 }
 0x2b9   :  { %1049 = vmatprep.subr.bf16.mxu0 %v3667_v43  ;;  %2676 = vmatprep.subr.bf16.mxu1 %v4514_v19 }
 0x2bc   :  { %v3004_v24 = vpop.eup %3003  ;;  %1050 = vmatpush1.bf16.msra.mxu0 %v3671_v44  ;;  %2677 = vmatpush3.bf16.msra.mxu1 %v3690_v49 }
 0x2bd   :  { %1051 = vmatprep.subr.bf16.mxu0 %v3677_v46  ;;  %2678 = vmatprep.subr.bf16.mxu1 %v4514_v19  ;;  %v907_v18 = vmul.f32 %v3004_v24, %v906_v22  ;;  %v1030_v24 = vld [vmem:[#allocation7 + $0x3c] sm:$0xff] }
 0x2bf   :  { %v3868_v23 = vadd.f32 %v908_v62, %v907_v18  ;;  %v919_v18 = vunpack.c.l.bf16 %v3911_v59  ;;  %v4536_v62 = vld [vmem:[#allocation36_spill] sm:$0xff] }
 0x2c0   :  { %1052 = vmatpush1.bf16.msra.mxu0 %v3681_v47  ;;  %2679 = vmatpush3.bf16.msra.mxu1 %v3696_v50 }
 0x2c1   :  { %v911_v56 = vpack.c.bf16 %v3868_v23, %v3868_v23  ;;  %1152 = vmatprep.subr.bf16.mxu0 %v3534_v2  ;;  %2684 = vmatprep.subr.bf16.mxu1 %v4514_v19  ;;  %v4524_v2 = vld [vmem:[#allocation24_spill] sm:$0xff] }
 0x2c3   :  { %913 = vst [vmem:[#allocation16 + $0x18] sm:$0xf] %v911_v56  ;;  %1070 = vmatmul.mubr.bf16.vlgmr.msra.gmra.mrb[20].mxu0 %v911_v56  ;;  %2681 = vmatmul.mubr.bf16.vlgmr.msra.gmra.mrb[20].mxu1 %v911_v56 }
 0x2c4   :  { %1153 = vmatpush1.bf16.msra.mxu0 %v3536_v3  ;;  %2685 = vmatpush3.bf16.msra.mxu1 %v3553_v9  ;;  %v4525_v3 = vld [vmem:[#allocation29_spill] sm:$0xff]  ;;  %v4531_v9 = vld [vmem:[#allocation34_spill] sm:$0xff] }
 0x2c5   :  { %1154 = vmatprep.subr.bf16.mxu0 %v3539_v4  ;;  %2686 = vmatprep.subr.bf16.mxu1 %v4514_v19  ;;  %v4526_v4 = vld [vmem:[#allocation25_spill] sm:$0xff] }
 0x2c6   :  { %1184 = vmatprep.mubr.bf16.mxu0 %v4515_v21  ;;  %2700 = vmatprep.mubr.msk.bf16.mxu1 %vm3377_vm0, %v4514_v19 }
 0x2c8   :  { %1155 = vmatpush1.bf16.msra.mxu0 %v3542_v5  ;;  %2687 = vmatpush3.bf16.msra.mxu1 %v3563_v12  ;;  %v4527_v5 = vld [vmem:[#allocation26_spill] sm:$0xff]  ;;  %v4534_v12 = vld [vmem:[#allocation35_spill] sm:$0xff] }
 0x2c9   :  { %1156 = vmatprep.subr.bf16.mxu0 %v3545_v6  ;;  %2688 = vmatprep.subr.bf16.mxu1 %v4514_v19  ;;  %v4528_v6 = vld [vmem:[#allocation32_spill] sm:$0xff] }
 0x2cc   :  { %1157 = vmatpush1.bf16.msra.mxu0 %v3548_v7  ;;  %2689 = vmatpush3.bf16.msra.mxu1 %v3569_v14  ;;  %v4529_v7 = vld [vmem:[#allocation27_spill] sm:$0xff]  ;;  %v4535_v14 = vld [vmem:[#allocation33_spill] sm:$0xff] }
 0x2cd   :  { %1158 = vmatprep.subr.bf16.mxu0 %v3551_v8  ;;  %2690 = vmatprep.subr.bf16.mxu1 %v4514_v19  ;;  %v4530_v8 = vld [vmem:[#allocation28_spill] sm:$0xff] }
 0x2d0   :  { %1159 = vmatpush1.bf16.msra.mxu0 %v3556_v10  ;;  %2691 = vmatpush3.bf16.msra.mxu1 %v3579_v17  ;;  %v4532_v10 = vld [vmem:[#allocation30_spill] sm:$0xff] }
 0x2d1   :  { %1160 = vmatprep.subr.bf16.mxu0 %v3560_v11  ;;  %2692 = vmatprep.subr.bf16.mxu1 %v4514_v19  ;;  %v4533_v11 = vld [vmem:[#allocation31_spill] sm:$0xff] }
 0x2d2   :  { %v915_v17 = vld [vmem:[#allocation4 + $0x18] sm:$0xff] }
 0x2d3   :  { %v917_v54 = vunpack.c.l.bf16 %v915_v17  ;;  %v918_v63 = vunpack.c.h.bf16 %v915_v17 }
 0x2d4   :  { %1161 = vmatpush1.bf16.msra.mxu0 %v4524_v2  ;;  %2693 = vmatpush3.bf16.msra.mxu1 %v4525_v3 }
 0x2d5   :  { %1162 = vmatprep.subr.bf16.mxu0 %v4526_v4  ;;  %2694 = vmatprep.subr.bf16.mxu1 %v4514_v19  ;;  %v1032_v4 = vunpack.c.l.bf16 %v1030_v24 }
 0x2d8   :  { %1163 = vmatpush1.bf16.msra.mxu0 %v4527_v5  ;;  %2695 = vmatpush3.bf16.msra.mxu1 %v4528_v6 }
 0x2d9   :  { %1164 = vmatprep.subr.bf16.mxu0 %v4529_v7  ;;  %2696 = vmatprep.subr.bf16.mxu1 %v4514_v19 }
 0x2dc   :  { %1165 = vmatpush1.bf16.msra.mxu0 %v4530_v8  ;;  %2697 = vmatpush3.bf16.msra.mxu1 %v4531_v9  ;;  %v1033_v8 = vunpack.c.h.bf16 %v1030_v24  ;;  %v4015_v24 = vld [vmem:[#allocation9 + $0x7c] ss:$12 sps:$4 sm:$0xff]  }
 0x2dd   :  { %1166 = vmatprep.subr.bf16.mxu0 %v4532_v10  ;;  %2698 = vmatprep.subr.bf16.mxu1 %v4514_v19  ;;  %4539 = vst [vmem:[#allocation29_spill] sm:$0xff] %v4015_v24 }
 0x2e0   :  { %1167 = vmatpush1.bf16.msra.mxu0 %v4533_v11  ;;  %2699 = vmatpush3.bf16.msra.mxu1 %v4534_v12 }
 0x2e1   :  { %1267 = vmatprep.subr.bf16.mxu0 %v4535_v14  ;;  %2704 = vmatprep.subr.bf16.mxu1 %v4514_v19 }
 0x376   :  { %v956_v20 = vpop.f32.mrb[16].mxu0  ;;  %v997_v28 = vpop.f32.mrb[16].mxu1 }
 0x377   :  { %v1003_v16 = vadd.f32 %v956_v20, %v917_v54  ;;  %v958_v30 = vpop.f32.mrb[17].mxu0  ;;  %v2662_v52 = vpop.f32.mrb[17].mxu1  ;;  %v1017_v56 = vadd.f32 %v4536_v62, %v997_v28 }
 0x378   :  { %v960_v53 = vpop.f32.mrb[18].mxu0  ;;  %v1000_v0 = vpop.f32.mrb[18].mxu1  ;;  %v1010_v61 = vadd.f32 %v958_v30, %v918_v63 }
 0x379   :  { %v2396_v58 = vmul.f32 -1.442695, %v1003_v16  ;;  %v961_v13 = vpop.f32.mrb[19].mxu0  ;;  %v2663_v55 = vpop.f32.mrb[19].mxu1 }
 0x37a   :  { %v2397_v57 = vmul.f32 -1.442695, %v1010_v61 }
 0x37b   :  { %3005 = vpow2.f32 %v2396_v58 }
 0x37c   :  { %3007 = vpow2.f32 %v2397_v57  ;;  %v3929_v57 = vld [vmem:[#allocation7 + $0x38] ss:$12 sps:$4 sm:$0xff]  }
 0x385   :  { %v3006_v1 = vpop.eup %3005 }
 0x386   :  { %v1007_v26 = vadd.f32 1.0, %v3006_v1  ;;  %v3008_v60 = vpop.eup %3007 }
 0x387   :  { %v1014_v22 = vadd.f32 1.0, %v3008_v60  ;;  %v4009_v60 = vld [vmem:[#allocation9 + $0x60] ss:$12 sps:$4 sm:$0xff]  }
 0x388   :  { %3009 = vrcp.f32 %v1007_v26  ;;  %v4005_v26 = vld [vmem:[#allocation9 + $0x64] ss:$12 sps:$4 sm:$0xff]   ;;  %4537 = vst [vmem:[#allocation37_spill] sm:$0xff] %v4009_v60 }
 0x389   :  { %3011 = vrcp.f32 %v1014_v22  ;;  %v4012_v22 = vld [vmem:[#allocation9 + $0x68] ss:$12 sps:$4 sm:$0xff]  }
 0x38a   :  { %4538 = vst [vmem:[#allocation24_spill] sm:$0xff] %v4012_v22 }
 0x392   :  { %v3010_v2 = vpop.eup %3009 }
 0x393   :  { %v1018_v3 = vmul.f32 %v3010_v2, %v1017_v56  ;;  %v3012_v28 = vpop.eup %3011  ;;  %v4022_v56 = vld [vmem:[#allocation9 + $0x80] ss:$12 sps:$4 sm:$0xff]  }
 0x394   :  { %v1021_v30 = vsub.f32 1.0, %v3012_v28  ;;  %v1023_v0 = vmul.f32 %v3012_v28, %v3830_v15  ;;  %4541 = vst [vmem:[#allocation26_spill] sm:$0xff] %v4022_v56  ;;  %v4025_v2 = vld [vmem:[#allocation9 + $0x94] ss:$12 sps:$4 sm:$0xff]  }
 0x395   :  { %v1019_v5 = vadd.f32 %v1018_v3, %v919_v18  ;;  %v4019_v18 = vld [vmem:[#allocation9 + $0x78] ss:$12 sps:$4 sm:$0xff]   ;;  %4542 = vst [vmem:[#allocation32_spill] sm:$0xff] %v4025_v2  ;;  %v4029_v3 = vld [vmem:[#allocation9 + $0x90] ss:$12 sps:$4 sm:$0xff]  }
 0x396   :  { %v1071_v6 = vpop.f32.mrb[20].mxu0  ;;  %v1112_v7 = vpop.f32.mrb[20].mxu1  ;;  %4540 = vst [vmem:[#allocation25_spill] sm:$0xff] %v4019_v18  ;;  %4543 = vst [vmem:[#allocation27_spill] sm:$0xff] %v4029_v3 }
 0x397   :  { %3013 = vtanh.f32 %v1019_v5  ;;  %v1118_v9 = vadd.f32 %v1071_v6, %v1032_v4  ;;  %v1073_v10 = vpop.f32.mrb[21].mxu0  ;;  %v2682_v11 = vpop.f32.mrb[21].mxu1  ;;  %v4032_v4 = vld [vmem:[#allocation9 + $0x98] ss:$12 sps:$4 sm:$0xff]   ;;  %v4039_v6 = vld [vmem:[#allocation9 + $0xa8] ss:$12 sps:$4 sm:$0xff]  }
 0x398   :  { %v1075_v12 = vpop.f32.mrb[22].mxu0  ;;  %v1115_v14 = vpop.f32.mrb[22].mxu1  ;;  %v1125_v63 = vadd.f32 %v1073_v10, %v1033_v8  ;;  %4544 = vst [vmem:[#allocation28_spill] sm:$0xff] %v4032_v4  ;;  %v4035_v5 = vld [vmem:[#allocation9 + $0xac] ss:$12 sps:$4 sm:$0xff]   ;;  %4546 = vst [vmem:[#allocation30_spill] sm:$0xff] %v4039_v6 }
 0x399   :  { %v2398_v17 = vmul.f32 -1.442695, %v1118_v9  ;;  %v1076_v54 = vpop.f32.mrb[23].mxu0  ;;  %v2683_v20 = vpop.f32.mrb[23].mxu1  ;;  %4545 = vst [vmem:[#allocation34_spill] sm:$0xff] %v4035_v5  ;;  %v1145_v9 = vld [vmem:[#allocation4 + $0x24] sm:$0xff] }
 0x39a   :  { %v2399_v16 = vmul.f32 -1.442695, %v1125_v63  ;;  %v4045_v8 = vld [vmem:[#allocation10 + $0x4] ss:$12 sps:$4 sm:$0xff]   ;;  %v1147_v10 = vunpack.c.l.bf16 %v1145_v9  ;;  %v1148_v14 = vunpack.c.h.bf16 %v1145_v9 }
 0x39b   :  { %3015 = vpow2.f32 %v2398_v17  ;;  %4548 = vst [vmem:[#allocation35_spill] sm:$0xff] %v4045_v8 }
 0x39c   :  { %3017 = vpow2.f32 %v2399_v16 }
 0x3a1   :  { %v3014_v52 = vpop.eup %3013 }
 0x3a2   :  { %v1022_v53 = vmul.f32 %v3014_v52, %v1021_v30 }
 0x3a4   :  { %v3916_v58 = vadd.f32 %v1023_v0, %v1022_v53 }
 0x3a5   :  { %v3016_v13 = vpop.eup %3015 }
 0x3a6   :  { %v1122_v55 = vadd.f32 1.0, %v3016_v13  ;;  %v1026_v61 = vpack.c.bf16 %v3916_v58, %v3916_v58  ;;  %v3018_v15 = vpop.eup %3017 }
 0x3a8   :  { %3019 = vrcp.f32 %v1122_v55  ;;  %1028 = vst [vmem:[#allocation15 + $0x8] sm:$0xf] %v1026_v61  ;;  %1185 = vmatmul.mubr.bf16.vlgmr.msra.gmra.mrb[24].mxu0 %v1026_v61  ;;  %2701 = vmatmul.mubr.bf16.vlgmr.msra.gmra.mrb[24].mxu1 %v1026_v61 }
 0x3a9   :  { %1268 = vmatpush1.bf16.msra.mxu0 %v3605_v25  ;;  %2705 = vmatpush3.bf16.msra.mxu1 %v3631_v33  ;;  %v1129_v25 = vadd.f32 1.0, %v3018_v15  ;;  %v1132_v33 = vadd.f32 %v3754_v51, %v1112_v7  ;;  %v4042_v7 = vld [vmem:[#allocation9 + $0xb0] ss:$12 sps:$4 sm:$0xff]  }
 0x3aa   :  { %1269 = vmatprep.subr.bf16.mxu0 %v3612_v27  ;;  %2706 = vmatprep.subr.bf16.mxu1 %v4514_v19  ;;  %v1034_v27 = vunpack.c.h.bf16 %v3929_v57  ;;  %4547 = vst [vmem:[#allocation31_spill] sm:$0xff] %v4042_v7 }
 0x3ab   :  { %1299 = vmatprep.mubr.bf16.mxu0 %v4515_v21  ;;  %2720 = vmatprep.mubr.msk.bf16.mxu1 %vm3377_vm0, %v4514_v19  ;;  %3021 = vrcp.f32 %v1129_v25  ;;  %v1260_v25 = vld [vmem:[#allocation7 + $0x30] sm:$0xff] }
 0x3ad   :  { %1270 = vmatpush1.bf16.msra.mxu0 %v3616_v29  ;;  %2707 = vmatpush3.bf16.msra.mxu1 %v3642_v36 }
 0x3ae   :  { %1271 = vmatprep.subr.bf16.mxu0 %v3623_v31  ;;  %2708 = vmatprep.subr.bf16.mxu1 %v4514_v19 }
 0x3b1   :  { %1272 = vmatpush1.bf16.msra.mxu0 %v3628_v32  ;;  %2709 = vmatpush3.bf16.msra.mxu1 %v3654_v39 }
 0x3b2   :  { %v3020_v1 = vpop.eup %3019  ;;  %1273 = vmatprep.subr.bf16.mxu0 %v3634_v34  ;;  %2710 = vmatprep.subr.bf16.mxu1 %v4514_v19 }
 0x3b3   :  { %v1133_v29 = vmul.f32 %v3020_v1, %v1132_v33 }
 0x3b5   :  { %v1134_v36 = vadd.f32 %v1133_v29, %v1034_v27  ;;  %1274 = vmatpush1.bf16.msra.mxu0 %v3639_v35  ;;  %2711 = vmatpush3.bf16.msra.mxu1 %v3664_v42  ;;  %v3022_v31 = vpop.eup %3021  ;;  %v3969_v42 = vld [vmem:[#allocation9 + $0x8] ss:$12 sps:$4 sm:$0xff]   ;;  %v1149_v27 = vunpack.c.h.bf16 %v3911_v59 }
 0x3b6   :  { %1275 = vmatprep.subr.bf16.mxu0 %v3645_v37  ;;  %2712 = vmatprep.subr.bf16.mxu1 %v4514_v19  ;;  %v1136_v32 = vsub.f32 1.0, %v3022_v31  ;;  %v1138_v37 = vmul.f32 %v3022_v31, %v3868_v23  ;;  %v4002_v23 = vld [vmem:[#allocation9 + $0x50] ss:$12 sps:$4 sm:$0xff]  }
 0x3b7   :  { %3023 = vtanh.f32 %v1134_v36  ;;  %v1262_v36 = vunpack.c.l.bf16 %v1260_v25 }
 0x3b9   :  { %1276 = vmatpush1.bf16.msra.mxu0 %v3651_v38  ;;  %2713 = vmatpush3.bf16.msra.mxu1 %v3674_v45  ;;  %v3982_v45 = vld [vmem:[#allocation9 + $0x20] ss:$12 sps:$4 sm:$0xff]  }
 0x3ba   :  { %1277 = vmatprep.subr.bf16.mxu0 %v3657_v40  ;;  %2714 = vmatprep.subr.bf16.mxu1 %v4514_v19  ;;  %v3962_v40 = vld [vmem:[#allocation9 + $0x4] ss:$12 sps:$4 sm:$0xff]  }
 0x3bd   :  { %1278 = vmatpush1.bf16.msra.mxu0 %v3661_v41  ;;  %2715 = vmatpush3.bf16.msra.mxu1 %v3684_v48  ;;  %v3966_v41 = vld [vmem:[#allocation9] ss:$12 sps:$4 sm:$0xff]   ;;  %v3992_v48 = vld [vmem:[#allocation9 + $0x38] ss:$12 sps:$4 sm:$0xff]  }
 0x3be   :  { %1279 = vmatprep.subr.bf16.mxu0 %v3667_v43  ;;  %2716 = vmatprep.subr.bf16.mxu1 %v4514_v19  ;;  %v3972_v43 = vld [vmem:[#allocation9 + $0x1c] ss:$12 sps:$4 sm:$0xff]  }
 0x3c1   :  { %v3024_v34 = vpop.eup %3023  ;;  %1280 = vmatpush1.bf16.msra.mxu0 %v3671_v44  ;;  %2717 = vmatpush3.bf16.msra.mxu1 %v3690_v49  ;;  %v3979_v44 = vld [vmem:[#allocation9 + $0x18] ss:$12 sps:$4 sm:$0xff]  }
 0x3c2   :  { %1281 = vmatprep.subr.bf16.mxu0 %v3677_v46  ;;  %2718 = vmatprep.subr.bf16.mxu1 %v4514_v19  ;;  %v1137_v35 = vmul.f32 %v3024_v34, %v1136_v32  ;;  %v3985_v46 = vld [vmem:[#allocation9 + $0x34] ss:$12 sps:$4 sm:$0xff]   ;;  %v3995_v49 = vld [vmem:[#allocation9 + $0x4c] ss:$12 sps:$4 sm:$0xff]  }
 0x3c4   :  { %v3956_v38 = vadd.f32 %v1138_v37, %v1137_v35  ;;  %v1263_v35 = vunpack.c.h.bf16 %v1260_v25  ;;  %v4072_v25 = vld [vmem:[#allocation10 + $0x20] ss:$12 sps:$4 sm:$0xff]  }
 0x3c5   :  { %1282 = vmatpush1.bf16.msra.mxu0 %v3681_v47  ;;  %2719 = vmatpush3.bf16.msra.mxu1 %v3696_v50  ;;  %v3989_v47 = vld [vmem:[#allocation9 + $0x30] ss:$12 sps:$4 sm:$0xff]   ;;  %v3999_v50 = vld [vmem:[#allocation9 + $0x48] ss:$12 sps:$4 sm:$0xff]  }
 0x3c6   :  { %v1141_v39 = vpack.c.bf16 %v3956_v38, %v3956_v38  ;;  %1382 = vmatprep.subr.bf16.mxu0 %v3962_v40  ;;  %2724 = vmatprep.subr.bf16.mxu1 %v4514_v19 }
 0x3c8   :  { %1143 = vst [vmem:[#allocation16 + $0x14] sm:$0xf] %v1141_v39  ;;  %1300 = vmatmul.mubr.bf16.vlgmr.msra.gmra.mrb[28].mxu0 %v1141_v39  ;;  %2721 = vmatmul.mubr.bf16.vlgmr.msra.gmra.mrb[28].mxu1 %v1141_v39 }
 0x3c9   :  { %1383 = vmatpush1.bf16.msra.mxu0 %v3966_v41  ;;  %2725 = vmatpush3.bf16.msra.mxu1 %v3969_v42 }
 0x3ca   :  { %1384 = vmatprep.subr.bf16.mxu0 %v3972_v43  ;;  %2726 = vmatprep.subr.bf16.mxu1 %v4514_v19 }
 0x3cb   :  { %1414 = vmatprep.mubr.bf16.mxu0 %v4515_v21  ;;  %2740 = vmatprep.mubr.msk.bf16.mxu1 %vm3377_vm0, %v4514_v19 }
 0x3cd   :  { %1385 = vmatpush1.bf16.msra.mxu0 %v3979_v44  ;;  %2727 = vmatpush3.bf16.msra.mxu1 %v3982_v45 }
 0x3ce   :  { %1386 = vmatprep.subr.bf16.mxu0 %v3985_v46  ;;  %2728 = vmatprep.subr.bf16.mxu1 %v4514_v19 }
 0x3d1   :  { %1387 = vmatpush1.bf16.msra.mxu0 %v3989_v47  ;;  %2729 = vmatpush3.bf16.msra.mxu1 %v3992_v48 }
 0x3d2   :  { %1388 = vmatprep.subr.bf16.mxu0 %v3995_v49  ;;  %2730 = vmatprep.subr.bf16.mxu1 %v4514_v19 }
 0x3d5   :  { %1389 = vmatpush1.bf16.msra.mxu0 %v3999_v50  ;;  %2731 = vmatpush3.bf16.msra.mxu1 %v4002_v23 }
 0x3d6   :  { %1390 = vmatprep.subr.bf16.mxu0 %v4005_v26  ;;  %2732 = vmatprep.subr.bf16.mxu1 %v4514_v19 }
 0x3d9   :  { %1391 = vmatpush1.bf16.msra.mxu0 %v4009_v60  ;;  %2733 = vmatpush3.bf16.msra.mxu1 %v4012_v22 }
 0x3da   :  { %1392 = vmatprep.subr.bf16.mxu0 %v4015_v24  ;;  %2734 = vmatprep.subr.bf16.mxu1 %v4514_v19 }
 0x3dd   :  { %1393 = vmatpush1.bf16.msra.mxu0 %v4019_v18  ;;  %2735 = vmatpush3.bf16.msra.mxu1 %v4022_v56 }
 0x3de   :  { %1394 = vmatprep.subr.bf16.mxu0 %v4025_v2  ;;  %2736 = vmatprep.subr.bf16.mxu1 %v4514_v19 }
 0x3e1   :  { %1395 = vmatpush1.bf16.msra.mxu0 %v4029_v3  ;;  %2737 = vmatpush3.bf16.msra.mxu1 %v4032_v4 }
 0x3e2   :  { %1396 = vmatprep.subr.bf16.mxu0 %v4035_v5  ;;  %2738 = vmatprep.subr.bf16.mxu1 %v4514_v19 }
 0x3e5   :  { %1397 = vmatpush1.bf16.msra.mxu0 %v4039_v6  ;;  %2739 = vmatpush3.bf16.msra.mxu1 %v4042_v7 }
 0x3e6   :  { %1497 = vmatprep.subr.bf16.mxu0 %v4045_v8  ;;  %2744 = vmatprep.subr.bf16.mxu1 %v4514_v19 }
 0x47b   :  { %v1186_v11 = vpop.f32.mrb[24].mxu0  ;;  %v1227_v12 = vpop.f32.mrb[24].mxu1 }
 0x47c   :  { %v1233_v17 = vadd.f32 %v1186_v11, %v1147_v10  ;;  %v1188_v54 = vpop.f32.mrb[25].mxu0  ;;  %v2702_v20 = vpop.f32.mrb[25].mxu1  ;;  %v1247_v33 = vadd.f32 %v4536_v62, %v1227_v12 }
 0x47d   :  { %v1190_v63 = vpop.f32.mrb[26].mxu0  ;;  %v1230_v28 = vpop.f32.mrb[26].mxu1  ;;  %v1240_v53 = vadd.f32 %v1188_v54, %v1148_v14 }
 0x47e   :  { %v2400_v16 = vmul.f32 -1.442695, %v1233_v17  ;;  %v1191_v30 = vpop.f32.mrb[27].mxu0  ;;  %v2703_v52 = vpop.f32.mrb[27].mxu1 }
 0x47f   :  { %v2401_v0 = vmul.f32 -1.442695, %v1240_v53 }
 0x480   :  { %3025 = vpow2.f32 %v2400_v16 }
 0x481   :  { %3027 = vpow2.f32 %v2401_v0 }
 0x48a   :  { %v3026_v13 = vpop.eup %3025 }
 0x48b   :  { %v1237_v55 = vadd.f32 1.0, %v3026_v13  ;;  %v3028_v61 = vpop.eup %3027  ;;  %v4056_v13 = vld [vmem:[#allocation10] ss:$12 sps:$4 sm:$0xff]  }
 0x48c   :  { %v1244_v15 = vadd.f32 1.0, %v3028_v61 }
 0x48d   :  { %3029 = vrcp.f32 %v1237_v55  ;;  %v4059_v55 = vld [vmem:[#allocation10 + $0x8] ss:$12 sps:$4 sm:$0xff]  }
 0x48e   :  { %3031 = vrcp.f32 %v1244_v15  ;;  %v4069_v15 = vld [vmem:[#allocation10 + $0x18] ss:$12 sps:$4 sm:$0xff]  }
 0x497   :  { %v3030_v1 = vpop.eup %3029 }
 0x498   :  { %v1248_v29 = vmul.f32 %v3030_v1, %v1247_v33  ;;  %v3032_v62 = vpop.eup %3031  ;;  %v1264_v1 = vunpack.c.l.bf16 %v3929_v57 }
 0x499   :  { %v1251_v20 = vsub.f32 1.0, %v3032_v62  ;;  %v1253_v16 = vmul.f32 %v3032_v62, %v3916_v58  ;;  %v4062_v58 = vld [vmem:[#allocation10 + $0x1c] ss:$12 sps:$4 sm:$0xff]  }
 0x49a   :  { %v1249_v31 = vadd.f32 %v1248_v29, %v1149_v27  ;;  %v4075_v27 = vld [vmem:[#allocation10 + $0x34] ss:$12 sps:$4 sm:$0xff]  }
 0x49b   :  { %v1301_v32 = vpop.f32.mrb[28].mxu0  ;;  %v1342_v34 = vpop.f32.mrb[28].mxu1 }
 0x49c   :  { %3033 = vtanh.f32 %v1249_v31  ;;  %v1348_v37 = vadd.f32 %v1301_v32, %v1262_v36  ;;  %v1303_v39 = vpop.f32.mrb[29].mxu0  ;;  %v2722_v9 = vpop.f32.mrb[29].mxu1  ;;  %v1362_v29 = vadd.f32 %v3754_v51, %v1342_v34  ;;  %v4081_v36 = vld [vmem:[#allocation10 + $0x30] ss:$12 sps:$4 sm:$0xff]   ;;  %v4084_v31 = vld [vmem:[#allocation10 + $0x38] ss:$12 sps:$4 sm:$0xff]  }
 0x49d   :  { %v1305_v10 = vpop.f32.mrb[30].mxu0  ;;  %v1345_v11 = vpop.f32.mrb[30].mxu1  ;;  %v1355_v59 = vadd.f32 %v1303_v39, %v1263_v35  ;;  %v4087_v35 = vld [vmem:[#allocation10 + $0x4c] ss:$12 sps:$4 sm:$0xff]   ;;  %v4091_v39 = vld [vmem:[#allocation10 + $0x48] ss:$12 sps:$4 sm:$0xff]  }
 0x49e   :  { %v2402_v14 = vmul.f32 -1.442695, %v1348_v37  ;;  %v1306_v17 = vpop.f32.mrb[31].mxu0  ;;  %v2723_v54 = vpop.f32.mrb[31].mxu1  ;;  %v4094_v51 = vld [vmem:[#allocation10 + $0x50] ss:$12 sps:$4 sm:$0xff]  }
 0x49f   :  { %v2403_v12 = vmul.f32 -1.442695, %v1355_v59  ;;  %v4097_v34 = vld [vmem:[#allocation10 + $0x64] ss:$12 sps:$4 sm:$0xff]   ;;  %v4101_v9 = vld [vmem:[#allocation10 + $0x60] ss:$12 sps:$4 sm:$0xff]  }
 0x4a0   :  { %3035 = vpow2.f32 %v2402_v14  ;;  %v4104_v10 = vld [vmem:[#allocation10 + $0x68] ss:$12 sps:$4 sm:$0xff]   ;;  %v4111_v17 = vld [vmem:[#allocation10 + $0x78] ss:$12 sps:$4 sm:$0xff]   ;;  %v4114_v54 = vld [vmem:[#allocation10 + $0x80] ss:$12 sps:$4 sm:$0xff]  }
 0x4a1   :  { %3037 = vpow2.f32 %v2403_v12  ;;  %v4107_v11 = vld [vmem:[#allocation10 + $0x7c] ss:$12 sps:$4 sm:$0xff]   ;;  %v4117_v59 = vld [vmem:[#allocation10 + $0x94] ss:$12 sps:$4 sm:$0xff]  }
 0x4a6   :  { %v3034_v63 = vpop.eup %3033 }
 0x4a7   :  { %v1252_v28 = vmul.f32 %v3034_v63, %v1251_v20  ;;  %v4121_v20 = vld [vmem:[#allocation10 + $0x90] ss:$12 sps:$4 sm:$0xff]   ;;  %v4124_v63 = vld [vmem:[#allocation10 + $0x98] ss:$12 sps:$4 sm:$0xff]  }
 0x4a9   :  { %v4052_v30 = vadd.f32 %v1253_v16, %v1252_v28  ;;  %v4127_v28 = vld [vmem:[#allocation10 + $0xac] ss:$12 sps:$4 sm:$0xff]  }
 0x4aa   :  { %v3036_v52 = vpop.eup %3035 }
 0x4ab   :  { %v1352_v53 = vadd.f32 1.0, %v3036_v52  ;;  %v1256_v0 = vpack.c.bf16 %v4052_v30, %v4052_v30  ;;  %v3038_v61 = vpop.eup %3037 }
 0x4ac   :  { %v1359_v33 = vadd.f32 1.0, %v3038_v61  ;;  %v4137_v61 = vld [vmem:[#allocation10 + $0xb0] ss:$12 sps:$4 sm:$0xff]  }
 0x4ad   :  { %3039 = vrcp.f32 %v1352_v53  ;;  %1258 = vst [vmem:[#allocation15 + $0xc] sm:$0xf] %v1256_v0  ;;  %1415 = vmatmul.mubr.bf16.vlgmr.msra.gmra.mrb[32].mxu0 %v1256_v0  ;;  %2741 = vmatmul.mubr.bf16.vlgmr.msra.gmra.mrb[32].mxu1 %v1256_v0  ;;  %v4134_v0 = vld [vmem:[#allocation10 + $0xa8] ss:$12 sps:$4 sm:$0xff]  }
 0x4ae   :  { %1498 = vmatpush1.bf16.msra.mxu0 %v4056_v13  ;;  %2745 = vmatpush3.bf16.msra.mxu1 %v4059_v55  ;;  %3041 = vrcp.f32 %v1359_v33 }
 0x4af   :  { %1499 = vmatprep.subr.bf16.mxu0 %v4062_v58  ;;  %2746 = vmatprep.subr.bf16.mxu1 %v4514_v19 }
 0x4b0   :  { %1529 = vmatprep.mubr.bf16.mxu0 %v4515_v21  ;;  %2760 = vmatprep.mubr.msk.bf16.mxu1 %vm3377_vm0, %v4514_v19 }
 0x4b2   :  { %1500 = vmatpush1.bf16.msra.mxu0 %v4069_v15  ;;  %2747 = vmatpush3.bf16.msra.mxu1 %v4072_v25 }
 0x4b3   :  { %1501 = vmatprep.subr.bf16.mxu0 %v4075_v27  ;;  %2748 = vmatprep.subr.bf16.mxu1 %v4514_v19 }
 0x4b6   :  { %1502 = vmatpush1.bf16.msra.mxu0 %v4081_v36  ;;  %2749 = vmatpush3.bf16.msra.mxu1 %v4084_v31 }
 0x4b7   :  { %v3040_v32 = vpop.eup %3039  ;;  %1503 = vmatprep.subr.bf16.mxu0 %v4087_v35  ;;  %2750 = vmatprep.subr.bf16.mxu1 %v4514_v19 }
 0x4b8   :  { %v1363_v37 = vmul.f32 %v3040_v32, %v1362_v29  ;;  %v3042_v14 = vpop.eup %3041 }
 0x4b9   :  { %v1366_v62 = vsub.f32 1.0, %v3042_v14  ;;  %v1368_v52 = vmul.f32 %v3042_v14, %v3956_v38  ;;  %v1375_v38 = vld [vmem:[#allocation4 + $0x30] sm:$0xff] }
 0x4ba   :  { %v1364_v57 = vadd.f32 %v1363_v37, %v1264_v1  ;;  %1504 = vmatpush1.bf16.msra.mxu0 %v4091_v39  ;;  %2751 = vmatpush3.bf16.msra.mxu1 %v4094_v51  ;;  %v1377_v1 = vunpack.c.l.bf16 %v1375_v38  ;;  %v1378_v37 = vunpack.c.h.bf16 %v1375_v38  ;;  %v1490_v38 = vld [vmem:[#allocation7 + $0x24] sm:$0xff] }
 0x4bb   :  { %1505 = vmatprep.subr.bf16.mxu0 %v4097_v34  ;;  %2752 = vmatprep.subr.bf16.mxu1 %v4514_v19 }
 0x4bc   :  { %3043 = vtanh.f32 %v1364_v57 }
 0x4be   :  { %1506 = vmatpush1.bf16.msra.mxu0 %v4101_v9  ;;  %2753 = vmatpush3.bf16.msra.mxu1 %v4104_v10 }
 0x4bf   :  { %1507 = vmatprep.subr.bf16.mxu0 %v4107_v11  ;;  %2754 = vmatprep.subr.bf16.mxu1 %v4514_v19 }
 0x4c2   :  { %1508 = vmatpush1.bf16.msra.mxu0 %v4111_v17  ;;  %2755 = vmatpush3.bf16.msra.mxu1 %v4114_v54 }
 0x4c3   :  { %1509 = vmatprep.subr.bf16.mxu0 %v4117_v59  ;;  %2756 = vmatprep.subr.bf16.mxu1 %v4514_v19 }
 0x4c6   :  { %v3044_v12 = vpop.eup %3043  ;;  %1510 = vmatpush1.bf16.msra.mxu0 %v4121_v20  ;;  %2757 = vmatpush3.bf16.msra.mxu1 %v4124_v63 }
 0x4c7   :  { %1511 = vmatprep.subr.bf16.mxu0 %v4127_v28  ;;  %2758 = vmatprep.subr.bf16.mxu1 %v4514_v19  ;;  %v1367_v16 = vmul.f32 %v3044_v12, %v1366_v62 }
 0x4c9   :  { %v4132_v53 = vadd.f32 %v1368_v52, %v1367_v16 }
 0x4ca   :  { %1512 = vmatpush1.bf16.msra.mxu0 %v4134_v0  ;;  %2759 = vmatpush3.bf16.msra.mxu1 %v4137_v61 }
 0x4cb   :  { %v1371_v33 = vpack.c.bf16 %v4132_v53, %v4132_v53  ;;  %1612 = vmatprep.subr.bf16.mxu0 %v3962_v40  ;;  %2764 = vmatprep.subr.bf16.mxu1 %v4514_v19 }
 0x4cd   :  { %1373 = vst [vmem:[#allocation16 + $0x10] sm:$0xf] %v1371_v33  ;;  %1530 = vmatmul.mubr.bf16.vlgmr.msra.gmra.mrb[36].mxu0 %v1371_v33  ;;  %2761 = vmatmul.mubr.bf16.vlgmr.msra.gmra.mrb[36].mxu1 %v1371_v33 }
 0x4ce   :  { %1613 = vmatpush1.bf16.msra.mxu0 %v3966_v41  ;;  %2765 = vmatpush3.bf16.msra.mxu1 %v3969_v42 }
 0x4cf   :  { %1614 = vmatprep.subr.bf16.mxu0 %v3972_v43  ;;  %2766 = vmatprep.subr.bf16.mxu1 %v4514_v19 }
 0x4d0   :  { %1644 = vmatprep.mubr.bf16.mxu0 %v4515_v21  ;;  %2780 = vmatprep.mubr.msk.bf16.mxu1 %vm3377_vm0, %v4514_v19 }
 0x4d2   :  { %1615 = vmatpush1.bf16.msra.mxu0 %v3979_v44  ;;  %2767 = vmatpush3.bf16.msra.mxu1 %v3982_v45 }
 0x4d3   :  { %1616 = vmatprep.subr.bf16.mxu0 %v3985_v46  ;;  %2768 = vmatprep.subr.bf16.mxu1 %v4514_v19 }
 0x4d6   :  { %1617 = vmatpush1.bf16.msra.mxu0 %v3989_v47  ;;  %2769 = vmatpush3.bf16.msra.mxu1 %v3992_v48 }
 0x4d7   :  { %1618 = vmatprep.subr.bf16.mxu0 %v3995_v49  ;;  %2770 = vmatprep.subr.bf16.mxu1 %v4514_v19 }
 0x4da   :  { %1619 = vmatpush1.bf16.msra.mxu0 %v3999_v50  ;;  %2771 = vmatpush3.bf16.msra.mxu1 %v4002_v23 }
 0x4db   :  { %1620 = vmatprep.subr.bf16.mxu0 %v4005_v26  ;;  %2772 = vmatprep.subr.bf16.mxu1 %v4514_v19 }
 0x4de   :  { %1621 = vmatpush1.bf16.msra.mxu0 %v4009_v60  ;;  %2773 = vmatpush3.bf16.msra.mxu1 %v4012_v22 }
 0x4df   :  { %1622 = vmatprep.subr.bf16.mxu0 %v4015_v24  ;;  %2774 = vmatprep.subr.bf16.mxu1 %v4514_v19 }
 0x4e2   :  { %1623 = vmatpush1.bf16.msra.mxu0 %v4019_v18  ;;  %2775 = vmatpush3.bf16.msra.mxu1 %v4022_v56 }
 0x4e3   :  { %1624 = vmatprep.subr.bf16.mxu0 %v4025_v2  ;;  %2776 = vmatprep.subr.bf16.mxu1 %v4514_v19  ;;  %v4179_v2 = vld [vmem:[#allocation4 + $0x38] ss:$12 sps:$4 sm:$0xff]  }
 0x4e4   :  { %4549 = vst [vmem:[#allocation33_spill] sm:$0xff] %v4179_v2 }
 0x4e6   :  { %1625 = vmatpush1.bf16.msra.mxu0 %v4029_v3  ;;  %2777 = vmatpush3.bf16.msra.mxu1 %v4032_v4 }
 0x4e7   :  { %1626 = vmatprep.subr.bf16.mxu0 %v4035_v5  ;;  %2778 = vmatprep.subr.bf16.mxu1 %v4514_v19 }
 0x4ea   :  { %1627 = vmatpush1.bf16.msra.mxu0 %v4039_v6  ;;  %2779 = vmatpush3.bf16.msra.mxu1 %v4042_v7 }
 0x4eb   :  { %1727 = vmatprep.subr.bf16.mxu0 %v4045_v8  ;;  %2784 = vmatprep.subr.bf16.mxu1 %v4514_v19 }
 0x580   :  { %v1416_v29 = vpop.f32.mrb[32].mxu0  ;;  %v1457_v32 = vpop.f32.mrb[32].mxu1 }
 0x581   :  { %v1463_v57 = vadd.f32 %v1416_v29, %v1377_v1  ;;  %v1418_v14 = vpop.f32.mrb[33].mxu0  ;;  %v2742_v62 = vpop.f32.mrb[33].mxu1  ;;  %v1379_v1 = vunpack.c.l.bf16 %v4179_v2  ;;  %v4182_v29 = vld [vmem:[#allocation12] ss:$0 sm:$0xff] }
 0x582   :  { %v1420_v12 = vpop.f32.mrb[34].mxu0  ;;  %v1460_v16 = vpop.f32.mrb[34].mxu1  ;;  %v1470_v6 = vadd.f32 %v1418_v14, %v1378_v37  ;;  %4550 = vst [vmem:[#allocation36_spill] sm:$0xff] %v4182_v29  ;;  %v1492_v37 = vunpack.c.l.bf16 %v1490_v38 }
 0x583   :  { %v2404_v52 = vmul.f32 -1.442695, %v1463_v57  ;;  %v1421_v33 = vpop.f32.mrb[35].mxu0  ;;  %v2743_v5 = vpop.f32.mrb[35].mxu1  ;;  %v1477_v57 = vadd.f32 %v4182_v29, %v1457_v32 }
 0x584   :  { %v2405_v7 = vmul.f32 -1.442695, %v1470_v6 }
 0x585   :  { %3045 = vpow2.f32 %v2404_v52 }
 0x586   :  { %3047 = vpow2.f32 %v2405_v7 }
 0x58f   :  { %v3046_v8 = vpop.eup %3045 }
 0x590   :  { %v1467_v4 = vadd.f32 1.0, %v3046_v8  ;;  %v3048_v3 = vpop.eup %3047  ;;  %v1493_v8 = vunpack.c.h.bf16 %v1490_v38 }
 0x591   :  { %v1474_v56 = vadd.f32 1.0, %v3048_v3 }
 0x592   :  { %3049 = vrcp.f32 %v1467_v4 }
 0x593   :  { %3051 = vrcp.f32 %v1474_v56 }
 0x59c   :  { %v3050_v62 = vpop.eup %3049 }
 0x59d   :  { %v1478_v5 = vmul.f32 %v3050_v62, %v1477_v57  ;;  %v3052_v32 = vpop.eup %3051 }
 0x59e   :  { %v1481_v57 = vsub.f32 1.0, %v3052_v32  ;;  %v1483_v62 = vmul.f32 %v3052_v32, %v4052_v30 }
 0x59f   :  { %v1479_v6 = vadd.f32 %v1478_v5, %v1379_v1 }
 0x5a0   :  { %v1531_v7 = vpop.f32.mrb[36].mxu0  ;;  %v1572_v14 = vpop.f32.mrb[36].mxu1 }
 0x5a1   :  { %3053 = vtanh.f32 %v1479_v6  ;;  %v1578_v4 = vadd.f32 %v1531_v7, %v1492_v37  ;;  %v1533_v12 = vpop.f32.mrb[37].mxu0  ;;  %v2762_v16 = vpop.f32.mrb[37].mxu1 }
 0x5a2   :  { %v1535_v3 = vpop.f32.mrb[38].mxu0  ;;  %v1575_v52 = vpop.f32.mrb[38].mxu1  ;;  %v1585_v24 = vadd.f32 %v1533_v12, %v1493_v8 }
 0x5a3   :  { %v2406_v33 = vmul.f32 -1.442695, %v1578_v4  ;;  %v1536_v2 = vpop.f32.mrb[39].mxu0  ;;  %v2763_v18 = vpop.f32.mrb[39].mxu1 }
 0x5a4   :  { %v2407_v29 = vmul.f32 -1.442695, %v1585_v24  ;;  %v4199_v18 = vld [vmem:[#allocation7 + $0x20] ss:$12 sps:$4 sm:$0xff]  }
 0x5a5   :  { %3055 = vpow2.f32 %v2406_v33  ;;  %v1494_v30 = vunpack.c.h.bf16 %v4199_v18 }
 0x5a6   :  { %3057 = vpow2.f32 %v2407_v29  ;;  %v4204_v29 = vld [vmem:[#allocation13] ss:$0 sm:$0xff] }
 0x5a7   :  { %v1592_v7 = vadd.f32 %v4204_v29, %v1572_v14 }
 0x5ab   :  { %v3054_v56 = vpop.eup %3053 }
 0x5ac   :  { %v1482_v1 = vmul.f32 %v3054_v56, %v1481_v57  ;;  %v4552_v56 = vld [vmem:[#allocation25_spill] sm:$0xff] }
 0x5ae   :  { %v4186_v38 = vadd.f32 %v1483_v62, %v1482_v1  ;;  %v4553_v1 = vld [vmem:[#allocation26_spill] sm:$0xff]  ;;  %v4554_v62 = vld [vmem:[#allocation32_spill] sm:$0xff] }
 0x5af   :  { %v3056_v5 = vpop.eup %3055 }
 0x5b0   :  { %v1582_v37 = vadd.f32 1.0, %v3056_v5  ;;  %v1486_v6 = vpack.c.bf16 %v4186_v38, %v4186_v38  ;;  %v3058_v24 = vpop.eup %3057  ;;  %v4555_v5 = vld [vmem:[#allocation27_spill] sm:$0xff] }
 0x5b1   :  { %v1589_v2 = vadd.f32 1.0, %v3058_v24  ;;  %v4558_v24 = vld [vmem:[#allocation30_spill] sm:$0xff] }
 0x5b2   :  { %3059 = vrcp.f32 %v1582_v37  ;;  %1488 = vst [vmem:[#allocation15 + $0x10] sm:$0xf] %v1486_v6  ;;  %1645 = vmatmul.mubr.bf16.vlgmr.msra.gmra.mrb[40].mxu0 %v1486_v6  ;;  %2781 = vmatmul.mubr.bf16.vlgmr.msra.gmra.mrb[40].mxu1 %v1486_v6  ;;  %v4556_v37 = vld [vmem:[#allocation28_spill] sm:$0xff]  ;;  %v4557_v6 = vld [vmem:[#allocation34_spill] sm:$0xff] }
 0x5b3   :  { %1728 = vmatpush1.bf16.msra.mxu0 %v4056_v13  ;;  %2785 = vmatpush3.bf16.msra.mxu1 %v4059_v55  ;;  %3061 = vrcp.f32 %v1589_v2  ;;  %v4559_v2 = vld [vmem:[#allocation31_spill] sm:$0xff] }
 0x5b4   :  { %1729 = vmatprep.subr.bf16.mxu0 %v4062_v58  ;;  %2786 = vmatprep.subr.bf16.mxu1 %v4514_v19 }
 0x5b5   :  { %1759 = vmatprep.mubr.bf16.mxu0 %v4515_v21  ;;  %2800 = vmatprep.mubr.msk.bf16.mxu1 %vm3377_vm0, %v4514_v19 }
 0x5b7   :  { %1730 = vmatpush1.bf16.msra.mxu0 %v4069_v15  ;;  %2787 = vmatpush3.bf16.msra.mxu1 %v4072_v25 }
 0x5b8   :  { %1731 = vmatprep.subr.bf16.mxu0 %v4075_v27  ;;  %2788 = vmatprep.subr.bf16.mxu1 %v4514_v19 }
 0x5bb   :  { %1732 = vmatpush1.bf16.msra.mxu0 %v4081_v36  ;;  %2789 = vmatpush3.bf16.msra.mxu1 %v4084_v31 }
 0x5bc   :  { %v3060_v8 = vpop.eup %3059  ;;  %1733 = vmatprep.subr.bf16.mxu0 %v4087_v35  ;;  %2790 = vmatprep.subr.bf16.mxu1 %v4514_v19 }
 0x5bd   :  { %v1593_v4 = vmul.f32 %v3060_v8, %v1592_v7  ;;  %v3062_v14 = vpop.eup %3061  ;;  %v1605_v7 = vld [vmem:[#allocation4 + $0x3c] sm:$0xff] }
 0x5be   :  { %v1596_v16 = vsub.f32 1.0, %v3062_v14  ;;  %v1598_v33 = vmul.f32 %v3062_v14, %v4132_v53  ;;  %v4551_v53 = vld [vmem:[#allocation29_spill] sm:$0xff]  ;;  %v1607_v8 = vunpack.c.l.bf16 %v1605_v7  ;;  %v1608_v14 = vunpack.c.h.bf16 %v1605_v7 }
 0x5bf   :  { %v1594_v12 = vadd.f32 %v1593_v4, %v1494_v30  ;;  %1734 = vmatpush1.bf16.msra.mxu0 %v4091_v39  ;;  %2791 = vmatpush3.bf16.msra.mxu1 %v4094_v51  ;;  %v4560_v30 = vld [vmem:[#allocation35_spill] sm:$0xff] }
 0x5c0   :  { %1735 = vmatprep.subr.bf16.mxu0 %v4097_v34  ;;  %2792 = vmatprep.subr.bf16.mxu1 %v4514_v19 }
 0x5c1   :  { %3063 = vtanh.f32 %v1594_v12 }
 0x5c3   :  { %1736 = vmatpush1.bf16.msra.mxu0 %v4101_v9  ;;  %2793 = vmatpush3.bf16.msra.mxu1 %v4104_v10 }
 0x5c4   :  { %1737 = vmatprep.subr.bf16.mxu0 %v4107_v11  ;;  %2794 = vmatprep.subr.bf16.mxu1 %v4514_v19 }
 0x5c7   :  { %1738 = vmatpush1.bf16.msra.mxu0 %v4111_v17  ;;  %2795 = vmatpush3.bf16.msra.mxu1 %v4114_v54 }
 0x5c8   :  { %1739 = vmatprep.subr.bf16.mxu0 %v4117_v59  ;;  %2796 = vmatprep.subr.bf16.mxu1 %v4514_v19 }
 0x5cb   :  { %v3064_v3 = vpop.eup %3063  ;;  %1740 = vmatpush1.bf16.msra.mxu0 %v4121_v20  ;;  %2797 = vmatpush3.bf16.msra.mxu1 %v4124_v63 }
 0x5cc   :  { %1741 = vmatprep.subr.bf16.mxu0 %v4127_v28  ;;  %2798 = vmatprep.subr.bf16.mxu1 %v4514_v19  ;;  %v1597_v52 = vmul.f32 %v3064_v3, %v1596_v16 }
 0x5ce   :  { %v4228_v32 = vadd.f32 %v1598_v33, %v1597_v52 }
 0x5cf   :  { %1742 = vmatpush1.bf16.msra.mxu0 %v4134_v0  ;;  %2799 = vmatpush3.bf16.msra.mxu1 %v4137_v61 }
 0x5d0   :  { %v1601_v57 = vpack.c.bf16 %v4228_v32, %v4228_v32  ;;  %1842 = vmatprep.subr.bf16.mxu0 %v3962_v40  ;;  %2804 = vmatprep.subr.bf16.mxu1 %v4514_v19 }
 0x5d2   :  { %1603 = vst [vmem:[#allocation16 + $0xc] sm:$0xf] %v1601_v57  ;;  %1760 = vmatmul.mubr.bf16.vlgmr.msra.gmra.mrb[44].mxu0 %v1601_v57  ;;  %2801 = vmatmul.mubr.bf16.vlgmr.msra.gmra.mrb[44].mxu1 %v1601_v57 }
 0x5d3   :  { %1843 = vmatpush1.bf16.msra.mxu0 %v3966_v41  ;;  %2805 = vmatpush3.bf16.msra.mxu1 %v3969_v42 }
 0x5d4   :  { %1844 = vmatprep.subr.bf16.mxu0 %v3972_v43  ;;  %2806 = vmatprep.subr.bf16.mxu1 %v4514_v19 }
 0x5d5   :  { %1874 = vmatprep.mubr.bf16.mxu0 %v4515_v21  ;;  %2820 = vmatprep.mubr.msk.bf16.mxu1 %vm3377_vm0, %v4514_v19 }
 0x5d7   :  { %1845 = vmatpush1.bf16.msra.mxu0 %v3979_v44  ;;  %2807 = vmatpush3.bf16.msra.mxu1 %v3982_v45 }
 0x5d8   :  { %1846 = vmatprep.subr.bf16.mxu0 %v3985_v46  ;;  %2808 = vmatprep.subr.bf16.mxu1 %v4514_v19 }
 0x5db   :  { %1847 = vmatpush1.bf16.msra.mxu0 %v3989_v47  ;;  %2809 = vmatpush3.bf16.msra.mxu1 %v3992_v48 }
 0x5dc   :  { %1848 = vmatprep.subr.bf16.mxu0 %v3995_v49  ;;  %2810 = vmatprep.subr.bf16.mxu1 %v4514_v19 }
 0x5df   :  { %1849 = vmatpush1.bf16.msra.mxu0 %v3999_v50  ;;  %2811 = vmatpush3.bf16.msra.mxu1 %v4002_v23 }
 0x5e0   :  { %1850 = vmatprep.subr.bf16.mxu0 %v4005_v26  ;;  %2812 = vmatprep.subr.bf16.mxu1 %v4514_v19 }
 0x5e3   :  { %1851 = vmatpush1.bf16.msra.mxu0 %v4009_v60  ;;  %2813 = vmatpush3.bf16.msra.mxu1 %v4012_v22  ;;  %v4561_v22 = vld [vmem:[#allocation33_spill] sm:$0xff] }
 0x5e4   :  { %1852 = vmatprep.subr.bf16.mxu0 %v4551_v53  ;;  %2814 = vmatprep.subr.bf16.mxu1 %v4514_v19  ;;  %v1720_v53 = vld [vmem:[#allocation7 + $0x18] sm:$0xff]  ;;  %v1609_v7 = vunpack.c.h.bf16 %v4561_v22 }
 0x5e7   :  { %1853 = vmatpush1.bf16.msra.mxu0 %v4552_v56  ;;  %2815 = vmatpush3.bf16.msra.mxu1 %v4553_v1 }
 0x5e8   :  { %1854 = vmatprep.subr.bf16.mxu0 %v4554_v62  ;;  %2816 = vmatprep.subr.bf16.mxu1 %v4514_v19 }
 0x5eb   :  { %1855 = vmatpush1.bf16.msra.mxu0 %v4555_v5  ;;  %2817 = vmatpush3.bf16.msra.mxu1 %v4556_v37 }
 0x5ec   :  { %1856 = vmatprep.subr.bf16.mxu0 %v4557_v6  ;;  %2818 = vmatprep.subr.bf16.mxu1 %v4514_v19 }
 0x5ef   :  { %1857 = vmatpush1.bf16.msra.mxu0 %v4558_v24  ;;  %2819 = vmatpush3.bf16.msra.mxu1 %v4559_v2 }
 0x5f0   :  { %1957 = vmatprep.subr.bf16.mxu0 %v4560_v30  ;;  %2824 = vmatprep.subr.bf16.mxu1 %v4514_v19 }
 0x685   :  { %v1646_v4 = vpop.f32.mrb[40].mxu0  ;;  %v1687_v12 = vpop.f32.mrb[40].mxu1 }
 0x686   :  { %v1693_v16 = vadd.f32 %v1646_v4, %v1607_v8  ;;  %v1648_v3 = vpop.f32.mrb[41].mxu0  ;;  %v2782_v52 = vpop.f32.mrb[41].mxu1  ;;  %v4562_v8 = vld [vmem:[#allocation36_spill] sm:$0xff] }
 0x687   :  { %v1650_v33 = vpop.f32.mrb[42].mxu0  ;;  %v1690_v57 = vpop.f32.mrb[42].mxu1  ;;  %v1700_v24 = vadd.f32 %v1648_v3, %v1608_v14  ;;  %v1707_v4 = vadd.f32 %v4562_v8, %v1687_v12 }
 0x688   :  { %v2408_v6 = vmul.f32 -1.442695, %v1693_v16  ;;  %v1651_v37 = vpop.f32.mrb[43].mxu0  ;;  %v2783_v5 = vpop.f32.mrb[43].mxu1  ;;  %v1722_v16 = vunpack.c.l.bf16 %v1720_v53 }
 0x689   :  { %v2409_v2 = vmul.f32 -1.442695, %v1700_v24 }
 0x68a   :  { %3065 = vpow2.f32 %v2408_v6  ;;  %v1723_v6 = vunpack.c.h.bf16 %v1720_v53 }
 0x68b   :  { %3067 = vpow2.f32 %v2409_v2 }
 0x694   :  { %v3066_v30 = vpop.eup %3065 }
 0x695   :  { %v1697_v62 = vadd.f32 1.0, %v3066_v30  ;;  %v3068_v1 = vpop.eup %3067 }
 0x696   :  { %v1704_v56 = vadd.f32 1.0, %v3068_v1 }
 0x697   :  { %3069 = vrcp.f32 %v1697_v62 }
 0x698   :  { %3071 = vrcp.f32 %v1704_v56 }
 0x6a1   :  { %v3070_v52 = vpop.eup %3069 }
 0x6a2   :  { %v1708_v33 = vmul.f32 %v3070_v52, %v1707_v4  ;;  %v3072_v12 = vpop.eup %3071 }
 0x6a3   :  { %v1711_v4 = vsub.f32 1.0, %v3072_v12  ;;  %v1713_v52 = vmul.f32 %v3072_v12, %v4186_v38 }
 0x6a4   :  { %v1709_v37 = vadd.f32 %v1708_v33, %v1609_v7 }
 0x6a5   :  { %v1761_v5 = vpop.f32.mrb[44].mxu0  ;;  %v1802_v14 = vpop.f32.mrb[44].mxu1 }
 0x6a6   :  { %3073 = vtanh.f32 %v1709_v37  ;;  %v1808_v24 = vadd.f32 %v1761_v5, %v1722_v16  ;;  %v1763_v2 = vpop.f32.mrb[45].mxu0  ;;  %v2802_v30 = vpop.f32.mrb[45].mxu1  ;;  %v1822_v5 = vadd.f32 %v4204_v29, %v1802_v14 }
 0x6a7   :  { %v1765_v62 = vpop.f32.mrb[46].mxu0  ;;  %v1805_v3 = vpop.f32.mrb[46].mxu1  ;;  %v1815_v22 = vadd.f32 %v1763_v2, %v1723_v6 }
 0x6a8   :  { %v2410_v1 = vmul.f32 -1.442695, %v1808_v24  ;;  %v1766_v57 = vpop.f32.mrb[47].mxu0  ;;  %v2803_v60 = vpop.f32.mrb[47].mxu1 }
 0x6a9   :  { %v2411_v8 = vmul.f32 -1.442695, %v1815_v22 }
 0x6aa   :  { %3075 = vpow2.f32 %v2410_v1 }
 0x6ab   :  { %3077 = vpow2.f32 %v2411_v8  ;;  %v1724_v8 = vunpack.c.l.bf16 %v4199_v18 }
 0x6b0   :  { %v3074_v56 = vpop.eup %3073 }
 0x6b1   :  { %v1712_v7 = vmul.f32 %v3074_v56, %v1711_v4 }
 0x6b3   :  { %v4274_v53 = vadd.f32 %v1713_v52, %v1712_v7 }
 0x6b4   :  { %v3076_v33 = vpop.eup %3075 }
 0x6b5   :  { %v1812_v16 = vadd.f32 1.0, %v3076_v33  ;;  %v1716_v37 = vpack.c.bf16 %v4274_v53, %v4274_v53  ;;  %v3078_v60 = vpop.eup %3077 }
 0x6b6   :  { %v1819_v38 = vadd.f32 1.0, %v3078_v60 }
 0x6b7   :  { %3079 = vrcp.f32 %v1812_v16  ;;  %1718 = vst [vmem:[#allocation15 + $0x14] sm:$0xf] %v1716_v37  ;;  %1875 = vmatmul.mubr.bf16.vlgmr.msra.gmra.mrb[48].mxu0 %v1716_v37  ;;  %2821 = vmatmul.mubr.bf16.vlgmr.msra.gmra.mrb[48].mxu1 %v1716_v37 }
 0x6b8   :  { %1958 = vmatpush1.bf16.msra.mxu0 %v4056_v13  ;;  %2825 = vmatpush3.bf16.msra.mxu1 %v4059_v55  ;;  %3081 = vrcp.f32 %v1819_v38 }
 0x6b9   :  { %1959 = vmatprep.subr.bf16.mxu0 %v4062_v58  ;;  %2826 = vmatprep.subr.bf16.mxu1 %v4514_v19 }
 0x6ba   :  { %1989 = vmatprep.mubr.bf16.mxu0 %v4515_v21  ;;  %2840 = vmatprep.mubr.msk.bf16.mxu1 %vm3377_vm0, %v4514_v19 }
 0x6bc   :  { %1960 = vmatpush1.bf16.msra.mxu0 %v4069_v15  ;;  %2827 = vmatpush3.bf16.msra.mxu1 %v4072_v25 }
 0x6bd   :  { %1961 = vmatprep.subr.bf16.mxu0 %v4075_v27  ;;  %2828 = vmatprep.subr.bf16.mxu1 %v4514_v19 }
 0x6c0   :  { %1962 = vmatpush1.bf16.msra.mxu0 %v4081_v36  ;;  %2829 = vmatpush3.bf16.msra.mxu1 %v4084_v31 }
 0x6c1   :  { %v3080_v6 = vpop.eup %3079  ;;  %1963 = vmatprep.subr.bf16.mxu0 %v4087_v35  ;;  %2830 = vmatprep.subr.bf16.mxu1 %v4514_v19 }
 0x6c2   :  { %v1823_v24 = vmul.f32 %v3080_v6, %v1822_v5  ;;  %v3082_v18 = vpop.eup %3081 }
 0x6c3   :  { %v1826_v14 = vsub.f32 1.0, %v3082_v18  ;;  %v1828_v3 = vmul.f32 %v3082_v18, %v4228_v32  ;;  %v4355_v18 = vld [vmem:[#allocation4 + $0x50] ss:$12 sps:$4 sm:$0xff]  }
 0x6c4   :  { %v1824_v2 = vadd.f32 %v1823_v24, %v1724_v8  ;;  %1964 = vmatpush1.bf16.msra.mxu0 %v4091_v39  ;;  %2831 = vmatpush3.bf16.msra.mxu1 %v4094_v51 }
 0x6c5   :  { %1965 = vmatprep.subr.bf16.mxu0 %v4097_v34  ;;  %2832 = vmatprep.subr.bf16.mxu1 %v4514_v19 }
 0x6c6   :  { %3083 = vtanh.f32 %v1824_v2 }
 0x6c8   :  { %1966 = vmatpush1.bf16.msra.mxu0 %v4101_v9  ;;  %2833 = vmatpush3.bf16.msra.mxu1 %v4104_v10 }
 0x6c9   :  { %1967 = vmatprep.subr.bf16.mxu0 %v4107_v11  ;;  %2834 = vmatprep.subr.bf16.mxu1 %v4514_v19 }
 0x6cc   :  { %1968 = vmatpush1.bf16.msra.mxu0 %v4111_v17  ;;  %2835 = vmatpush3.bf16.msra.mxu1 %v4114_v54 }
 0x6cd   :  { %1969 = vmatprep.subr.bf16.mxu0 %v4117_v59  ;;  %2836 = vmatprep.subr.bf16.mxu1 %v4514_v19 }
 0x6d0   :  { %v3084_v30 = vpop.eup %3083  ;;  %1970 = vmatpush1.bf16.msra.mxu0 %v4121_v20  ;;  %2837 = vmatpush3.bf16.msra.mxu1 %v4124_v63 }
 0x6d1   :  { %1971 = vmatprep.subr.bf16.mxu0 %v4127_v28  ;;  %2838 = vmatprep.subr.bf16.mxu1 %v4514_v19  ;;  %v1827_v62 = vmul.f32 %v3084_v30, %v1826_v14  ;;  %v1950_v30 = vld [vmem:[#allocation7 + $0xc] sm:$0xff] }
 0x6d3   :  { %v4312_v1 = vadd.f32 %v1828_v3, %v1827_v62  ;;  %v1839_v62 = vunpack.c.l.bf16 %v4355_v18  ;;  %v4575_v3 = vld [vmem:[#allocation36_spill] sm:$0xff] }
 0x6d4   :  { %1972 = vmatpush1.bf16.msra.mxu0 %v4134_v0  ;;  %2839 = vmatpush3.bf16.msra.mxu1 %v4137_v61 }
 0x6d5   :  { %v1831_v57 = vpack.c.bf16 %v4312_v1, %v4312_v1  ;;  %2072 = vmatprep.subr.bf16.mxu0 %v3962_v40  ;;  %2844 = vmatprep.subr.bf16.mxu1 %v4514_v19  ;;  %v4563_v40 = vld [vmem:[#allocation37_spill] sm:$0xff] }
 0x6d7   :  { %1833 = vst [vmem:[#allocation16 + $0x8] sm:$0xf] %v1831_v57  ;;  %1990 = vmatmul.mubr.bf16.vlgmr.msra.gmra.mrb[52].mxu0 %v1831_v57  ;;  %2841 = vmatmul.mubr.bf16.vlgmr.msra.gmra.mrb[52].mxu1 %v1831_v57 }
 0x6d8   :  { %2073 = vmatpush1.bf16.msra.mxu0 %v3966_v41  ;;  %2845 = vmatpush3.bf16.msra.mxu1 %v3969_v42  ;;  %v4564_v41 = vld [vmem:[#allocation24_spill] sm:$0xff]  ;;  %v4565_v42 = vld [vmem:[#allocation29_spill] sm:$0xff] }
 0x6d9   :  { %2074 = vmatprep.subr.bf16.mxu0 %v3972_v43  ;;  %2846 = vmatprep.subr.bf16.mxu1 %v4514_v19  ;;  %v4566_v43 = vld [vmem:[#allocation25_spill] sm:$0xff] }
 0x6da   :  { %2104 = vmatprep.mubr.bf16.mxu0 %v4515_v21  ;;  %2860 = vmatprep.mubr.msk.bf16.mxu1 %vm3377_vm0, %v4514_v19 }
 0x6dc   :  { %2075 = vmatpush1.bf16.msra.mxu0 %v3979_v44  ;;  %2847 = vmatpush3.bf16.msra.mxu1 %v3982_v45  ;;  %v4567_v44 = vld [vmem:[#allocation26_spill] sm:$0xff]  ;;  %v4568_v45 = vld [vmem:[#allocation32_spill] sm:$0xff] }
 0x6dd   :  { %2076 = vmatprep.subr.bf16.mxu0 %v3985_v46  ;;  %2848 = vmatprep.subr.bf16.mxu1 %v4514_v19  ;;  %v4569_v46 = vld [vmem:[#allocation27_spill] sm:$0xff] }
 0x6e0   :  { %2077 = vmatpush1.bf16.msra.mxu0 %v3989_v47  ;;  %2849 = vmatpush3.bf16.msra.mxu1 %v3992_v48  ;;  %v4570_v47 = vld [vmem:[#allocation28_spill] sm:$0xff]  ;;  %v4571_v48 = vld [vmem:[#allocation34_spill] sm:$0xff] }
 0x6e1   :  { %2078 = vmatprep.subr.bf16.mxu0 %v3995_v49  ;;  %2850 = vmatprep.subr.bf16.mxu1 %v4514_v19  ;;  %v4572_v49 = vld [vmem:[#allocation30_spill] sm:$0xff] }
 0x6e4   :  { %2079 = vmatpush1.bf16.msra.mxu0 %v3999_v50  ;;  %2851 = vmatpush3.bf16.msra.mxu1 %v4002_v23  ;;  %v4573_v50 = vld [vmem:[#allocation31_spill] sm:$0xff] }
 0x6e5   :  { %2080 = vmatprep.subr.bf16.mxu0 %v4005_v26  ;;  %2852 = vmatprep.subr.bf16.mxu1 %v4514_v19  ;;  %v4574_v23 = vld [vmem:[#allocation35_spill] sm:$0xff]  ;;  %v1835_v26 = vld [vmem:[#allocation4 + $0x48] sm:$0xff] }
 0x6e6   :  { %v1837_v32 = vunpack.c.l.bf16 %v1835_v26  ;;  %v1838_v4 = vunpack.c.h.bf16 %v1835_v26 }
 0x6e8   :  { %2081 = vmatpush1.bf16.msra.mxu0 %v4563_v40  ;;  %2853 = vmatpush3.bf16.msra.mxu1 %v4564_v41 }
 0x6e9   :  { %2082 = vmatprep.subr.bf16.mxu0 %v4565_v42  ;;  %2854 = vmatprep.subr.bf16.mxu1 %v4514_v19  ;;  %v1952_v42 = vunpack.c.l.bf16 %v1950_v30 }
 0x6ec   :  { %2083 = vmatpush1.bf16.msra.mxu0 %v4566_v43  ;;  %2855 = vmatpush3.bf16.msra.mxu1 %v4567_v44 }
 0x6ed   :  { %2084 = vmatprep.subr.bf16.mxu0 %v4568_v45  ;;  %2856 = vmatprep.subr.bf16.mxu1 %v4514_v19 }
 0x6f0   :  { %2085 = vmatpush1.bf16.msra.mxu0 %v4569_v46  ;;  %2857 = vmatpush3.bf16.msra.mxu1 %v4570_v47  ;;  %v1953_v46 = vunpack.c.h.bf16 %v1950_v30 }
 0x6f1   :  { %2086 = vmatprep.subr.bf16.mxu0 %v4571_v48  ;;  %2858 = vmatprep.subr.bf16.mxu1 %v4514_v19 }
 0x6f4   :  { %2087 = vmatpush1.bf16.msra.mxu0 %v4572_v49  ;;  %2859 = vmatpush3.bf16.msra.mxu1 %v4573_v50 }
 0x6f5   :  { %2186 = vmatprep.subr.bf16.mxu0 %v4574_v23  ;;  %2864 = vmatprep.subr.bf16.mxu1 %v4514_v19 }
 0x78a   :  { %v1876_v22 = vpop.f32.mrb[48].mxu0  ;;  %v1917_v12 = vpop.f32.mrb[48].mxu1 }
 0x78b   :  { %v1923_v56 = vadd.f32 %v1876_v22, %v1837_v32  ;;  %v1878_v7 = vpop.f32.mrb[49].mxu0  ;;  %v2822_v52 = vpop.f32.mrb[49].mxu1  ;;  %v1937_v57 = vadd.f32 %v4575_v3, %v1917_v12 }
 0x78c   :  { %v1880_v33 = vpop.f32.mrb[50].mxu0  ;;  %v1920_v16 = vpop.f32.mrb[50].mxu1  ;;  %v1930_v8 = vadd.f32 %v1878_v7, %v1838_v4 }
 0x78d   :  { %v2412_v37 = vmul.f32 -1.442695, %v1923_v56  ;;  %v1881_v60 = vpop.f32.mrb[51].mxu0  ;;  %v2823_v38 = vpop.f32.mrb[51].mxu1 }
 0x78e   :  { %v2413_v5 = vmul.f32 -1.442695, %v1930_v8 }
 0x78f   :  { %3085 = vpow2.f32 %v2412_v37 }
 0x790   :  { %3087 = vpow2.f32 %v2413_v5  ;;  %v4373_v5 = vld [vmem:[#allocation7 + $0x8] ss:$12 sps:$4 sm:$0xff]  }
 0x799   :  { %v3086_v6 = vpop.eup %3085 }
 0x79a   :  { %v1927_v24 = vadd.f32 1.0, %v3086_v6  ;;  %v3088_v2 = vpop.eup %3087 }
 0x79b   :  { %v1934_v14 = vadd.f32 1.0, %v3088_v2 }
 0x79c   :  { %3089 = vrcp.f32 %v1927_v24 }
 0x79d   :  { %3091 = vrcp.f32 %v1934_v14 }
 0x7a6   :  { %v3090_v40 = vpop.eup %3089 }
 0x7a7   :  { %v1938_v41 = vmul.f32 %v3090_v40, %v1937_v57  ;;  %v3092_v12 = vpop.eup %3091  ;;  %v2179_v57 = vld [vmem:[#allocation7] sm:$0xff]  ;;  %v2069_v40 = vunpack.c.h.bf16 %v4355_v18 }
 0x7a8   :  { %v1941_v7 = vsub.f32 1.0, %v3092_v12  ;;  %v1943_v16 = vmul.f32 %v3092_v12, %v4274_v53 }
 0x7a9   :  { %v1939_v43 = vadd.f32 %v1938_v41, %v1839_v62 }
 0x7aa   :  { %v1991_v44 = vpop.f32.mrb[52].mxu0  ;;  %v2032_v45 = vpop.f32.mrb[52].mxu1 }
 0x7ab   :  { %3093 = vtanh.f32 %v1939_v43  ;;  %v2038_v47 = vadd.f32 %v1991_v44, %v1952_v42  ;;  %v1993_v48 = vpop.f32.mrb[53].mxu0  ;;  %v2842_v49 = vpop.f32.mrb[53].mxu1  ;;  %v2181_v44 = vunpack.c.l.bf16 %v2179_v57 }
 0x7ac   :  { %v1995_v50 = vpop.f32.mrb[54].mxu0  ;;  %v2035_v23 = vpop.f32.mrb[54].mxu1  ;;  %v2045_v4 = vadd.f32 %v1993_v48, %v1953_v46  ;;  %v2182_v48 = vunpack.c.h.bf16 %v2179_v57 }
 0x7ad   :  { %v2414_v26 = vmul.f32 -1.442695, %v2038_v47  ;;  %v1996_v32 = vpop.f32.mrb[55].mxu0  ;;  %v2843_v22 = vpop.f32.mrb[55].mxu1 }
 0x7ae   :  { %v2415_v56 = vmul.f32 -1.442695, %v2045_v4 }
 0x7af   :  { %3095 = vpow2.f32 %v2414_v26 }
 0x7b0   :  { %3097 = vpow2.f32 %v2415_v56 }
 0x7b5   :  { %v3094_v52 = vpop.eup %3093 }
 0x7b6   :  { %v1942_v33 = vmul.f32 %v3094_v52, %v1941_v7 }
 0x7b8   :  { %v4360_v37 = vadd.f32 %v1943_v16, %v1942_v33 }
 0x7b9   :  { %v3096_v60 = vpop.eup %3095 }
 0x7ba   :  { %v2042_v38 = vadd.f32 1.0, %v3096_v60  ;;  %v1946_v8 = vpack.c.bf16 %v4360_v37, %v4360_v37  ;;  %v3098_v53 = vpop.eup %3097 }
 0x7bc   :  { %3099 = vrcp.f32 %v2042_v38  ;;  %1948 = vst [vmem:[#allocation15 + $0x18] sm:$0xf] %v1946_v8  ;;  %2105 = vmatmul.mubr.bf16.vlgmr.msra.gmra.mrb[56].mxu0 %v1946_v8  ;;  %2861 = vmatmul.mubr.bf16.vlgmr.msra.gmra.mrb[56].mxu1 %v1946_v8 }
 0x7bd   :  { %2187 = vmatpush1.bf16.msra.mxu0 %v4056_v13  ;;  %2865 = vmatpush3.bf16.msra.mxu1 %v4059_v55  ;;  %v2049_v13 = vadd.f32 1.0, %v3098_v53  ;;  %v1954_v55 = vunpack.c.h.bf16 %v4373_v5 }
 0x7be   :  { %2188 = vmatprep.subr.bf16.mxu0 %v4062_v58  ;;  %2866 = vmatprep.subr.bf16.mxu1 %v4514_v19  ;;  %v2052_v58 = vadd.f32 %v4204_v29, %v2032_v45 }
 0x7bf   :  { %2218 = vmatprep.mubr.bf16.mxu0 %v4515_v21  ;;  %2880 = vmatprep.mubr.msk.bf16.mxu1 %vm3377_vm0, %v4514_v19  ;;  %3101 = vrcp.f32 %v2049_v13 }
 0x7c1   :  { %2189 = vmatpush1.bf16.msra.mxu0 %v4069_v15  ;;  %2867 = vmatpush3.bf16.msra.mxu1 %v4072_v25 }
 0x7c2   :  { %2190 = vmatprep.subr.bf16.mxu0 %v4075_v27  ;;  %2868 = vmatprep.subr.bf16.mxu1 %v4514_v19 }
 0x7c5   :  { %2191 = vmatpush1.bf16.msra.mxu0 %v4081_v36  ;;  %2869 = vmatpush3.bf16.msra.mxu1 %v4084_v31 }
 0x7c6   :  { %v3100_v21 = vpop.eup %3099  ;;  %2192 = vmatprep.subr.bf16.mxu0 %v4087_v35  ;;  %2870 = vmatprep.subr.bf16.mxu1 %v4514_v19 }
 0x7c7   :  { %v2053_v15 = vmul.f32 %v3100_v21, %v2052_v58 }
 0x7c9   :  { %v2054_v25 = vadd.f32 %v2053_v15, %v1954_v55  ;;  %2193 = vmatpush1.bf16.msra.mxu0 %v4091_v39  ;;  %2871 = vmatpush3.bf16.msra.mxu1 %v4094_v51  ;;  %v3102_v27 = vpop.eup %3101 }
 0x7ca   :  { %2194 = vmatprep.subr.bf16.mxu0 %v4097_v34  ;;  %2872 = vmatprep.subr.bf16.mxu1 %v4514_v19  ;;  %v2056_v36 = vsub.f32 1.0, %v3102_v27  ;;  %v2058_v39 = vmul.f32 %v3102_v27, %v4312_v1 }
 0x7cb   :  { %3103 = vtanh.f32 %v2054_v25 }
 0x7cd   :  { %2195 = vmatpush1.bf16.msra.mxu0 %v4101_v9  ;;  %2873 = vmatpush3.bf16.msra.mxu1 %v4104_v10  ;;  %v2065_v9 = vld [vmem:[#allocation4 + $0x54] sm:$0xff] }
 0x7ce   :  { %2196 = vmatprep.subr.bf16.mxu0 %v4107_v11  ;;  %2874 = vmatprep.subr.bf16.mxu1 %v4514_v19  ;;  %v2067_v10 = vunpack.c.l.bf16 %v2065_v9 }
 0x7d1   :  { %2197 = vmatpush1.bf16.msra.mxu0 %v4111_v17  ;;  %2875 = vmatpush3.bf16.msra.mxu1 %v4114_v54 }
 0x7d2   :  { %2198 = vmatprep.subr.bf16.mxu0 %v4117_v59  ;;  %2876 = vmatprep.subr.bf16.mxu1 %v4514_v19 }
 0x7d5   :  { %v3104_v31 = vpop.eup %3103  ;;  %2199 = vmatpush1.bf16.msra.mxu0 %v4121_v20  ;;  %2877 = vmatpush3.bf16.msra.mxu1 %v4124_v63 }
 0x7d6   :  { %2200 = vmatprep.subr.bf16.mxu0 %v4127_v28  ;;  %2878 = vmatprep.subr.bf16.mxu1 %v4514_v19  ;;  %v2057_v35 = vmul.f32 %v3104_v31, %v2056_v36  ;;  %v2068_v19 = vunpack.c.h.bf16 %v2065_v9 }
 0x7d8   :  { %v4400_v51 = vadd.f32 %v2058_v39, %v2057_v35 }
 0x7d9   :  { %2201 = vmatpush1.bf16.msra.mxu0 %v4134_v0  ;;  %2879 = vmatpush3.bf16.msra.mxu1 %v4137_v61 }
 0x7da   :  { %v2061_v34 = vpack.c.bf16 %v4400_v51, %v4400_v51 }
 0x7dc   :  { %2063 = vst [vmem:[#allocation16 + $0x4] sm:$0xf] %v2061_v34  ;;  %2219 = vmatmul.mubr.bf16.vlgmr.msra.gmra.mrb[60].mxu0 %v2061_v34  ;;  %2881 = vmatmul.mubr.bf16.vlgmr.msra.gmra.mrb[60].mxu1 %v2061_v34 }
 0x88f   :  { %v2106_v11 = vpop.f32.mrb[56].mxu0  ;;  %v2147_v17 = vpop.f32.mrb[56].mxu1 }
 0x890   :  { %v2153_v54 = vadd.f32 %v2106_v11, %v2067_v10  ;;  %v2108_v59 = vpop.f32.mrb[57].mxu0  ;;  %v2862_v20 = vpop.f32.mrb[57].mxu1  ;;  %v2167_v41 = vadd.f32 %v4575_v3, %v2147_v17 }
 0x891   :  { %v2110_v63 = vpop.f32.mrb[58].mxu0  ;;  %v2150_v28 = vpop.f32.mrb[58].mxu1  ;;  %v2160_v61 = vadd.f32 %v2108_v59, %v2068_v19 }
 0x892   :  { %v2416_v1 = vmul.f32 -1.442695, %v2153_v54  ;;  %v2111_v0 = vpop.f32.mrb[59].mxu0  ;;  %v2863_v6 = vpop.f32.mrb[59].mxu1 }
 0x893   :  { %v2417_v24 = vmul.f32 -1.442695, %v2160_v61 }
 0x894   :  { %3105 = vpow2.f32 %v2416_v1 }
 0x895   :  { %3107 = vpow2.f32 %v2417_v24 }
 0x89e   :  { %v3106_v2 = vpop.eup %3105 }
 0x89f   :  { %v2157_v14 = vadd.f32 1.0, %v3106_v2  ;;  %v3108_v30 = vpop.eup %3107 }
 0x8a0   :  { %v2164_v62 = vadd.f32 1.0, %v3108_v30 }
 0x8a1   :  { %3109 = vrcp.f32 %v2157_v14 }
 0x8a2   :  { %3111 = vrcp.f32 %v2164_v62 }
 0x8ab   :  { %v3110_v42 = vpop.eup %3109 }
 0x8ac   :  { %v2168_v43 = vmul.f32 %v3110_v42, %v2167_v41  ;;  %v3112_v3 = vpop.eup %3111 }
 0x8ad   :  { %v2171_v7 = vsub.f32 1.0, %v3112_v3  ;;  %v2173_v16 = vmul.f32 %v3112_v3, %v4360_v37 }
 0x8ae   :  { %v2169_v45 = vadd.f32 %v2168_v43, %v2069_v40 }
 0x8af   :  { %v2220_v46 = vpop.f32.mrb[60].mxu0  ;;  %v2261_v47 = vpop.f32.mrb[60].mxu1 }
 0x8b0   :  { %3113 = vtanh.f32 %v2169_v45  ;;  %v2267_v49 = vadd.f32 %v2220_v46, %v2181_v44  ;;  %v2222_v50 = vpop.f32.mrb[61].mxu0  ;;  %v2882_v23 = vpop.f32.mrb[61].mxu1 }
 0x8b1   :  { %v2224_v26 = vpop.f32.mrb[62].mxu0  ;;  %v2264_v32 = vpop.f32.mrb[62].mxu1  ;;  %v2274_v18 = vadd.f32 %v2222_v50, %v2182_v48 }
 0x8b2   :  { %v2418_v22 = vmul.f32 -1.442695, %v2267_v49  ;;  %v2225_v4 = vpop.f32.mrb[63].mxu0  ;;  %v2883_v12 = vpop.f32.mrb[63].mxu1 }
 0x8b3   :  { %v2419_v56 = vmul.f32 -1.442695, %v2274_v18 }
 0x8b4   :  { %3115 = vpow2.f32 %v2418_v22 }
 0x8b5   :  { %3117 = vpow2.f32 %v2419_v56 }
 0x8ba   :  { %v3114_v52 = vpop.eup %3113 }
 0x8bb   :  { %v2172_v33 = vmul.f32 %v3114_v52, %v2171_v7 }
 0x8bd   :  { %v2174_v60 = vadd.f32 %v2173_v16, %v2172_v33 }
 0x8be   :  { %v3116_v38 = vpop.eup %3115 }
 0x8bf   :  { %v2176_v8 = vpack.c.bf16 %v2174_v60, %v2174_v60  ;;  %v2271_v53 = vadd.f32 1.0, %v3116_v38 }
 0x8c1   :  { %2178 = vst [vmem:[#allocation15 + $0x1c] sm:$0xf] %v2176_v8  ;;  %3119 = vrcp.f32 %v2271_v53 }
 0x8c2   :  { %3321 = shalt.err (!%p3318_p2)
}
 0x8c3   :  { %s3322_s13 = scalar_lea.hbm %s4448_s6, 512 }
 0x8c4   :  { %p3323_p3 = scmp.ne.s32.totalorder %s4448_s6, %s3322_s13  ;;  %p3326_p4 = scmp.lt.u32.totalorder %s3322_s13, %s4448_s6 }
 0x8c6   :  { %p3328_p5 = pnand %p3326_p4, %p3323_p3 }
 0x8c8   :  { %3331 = shalt.err (!%p3328_p5)
}
 0x8c9   :  { %s3380_s20 = smov 64   ;;  %s3381_s3 = smov 4   ;;  %v3118_v37 = vpop.eup %3117  ;;  %v2183_v55 = vunpack.c.l.bf16 %v4373_v5  ;;  %v2281_v58 = vadd.f32 %v4204_v29, %v2261_v47 }
 0x8ca   :  { %2303 = dma.vmem_to_hbm [thread:$0]  %s2298_s0, 512, %s4448_s6, [#allocation6], %s3380_s20, %s3380_s20, %s3381_s3   ;;  %v2278_v13 = vadd.f32 1.0, %v3118_v37 }
 0x8cb   :  { %v3120_v21 = vpop.eup %3119  ;;  %s3382_s2 = smov [#allocation16]  }
 0x8cc   :  { %v2282_v15 = vmul.f32 %v3120_v21, %v2281_v58  ;;  %3121 = vrcp.f32 %v2278_v13  ;;  %s2313_s18 = sshll.u32 %s3382_s2, 4  ;;  %s2314_s18 = int_to_ptr.vmem [resolvable:$true] %s2313_s18 }
 0x8cd   :  { %s3332_s6 = scalar_lea.vmem %s2314_s18, 512  ;;  %p3337_p7 = scmp.lt.s32.totalorder %s2314_s18, %s2314_s18 }
 0x8ce   :  { %v2283_v25 = vadd.f32 %v2282_v15, %v2183_v55  ;;  %p3333_p6 = scmp.ne.s32.totalorder %s2314_s18, %s3332_s6  ;;  %p3338_p8 = scmp.lt.s32.totalorder %s3332_s6, %s3332_s6 }
 0x8d0   :  { %3123 = vtanh.f32 %v2283_v25  ;;  %p3339_p9 = por %p3338_p8, %p3337_p7 }
 0x8d2   :  { %p3340_p10 = pnand %p3339_p9, %p3333_p6 }
 0x8d6   :  { %v3122_v27 = vpop.eup %3121 }
 0x8d7   :  { %v2285_v36 = vsub.f32 1.0, %v3122_v27  ;;  %v2287_v39 = vmul.f32 %v3122_v27, %v4400_v51 }
 0x8da   :  { %v3124_v31 = vpop.eup %3123 }
 0x8db   :  { %v2286_v35 = vmul.f32 %v3124_v31, %v2285_v36 }
 0x8dd   :  { %v2288_v34 = vadd.f32 %v2287_v39, %v2286_v35 }
 0x8df   :  { %v2290_v9 = vpack.c.bf16 %v2288_v34, %v2288_v34 }
 0x8e1   :  { %2291 = vst [vmem:[#allocation16] sm:$0xf] %v2290_v9 }
 0x8e2   :  { %3343 = shalt.err (!%p3340_p10)
}
 0x8e3   :  { %s3344_s22 = scalar_lea.hbm %s4449_s7, 512 }
 0x8e4   :  { %p3345_p11 = scmp.ne.s32.totalorder %s4449_s7, %s3344_s22  ;;  %p3348_p12 = scmp.lt.u32.totalorder %s3344_s22, %s4449_s7 }
 0x8e6   :  { %p3350_p13 = pnand %p3348_p12, %p3345_p11 }
 0x8e8   :  { %3353 = shalt.err (!%p3350_p13)
}
 0x8e9   :  { %2319 = dma.vmem_to_hbm [thread:$0]  %s2314_s18, 512, %s4449_s7, [#allocation17], %s3380_s20, %s3380_s20, %s3381_s3  }
 0x8ea   :  { %3362 = dma.done.wait [#allocation6], 512  }
 0x8eb   :  { %3363 = vsyncadd [#allocation6], 4294966784 }
 0x8ec   :  { %3364 = dma.done.wait [#allocation17], 512  }
 0x8ed   :  { %3365 = vsyncadd [#allocation17], 4294966784 }
 0x8ee   :  { %2326 = vsyncpa [#allocation5], 1 }
 0x8ef   :  { %2327 = vsyncpa [#allocation8], 1 }
 0x8f0   :  { %2328 = vsyncpa [#allocation11], 1 }
 0x8f1   :  { %2329 = vsyncpa [#allocation14], 1 }
 0x8f2   :  { %2330 = vsyncpa [#allocation6], 1 }
 0x8f3   :  { %2331 = vsyncpa [#allocation17], 1 }

</bundles_post_ra>
